<compile_context>
chip_gen: v7x
topology: tpu7x:2x2x1
jax: 0.10.0
libtpu: 0.0.40
codegen_flags: <defaults>
</compile_context>

<pallas_src>
import functools

import jax
import jax.numpy as jnp
import numpy as np
from jax.experimental import pallas as pl
from jax.experimental.pallas import tpu as pltpu


def _round_up(x, m):
    return ((x + m - 1) // m) * m


def _vae_kernel(x_ref, eps_ref,
                w_e1_ref, b_e1_ref, w_e2_ref, b_e2_ref,
                w_ml_ref, b_ml_ref,
                w_d1_ref, b_d1_ref, w_d2_ref, b_d2_ref,
                w_d3_ref, b_d3_ref,
                x_out_ref, mean_ref, logvar_ref, *, lp):
    f32 = jnp.float32
    cdt = w_e1_ref.dtype                       # MXU operand dtype (bf16)

    x = x_ref[...]                             # (BB, Dp) bf16

    # ---------------- encoder ----------------
    h = jnp.dot(x, w_e1_ref[...], preferred_element_type=f32) + b_e1_ref[...]
    h = jnp.maximum(h, 0.0).astype(cdt)
    h = jnp.dot(h, w_e2_ref[...], preferred_element_type=f32) + b_e2_ref[...]
    h = jnp.maximum(h, 0.0).astype(cdt)

    # fused fc_mean || fc_logvar: one (Hp, 2*Lp) matmul instead of two
    ml = jnp.dot(h, w_ml_ref[...], preferred_element_type=f32) + b_ml_ref[...]
    mean = ml[:, :lp]
    v = ml[:, lp:]
    # numerically stable softplus (EUP exp/log).  Padded lanes of `logvar`
    # evaluate to softplus(0)=ln(2); they are sliced off in the wrapper, and
    # since eps/mean padding is zero the padded z lanes below stay exactly 0.
    logvar = jnp.maximum(v, 0.0) + jnp.log1p(jnp.exp(-jnp.abs(v)))

    # ---- reparameterization: z = eps * exp(0.5*logvar) + mean ----
    z = (eps_ref[...] * jnp.exp(0.5 * logvar) + mean).astype(cdt)

    # ---------------- decoder ----------------
    d = jnp.dot(z, w_d1_ref[...], preferred_element_type=f32) + b_d1_ref[...]
    d = jnp.maximum(d, 0.0).astype(cdt)
    d = jnp.dot(d, w_d2_ref[...], preferred_element_type=f32) + b_d2_ref[...]
    d = jnp.maximum(d, 0.0).astype(cdt)
    logits = jnp.dot(d, w_d3_ref[...], preferred_element_type=f32) + b_d3_ref[...]

    x_out_ref[...] = jax.nn.sigmoid(logits)
    mean_ref[...] = mean
    logvar_ref[...] = logvar


def prepare_vae_params(params, weight_dtype=jnp.bfloat16):
    """One-time transpose + zero-pad + bf16 cast of the VAE parameters.

    PyTorch Linear stores W as (out, in); we transpose to (in, out) so the
    kernel computes x @ W.  Feature dims pad to multiples of 128 lanes
    (784->896, 500->512, 20->128).  fc_mean/fc_logvar are concatenated into a
    single (Hp, 2*Lp) matrix.  Call once; reuse the result across calls.
    """
    D = params["w_e1"].shape[1]
    H = params["w_e1"].shape[0]
    L = params["w_mu"].shape[0]
    Dp, Hp, Lp = _round_up(D, 128), _round_up(H, 128), _round_up(L, 128)

    def pad_w(a, rows, cols):
        a = jnp.asarray(a, jnp.float32).T
        a = jnp.pad(a, ((0, rows - a.shape[0]), (0, cols - a.shape[1])))
        return a.astype(weight_dtype)

    def pad_b(a, cols):
        a = jnp.asarray(a, jnp.float32)[None, :]
        return jnp.pad(a, ((0, 0), (0, cols - a.shape[1])))

    tensors = {
        "w_e1": pad_w(params["w_e1"], Dp, Hp), "b_e1": pad_b(params["b_e1"], Hp),
        "w_e2": pad_w(params["w_e2"], Hp, Hp), "b_e2": pad_b(params["b_e2"], Hp),
        "w_ml": jnp.concatenate(
            [pad_w(params["w_mu"], Hp, Lp), pad_w(params["w_lv"], Hp, Lp)], axis=1),
        "b_ml": jnp.concatenate(
            [pad_b(params["b_mu"], Lp), pad_b(params["b_lv"], Lp)], axis=1),
        "w_d1": pad_w(params["w_d1"], Lp, Hp), "b_d1": pad_b(params["b_d1"], Hp),
        "w_d2": pad_w(params["w_d2"], Hp, Hp), "b_d2": pad_b(params["b_d2"], Hp),
        "w_d3": pad_w(params["w_d3"], Hp, Dp), "b_d3": pad_b(params["b_d3"], Dp),
    }
    tensors = jax.block_until_ready(tensors)   # materialize once on device
    return {"tensors": tensors, "D": D, "H": H, "L": L}


def _const_spec(shape):
    idx = lambda i: (0, 0)
    try:
        # Weights/biases never change across grid steps: single-buffer them to
        # halve their resident VMEM (vs. the default double-buffering).
        return pl.BlockSpec(shape, idx, pipeline_mode=pl.Buffered(buffer_count=1))
    except Exception:  # older jax without pipeline_mode: fall back gracefully
        return pl.BlockSpec(shape, idx)


@functools.partial(jax.jit, static_argnames=("d", "l"))
def _vae_forward_padded(x, eps, t, *, d, l):
    Dp, Hp = t["w_e1"].shape
    Lp = t["w_d1"].shape[0]
    wdt = t["w_e1"].dtype

    x = x.reshape(-1, d).astype(jnp.float32)       # x_in.view(-1, input_dim)
    B = x.shape[0]

    # Batch tile: 256 rows fills the 256-wide MXU on v6e/v7x; for B > 256 the
    # grid has >= 2 parallel tiles so v7x's two TensorCores both work.
    BB = min(_round_up(B, 8), 256)
    Bp = _round_up(B, BB)

    x_p = jnp.pad(x, ((0, Bp - B), (0, Dp - d))).astype(wdt)
    eps_p = jnp.pad(eps.astype(jnp.float32), ((0, Bp - B), (0, Lp - l)))

    def batch_spec(cols):
        return pl.BlockSpec((BB, cols), lambda i: (i, 0))

    kernel = functools.partial(_vae_kernel, lp=Lp)

    x_out_p, mean_p, logvar_p = pl.pallas_call(
        kernel,
        out_shape=(
            jax.ShapeDtypeStruct((Bp, Dp), jnp.float32),   # x_out  (padded)
            jax.ShapeDtypeStruct((Bp, Lp), jnp.float32),   # mean   (padded)
            jax.ShapeDtypeStruct((Bp, Lp), jnp.float32),   # logvar (padded)
        ),
        grid_spec=pltpu.PrefetchScalarGridSpec(
            num_scalar_prefetch=0,
            grid=(Bp // BB,),
            in_specs=[
                batch_spec(Dp),                                      # x
                batch_spec(Lp),                                      # eps
                _const_spec((Dp, Hp)), _const_spec((1, Hp)),         # fc_e1
                _const_spec((Hp, Hp)), _const_spec((1, Hp)),         # fc_e2
                _const_spec((Hp, 2 * Lp)), _const_spec((1, 2 * Lp)), # fc_mean||fc_logvar
                _const_spec((Lp, Hp)), _const_spec((1, Hp)),         # fc_d1
                _const_spec((Hp, Hp)), _const_spec((1, Hp)),         # fc_d2
                _const_spec((Hp, Dp)), _const_spec((1, Dp)),         # fc_d3
            ],
            out_specs=(batch_spec(Dp), batch_spec(Lp), batch_spec(Lp)),
        ),
        compiler_params=pltpu.CompilerParams(
            dimension_semantics=("parallel",),       # batch tiles independent
            vmem_limit_bytes=32 * 1024 * 1024,       # explicit (safe on v5e/v6e/v7x)
        ),
    )(x_p, eps_p,
      t["w_e1"], t["b_e1"], t["w_e2"], t["b_e2"],
      t["w_ml"], t["b_ml"],
      t["w_d1"], t["b_d1"], t["w_d2"], t["b_d2"], t["w_d3"], t["b_d3"])

    return x_out_p[:B, :d], mean_p[:B, :l], logvar_p[:B, :l]


def vae_forward(x, eps, prep):
    """x: (B, input_dim), eps: (B, latent_dim) ~ N(0,1).  Returns
    (x_out, z_mean, z_logvar) matching VAE.forward."""
    return _vae_forward_padded(x, eps, prep["tensors"], d=prep["D"], l=prep["L"])


def _reference_forward(x, eps, p):
    """Pure-JAX f32 reference mirroring the PyTorch module (same eps)."""
    relu = jax.nn.relu
    h = relu(x @ p["w_e1"].T + p["b_e1"])
    h = relu(h @ p["w_e2"].T + p["b_e2"])
    mean = h @ p["w_mu"].T + p["b_mu"]
    logvar = jax.nn.softplus(h @ p["w_lv"].T + p["b_lv"])
    z = eps * jnp.exp(0.5 * logvar) + mean
    d = relu(z @ p["w_d1"].T + p["b_d1"])
    d = relu(d @ p["w_d2"].T + p["b_d2"])
    x_out = jax.nn.sigmoid(d @ p["w_d3"].T + p["b_d3"])
    return x_out, mean, logvar


if __name__ == "__main__":
    input_dim, hidden_dim, latent_dim = 784, 500, 20    # module defaults
    batch = 8

    key = jax.random.PRNGKey(0)
    ks = jax.random.split(key, 16)

    def linear_init(kw, kb, out_d, in_d):
        s = 1.0 / np.sqrt(in_d)
        w = jax.random.uniform(kw, (out_d, in_d), jnp.float32, -s, s)
        b = jax.random.uniform(kb, (out_d,), jnp.float32, -s, s)
        return w, b

    params = {}
    params["w_e1"], params["b_e1"] = linear_init(ks[0], ks[1], hidden_dim, input_dim)
    params["w_e2"], params["b_e2"] = linear_init(ks[2], ks[3], hidden_dim, hidden_dim)
    params["w_mu"], params["b_mu"] = linear_init(ks[4], ks[5], latent_dim, hidden_dim)
    params["w_lv"], params["b_lv"] = linear_init(ks[6], ks[7], latent_dim, hidden_dim)
    params["w_d1"], params["b_d1"] = linear_init(ks[8], ks[9], hidden_dim, latent_dim)
    params["w_d2"], params["b_d2"] = linear_init(ks[10], ks[11], hidden_dim, hidden_dim)
    params["w_d3"], params["b_d3"] = linear_init(ks[12], ks[13], input_dim, hidden_dim)

    x = jax.random.uniform(ks[14], (batch, input_dim), jnp.float32)     # MNIST-like [0,1)
    eps = jax.random.normal(ks[15], (batch, latent_dim), jnp.float32)   # torch.randn equivalent

    # One-time weight prep (cached across calls), then fused forward.
    prep = prepare_vae_params(params)
    x_out, z_mean, z_logvar = vae_forward(x, eps, prep)
    x_out, z_mean, z_logvar = jax.block_until_ready((x_out, z_mean, z_logvar))

    # Second call reuses the cached padded params + compiled kernel.
    x_out2, _, _ = jax.block_until_ready(vae_forward(x, eps, prep))

    ref_x, ref_mean, ref_logvar = _reference_forward(x, eps, params)
    np.testing.assert_allclose(np.asarray(x_out), np.asarray(ref_x), rtol=1e-2, atol=1e-2)
    np.testing.assert_allclose(np.asarray(x_out2), np.asarray(ref_x), rtol=1e-2, atol=1e-2)
    np.testing.assert_allclose(np.asarray(z_mean), np.asarray(ref_mean), rtol=1e-2, atol=1e-2)
    np.testing.assert_allclose(np.asarray(z_logvar), np.asarray(ref_logvar), rtol=1e-2, atol=1e-2)

    print("KERNEL_OK")
</pallas_src>

<mosaic_0001>
module attributes {stable_mosaic.version = 11 : i64} {
  func.func @_vae_kernel(%arg0: i32, %arg1: memref<8x896xbf16, #tpu.memory_space<vmem>>, %arg2: memref<8x128xf32, #tpu.memory_space<vmem>>, %arg3: memref<896x512xbf16, #tpu.memory_space<vmem>>, %arg4: memref<1x512xf32, #tpu.memory_space<vmem>>, %arg5: memref<512x512xbf16, #tpu.memory_space<vmem>>, %arg6: memref<1x512xf32, #tpu.memory_space<vmem>>, %arg7: memref<512x256xbf16, #tpu.memory_space<vmem>>, %arg8: memref<1x256xf32, #tpu.memory_space<vmem>>, %arg9: memref<128x512xbf16, #tpu.memory_space<vmem>>, %arg10: memref<1x512xf32, #tpu.memory_space<vmem>>, %arg11: memref<512x512xbf16, #tpu.memory_space<vmem>>, %arg12: memref<1x512xf32, #tpu.memory_space<vmem>>, %arg13: memref<512x896xbf16, #tpu.memory_space<vmem>>, %arg14: memref<1x896xf32, #tpu.memory_space<vmem>>, %arg15: memref<8x896xf32, #tpu.memory_space<vmem>>, %arg16: memref<8x128xf32, #tpu.memory_space<vmem>>, %arg17: memref<8x128xf32, #tpu.memory_space<vmem>>) attributes {dimension_semantics = [#tpu.dimension_semantics<parallel>], iteration_bounds = array<i64: 1>, scalar_prefetch = 0 : i64, scratch_operands = 0 : i64, tpu.core_type = #tpu.core_type<tc>, window_params = [{transform_indices = @transform_0, window_bounds = array<i64: 8, 896>}, {transform_indices = @transform_1, window_bounds = array<i64: 8, 128>}, {pipeline_mode = #tpu.pipeline_mode<synchronous>, transform_indices = @transform_2, window_bounds = array<i64: 896, 512>}, {pipeline_mode = #tpu.pipeline_mode<synchronous>, transform_indices = @transform_3, window_bounds = array<i64: 1, 512>}, {pipeline_mode = #tpu.pipeline_mode<synchronous>, transform_indices = @transform_4, window_bounds = array<i64: 512, 512>}, {pipeline_mode = #tpu.pipeline_mode<synchronous>, transform_indices = @transform_5, window_bounds = array<i64: 1, 512>}, {pipeline_mode = #tpu.pipeline_mode<synchronous>, transform_indices = @transform_6, window_bounds = array<i64: 512, 256>}, {pipeline_mode = #tpu.pipeline_mode<synchronous>, transform_indices = @transform_7, window_bounds = array<i64: 1, 256>}, {pipeline_mode = #tpu.pipeline_mode<synchronous>, transform_indices = @transform_8, window_bounds = array<i64: 128, 512>}, {pipeline_mode = #tpu.pipeline_mode<synchronous>, transform_indices = @transform_9, window_bounds = array<i64: 1, 512>}, {pipeline_mode = #tpu.pipeline_mode<synchronous>, transform_indices = @transform_10, window_bounds = array<i64: 512, 512>}, {pipeline_mode = #tpu.pipeline_mode<synchronous>, transform_indices = @transform_11, window_bounds = array<i64: 1, 512>}, {pipeline_mode = #tpu.pipeline_mode<synchronous>, transform_indices = @transform_12, window_bounds = array<i64: 512, 896>}, {pipeline_mode = #tpu.pipeline_mode<synchronous>, transform_indices = @transform_13, window_bounds = array<i64: 1, 896>}, {transform_indices = @transform_14, window_bounds = array<i64: 8, 896>}, {transform_indices = @transform_15, window_bounds = array<i64: 8, 128>}, {transform_indices = @transform_16, window_bounds = array<i64: 8, 128>}]} {
    %c0 = arith.constant 0 : index
    %c0_0 = arith.constant 0 : index
    %0 = vector.load %arg1[%c0, %c0_0] : memref<8x896xbf16, #tpu.memory_space<vmem>>, vector<8x896xbf16>
    %c0_1 = arith.constant 0 : index
    %c0_2 = arith.constant 0 : index
    %1 = vector.load %arg3[%c0_1, %c0_2] : memref<896x512xbf16, #tpu.memory_space<vmem>>, vector<896x512xbf16>
    %cst = arith.constant dense<0.000000e+00> : vector<8x512xf32>
    %2 = tpu.matmul %0, %1, %cst {dimension_numbers = #tpu.dot_dimension_numbers<[1], [0], [0], [1], [0, 0, 1, 1], [], []>} : vector<8x896xbf16>, vector<896x512xbf16>, vector<8x512xf32> -> vector<8x512xf32>
    %c0_3 = arith.constant 0 : index
    %c0_4 = arith.constant 0 : index
    %3 = vector.load %arg4[%c0_3, %c0_4] : memref<1x512xf32, #tpu.memory_space<vmem>>, vector<1x512xf32>
    %4 = vector.broadcast %3 : vector<1x512xf32> to vector<8x512xf32>
    %5 = arith.addf %2, %4 : vector<8x512xf32>
    %cst_5 = arith.constant 0.000000e+00 : f32
    %6 = vector.broadcast %cst_5 : f32 to vector<8x512xf32>
    %7 = arith.maximumf %5, %6 : vector<8x512xf32>
    %8 = arith.truncf %7 : vector<8x512xf32> to vector<8x512xbf16>
    %c0_6 = arith.constant 0 : index
    %c0_7 = arith.constant 0 : index
    %9 = vector.load %arg5[%c0_6, %c0_7] : memref<512x512xbf16, #tpu.memory_space<vmem>>, vector<512x512xbf16>
    %cst_8 = arith.constant dense<0.000000e+00> : vector<8x512xf32>
    %10 = tpu.matmul %8, %9, %cst_8 {dimension_numbers = #tpu.dot_dimension_numbers<[1], [0], [0], [1], [0, 0, 1, 1], [], []>} : vector<8x512xbf16>, vector<512x512xbf16>, vector<8x512xf32> -> vector<8x512xf32>
    %c0_9 = arith.constant 0 : index
    %c0_10 = arith.constant 0 : index
    %11 = vector.load %arg6[%c0_9, %c0_10] : memref<1x512xf32, #tpu.memory_space<vmem>>, vector<1x512xf32>
    %12 = vector.broadcast %11 : vector<1x512xf32> to vector<8x512xf32>
    %13 = arith.addf %10, %12 : vector<8x512xf32>
    %cst_11 = arith.constant 0.000000e+00 : f32
    %14 = vector.broadcast %cst_11 : f32 to vector<8x512xf32>
    %15 = arith.maximumf %13, %14 : vector<8x512xf32>
    %16 = arith.truncf %15 : vector<8x512xf32> to vector<8x512xbf16>
    %c0_12 = arith.constant 0 : index
    %c0_13 = arith.constant 0 : index
    %17 = vector.load %arg7[%c0_12, %c0_13] : memref<512x256xbf16, #tpu.memory_space<vmem>>, vector<512x256xbf16>
    %cst_14 = arith.constant dense<0.000000e+00> : vector<8x256xf32>
    %18 = tpu.matmul %16, %17, %cst_14 {dimension_numbers = #tpu.dot_dimension_numbers<[1], [0], [0], [1], [0, 0, 1, 1], [], []>} : vector<8x512xbf16>, vector<512x256xbf16>, vector<8x256xf32> -> vector<8x256xf32>
    %c0_15 = arith.constant 0 : index
    %c0_16 = arith.constant 0 : index
    %19 = vector.load %arg8[%c0_15, %c0_16] : memref<1x256xf32, #tpu.memory_space<vmem>>, vector<1x256xf32>
    %20 = vector.broadcast %19 : vector<1x256xf32> to vector<8x256xf32>
    %21 = arith.addf %18, %20 : vector<8x256xf32>
    %22 = vector.extract_strided_slice %21 {offsets = [0, 0], sizes = [8, 128], strides = [1, 1]} : vector<8x256xf32> to vector<8x128xf32>
    %23 = vector.extract_strided_slice %21 {offsets = [0, 128], sizes = [8, 128], strides = [1, 1]} : vector<8x256xf32> to vector<8x128xf32>
    %cst_17 = arith.constant 0.000000e+00 : f32
    %24 = vector.broadcast %cst_17 : f32 to vector<8x128xf32>
    %25 = arith.maximumf %23, %24 : vector<8x128xf32>
    %26 = math.absf %23 : vector<8x128xf32>
    %cst_18 = arith.constant 0.000000e+00 : f32
    %27 = vector.broadcast %cst_18 : f32 to vector<8x128xf32>
    %28 = arith.subf %27, %26 : vector<8x128xf32>
    %29 = math.exp %28 : vector<8x128xf32>
    %30 = math.log1p %29 : vector<8x128xf32>
    %31 = arith.addf %25, %30 : vector<8x128xf32>
    %c0_19 = arith.constant 0 : index
    %c0_20 = arith.constant 0 : index
    %32 = vector.load %arg2[%c0_19, %c0_20] : memref<8x128xf32, #tpu.memory_space<vmem>>, vector<8x128xf32>
    %cst_21 = arith.constant 5.000000e-01 : f32
    %33 = vector.broadcast %cst_21 : f32 to vector<8x128xf32>
    %34 = arith.mulf %33, %31 : vector<8x128xf32>
    %35 = math.exp %34 : vector<8x128xf32>
    %36 = arith.mulf %32, %35 : vector<8x128xf32>
    %37 = arith.addf %36, %22 : vector<8x128xf32>
    %38 = arith.truncf %37 : vector<8x128xf32> to vector<8x128xbf16>
    %c0_22 = arith.constant 0 : index
    %c0_23 = arith.constant 0 : index
    %39 = vector.load %arg9[%c0_22, %c0_23] : memref<128x512xbf16, #tpu.memory_space<vmem>>, vector<128x512xbf16>
    %cst_24 = arith.constant dense<0.000000e+00> : vector<8x512xf32>
    %40 = tpu.matmul %38, %39, %cst_24 {dimension_numbers = #tpu.dot_dimension_numbers<[1], [0], [0], [1], [0, 0, 1, 1], [], []>} : vector<8x128xbf16>, vector<128x512xbf16>, vector<8x512xf32> -> vector<8x512xf32>
    %c0_25 = arith.constant 0 : index
    %c0_26 = arith.constant 0 : index
    %41 = vector.load %arg10[%c0_25, %c0_26] : memref<1x512xf32, #tpu.memory_space<vmem>>, vector<1x512xf32>
    %42 = vector.broadcast %41 : vector<1x512xf32> to vector<8x512xf32>
    %43 = arith.addf %40, %42 : vector<8x512xf32>
    %cst_27 = arith.constant 0.000000e+00 : f32
    %44 = vector.broadcast %cst_27 : f32 to vector<8x512xf32>
    %45 = arith.maximumf %43, %44 : vector<8x512xf32>
    %46 = arith.truncf %45 : vector<8x512xf32> to vector<8x512xbf16>
    %c0_28 = arith.constant 0 : index
    %c0_29 = arith.constant 0 : index
    %47 = vector.load %arg11[%c0_28, %c0_29] : memref<512x512xbf16, #tpu.memory_space<vmem>>, vector<512x512xbf16>
    %cst_30 = arith.constant dense<0.000000e+00> : vector<8x512xf32>
    %48 = tpu.matmul %46, %47, %cst_30 {dimension_numbers = #tpu.dot_dimension_numbers<[1], [0], [0], [1], [0, 0, 1, 1], [], []>} : vector<8x512xbf16>, vector<512x512xbf16>, vector<8x512xf32> -> vector<8x512xf32>
    %c0_31 = arith.constant 0 : index
    %c0_32 = arith.constant 0 : index
    %49 = vector.load %arg12[%c0_31, %c0_32] : memref<1x512xf32, #tpu.memory_space<vmem>>, vector<1x512xf32>
    %50 = vector.broadcast %49 : vector<1x512xf32> to vector<8x512xf32>
    %51 = arith.addf %48, %50 : vector<8x512xf32>
    %cst_33 = arith.constant 0.000000e+00 : f32
    %52 = vector.broadcast %cst_33 : f32 to vector<8x512xf32>
    %53 = arith.maximumf %51, %52 : vector<8x512xf32>
    %54 = arith.truncf %53 : vector<8x512xf32> to vector<8x512xbf16>
    %c0_34 = arith.constant 0 : index
    %c0_35 = arith.constant 0 : index
    %55 = vector.load %arg13[%c0_34, %c0_35] : memref<512x896xbf16, #tpu.memory_space<vmem>>, vector<512x896xbf16>
    %cst_36 = arith.constant dense<0.000000e+00> : vector<8x896xf32>
    %56 = tpu.matmul %54, %55, %cst_36 {dimension_numbers = #tpu.dot_dimension_numbers<[1], [0], [0], [1], [0, 0, 1, 1], [], []>} : vector<8x512xbf16>, vector<512x896xbf16>, vector<8x896xf32> -> vector<8x896xf32>
    %c0_37 = arith.constant 0 : index
    %c0_38 = arith.constant 0 : index
    %57 = vector.load %arg14[%c0_37, %c0_38] : memref<1x896xf32, #tpu.memory_space<vmem>>, vector<1x896xf32>
    %58 = vector.broadcast %57 : vector<1x896xf32> to vector<8x896xf32>
    %59 = arith.addf %56, %58 : vector<8x896xf32>
    %60 = arith.negf %59 : vector<8x896xf32>
    %61 = math.exp %60 : vector<8x896xf32>
    %cst_39 = arith.constant 1.000000e+00 : f32
    %62 = vector.broadcast %cst_39 : f32 to vector<8x896xf32>
    %63 = arith.addf %62, %61 : vector<8x896xf32>
    %64 = arith.divf %62, %63 : vector<8x896xf32>
    %c0_40 = arith.constant 0 : index
    %c0_41 = arith.constant 0 : index
    %65 = vector.load %arg15[%c0_40, %c0_41] : memref<8x896xf32, #tpu.memory_space<vmem>>, vector<8x896xf32>
    tpu.vector_store %arg15[%c0_40, %c0_41], %64 {strides = array<i32>} : memref<8x896xf32, #tpu.memory_space<vmem>>, vector<8x896xf32>,
    %c0_42 = arith.constant 0 : index
    %c0_43 = arith.constant 0 : index
    %66 = vector.load %arg16[%c0_42, %c0_43] : memref<8x128xf32, #tpu.memory_space<vmem>>, vector<8x128xf32>
    tpu.vector_store %arg16[%c0_42, %c0_43], %22 {strides = array<i32>} : memref<8x128xf32, #tpu.memory_space<vmem>>, vector<8x128xf32>,
    %c0_44 = arith.constant 0 : index
    %c0_45 = arith.constant 0 : index
    %67 = vector.load %arg17[%c0_44, %c0_45] : memref<8x128xf32, #tpu.memory_space<vmem>>, vector<8x128xf32>
    tpu.vector_store %arg17[%c0_44, %c0_45], %31 {strides = array<i32>} : memref<8x128xf32, #tpu.memory_space<vmem>>, vector<8x128xf32>,
    return
  }
  func.func @transform_0(%arg0: i32) -> (i32, i32) {
    %c0_i32 = arith.constant 0 : i32
    %c0_i32_0 = arith.constant 0 : i32
    return %arg0, %c0_i32 : i32, i32
  }
  func.func @transform_1(%arg0: i32) -> (i32, i32) {
    %c0_i32 = arith.constant 0 : i32
    %c0_i32_0 = arith.constant 0 : i32
    return %arg0, %c0_i32 : i32, i32
  }
  func.func @transform_2(%arg0: i32) -> (i32, i32) {
    %c0_i32 = arith.constant 0 : i32
    %c0_i32_0 = arith.constant 0 : i32
    %c0_i32_1 = arith.constant 0 : i32
    return %c0_i32, %c0_i32_0 : i32, i32
  }
  func.func @transform_3(%arg0: i32) -> (i32, i32) {
    %c0_i32 = arith.constant 0 : i32
    %c0_i32_0 = arith.constant 0 : i32
    %c0_i32_1 = arith.constant 0 : i32
    return %c0_i32, %c0_i32_0 : i32, i32
  }
  func.func @transform_4(%arg0: i32) -> (i32, i32) {
    %c0_i32 = arith.constant 0 : i32
    %c0_i32_0 = arith.constant 0 : i32
    %c0_i32_1 = arith.constant 0 : i32
    return %c0_i32, %c0_i32_0 : i32, i32
  }
  func.func @transform_5(%arg0: i32) -> (i32, i32) {
    %c0_i32 = arith.constant 0 : i32
    %c0_i32_0 = arith.constant 0 : i32
    %c0_i32_1 = arith.constant 0 : i32
    return %c0_i32, %c0_i32_0 : i32, i32
  }
  func.func @transform_6(%arg0: i32) -> (i32, i32) {
    %c0_i32 = arith.constant 0 : i32
    %c0_i32_0 = arith.constant 0 : i32
    %c0_i32_1 = arith.constant 0 : i32
    return %c0_i32, %c0_i32_0 : i32, i32
  }
  func.func @transform_7(%arg0: i32) -> (i32, i32) {
    %c0_i32 = arith.constant 0 : i32
    %c0_i32_0 = arith.constant 0 : i32
    %c0_i32_1 = arith.constant 0 : i32
    return %c0_i32, %c0_i32_0 : i32, i32
  }
  func.func @transform_8(%arg0: i32) -> (i32, i32) {
    %c0_i32 = arith.constant 0 : i32
    %c0_i32_0 = arith.constant 0 : i32
    %c0_i32_1 = arith.constant 0 : i32
    return %c0_i32, %c0_i32_0 : i32, i32
  }
  func.func @transform_9(%arg0: i32) -> (i32, i32) {
    %c0_i32 = arith.constant 0 : i32
    %c0_i32_0 = arith.constant 0 : i32
    %c0_i32_1 = arith.constant 0 : i32
    return %c0_i32, %c0_i32_0 : i32, i32
  }
  func.func @transform_10(%arg0: i32) -> (i32, i32) {
    %c0_i32 = arith.constant 0 : i32
    %c0_i32_0 = arith.constant 0 : i32
    %c0_i32_1 = arith.constant 0 : i32
    return %c0_i32, %c0_i32_0 : i32, i32
  }
  func.func @transform_11(%arg0: i32) -> (i32, i32) {
    %c0_i32 = arith.constant 0 : i32
    %c0_i32_0 = arith.constant 0 : i32
    %c0_i32_1 = arith.constant 0 : i32
    return %c0_i32, %c0_i32_0 : i32, i32
  }
  func.func @transform_12(%arg0: i32) -> (i32, i32) {
    %c0_i32 = arith.constant 0 : i32
    %c0_i32_0 = arith.constant 0 : i32
    %c0_i32_1 = arith.constant 0 : i32
    return %c0_i32, %c0_i32_0 : i32, i32
  }
  func.func @transform_13(%arg0: i32) -> (i32, i32) {
    %c0_i32 = arith.constant 0 : i32
    %c0_i32_0 = arith.constant 0 : i32
    %c0_i32_1 = arith.constant 0 : i32
    return %c0_i32, %c0_i32_0 : i32, i32
  }
  func.func @transform_14(%arg0: i32) -> (i32, i32) {
    %c0_i32 = arith.constant 0 : i32
    %c0_i32_0 = arith.constant 0 : i32
    return %arg0, %c0_i32 : i32, i32
  }
  func.func @transform_15(%arg0: i32) -> (i32, i32) {
    %c0_i32 = arith.constant 0 : i32
    %c0_i32_0 = arith.constant 0 : i32
    return %arg0, %c0_i32 : i32, i32
  }
  func.func @transform_16(%arg0: i32) -> (i32, i32) {
    %c0_i32 = arith.constant 0 : i32
    %c0_i32_0 = arith.constant 0 : i32
    return %arg0, %c0_i32 : i32, i32
  }
}

</mosaic_0001>

<bundles_post_ra>
// kernel: _vae_forward_padded.1
= control target key start
LH: loop header
LB: loop body
LE: loop exit
PB: predicated region body
PF: predicated region fallthrough
CT: control target
= control target key end

     0   :  { %s9245_s0 = inlined_call_operand.vmem [shape: bf16[8,896], index: 0, kind: input, shape index: {}]   ;;  %s9246_s1 = inlined_call_operand.vmem [shape: f32[8,128], index: 1, kind: input, shape index: {}]   ;;  %s9247_s2 = inlined_call_operand.hbm [shape: bf16[896,512], index: 2, kind: input, shape index: {}]   ;;  %s9248_s3 = inlined_call_operand.vmem [shape: f32[1,512], index: 3, kind: input, shape index: {}]   ;;  %s9249_s4 = inlined_call_operand.hbm [shape: bf16[512,512], index: 4, kind: input, shape index: {}]   ;;  %s9250_s5 = inlined_call_operand.vmem [shape: f32[1,512], index: 5, kind: input, shape index: {}]   ;;  %s9251_s6 = inlined_call_operand.hbm [shape: bf16[512,256], index: 6, kind: input, shape index: {}]   ;;  %s9252_s7 = inlined_call_operand.vmem [shape: f32[1,256], index: 7, kind: input, shape index: {}]   ;;  %s9253_s8 = inlined_call_operand.hbm [shape: bf16[128,512], index: 8, kind: input, shape index: {}]   ;;  %s9254_s9 = inlined_call_operand.vmem [shape: f32[1,512], index: 9, kind: input, shape index: {}]   ;;  %s9255_s10 = inlined_call_operand.hbm [shape: bf16[512,512], index: 10, kind: input, shape index: {}]   ;;  %s9256_s11 = inlined_call_operand.vmem [shape: f32[1,512], index: 11, kind: input, shape index: {}]   ;;  %s9257_s12 = inlined_call_operand.hbm [shape: bf16[512,896], index: 12, kind: input, shape index: {}]   ;;  %s9258_s13 = inlined_call_operand.vmem [shape: f32[1,896], index: 13, kind: input, shape index: {}]   ;;  %s9259_s14 = inlined_call_operand.hbm [shape: f32[8,896], index: 14, kind: output, shape index: {0}]   ;;  %s9260_s15 = inlined_call_operand.hbm [shape: f32[8,128], index: 15, kind: output, shape index: {1}]   ;;  %s9261_s16 = inlined_call_operand.hbm [shape: f32[8,128], index: 16, kind: output, shape index: {2}]  }
   0x1   :  { %9263 = sst [smem:[#allocation23_spill]] %s9245_s0 }
   0x2   :  { %22 = vsyncpa [#allocation3], 0 }
   0x3   :  { %23 = vsyncpa [#allocation6], 0 }
   0x4   :  { %24 = vsyncpa [#allocation9], 0 }
   0x5   :  { %25 = vsyncpa [#allocation12], 0 }
   0x6   :  { %26 = vsyncpa [#allocation4], 0 }
   0x7   :  { %27 = vsyncpa [#allocation15], 0  ;;  %s8846_s21 = smov [#allocation5]   ;;  %s8847_s23 = smov [#allocation8]  }
   0x8   :  { %s51_s22 = sshll.u32 %s8846_s21, 4  ;;  %s79_s24 = sshll.u32 %s8847_s23, 4  ;;  %s52_s22 = int_to_ptr.vmem [resolvable:$true] %s51_s22  ;;  %s8947_s24 = int_to_ptr.vmem [resolvable:$true] %s79_s24 }
   0x9   :  { %s8636_s27 = scalar_lea.hbm %s9249_s4, 16384 }
   0xa   :  { %p8637_p0 = scmp.ne.s32.totalorder %s9249_s4, %s8636_s27  ;;  %p8640_p1 = scmp.lt.u32.totalorder %s8636_s27, %s9249_s4 }
   0xc   :  { %p8642_p2 = pnand %p8640_p1, %p8637_p0 }
   0xe   :  { %8645 = shalt.err (!%p8642_p2)
}
   0xf   :  { %s8646_s17 = scalar_lea.vmem %s52_s22, 16384  ;;  %p8651_p4 = scmp.lt.s32.totalorder %s52_s22, %s52_s22 }
  0x10   :  { %p8647_p3 = scmp.ne.s32.totalorder %s52_s22, %s8646_s17  ;;  %p8652_p5 = scmp.lt.s32.totalorder %s8646_s17, %s8646_s17 }
  0x12   :  { %p8653_p6 = por %p8652_p5, %p8651_p4 }
  0x14   :  { %p8654_p7 = pnand %p8653_p6, %p8647_p3 }
  0x16   :  { %8657 = shalt.err (!%p8654_p7)
}
  0x17   :  { %s8848_s18 = smov 256   ;;  %s8849_s19 = smov 16  }
  0x18   :  { %57 = dma.hbm_to_vmem [thread:$0]  %s9249_s4, 16384, %s52_s22, [#allocation6], %s8848_s18, %s8848_s18, %s8849_s19  }
  0x19   :  { %s8658_s26 = scalar_lea.hbm %s9253_s8, 4096 }
  0x1a   :  { %p8659_p8 = scmp.ne.s32.totalorder %s9253_s8, %s8658_s26  ;;  %p8662_p9 = scmp.lt.u32.totalorder %s8658_s26, %s9253_s8 }
  0x1c   :  { %p8664_p10 = pnand %p8662_p9, %p8659_p8 }
  0x1e   :  { %8667 = shalt.err (!%p8664_p10)
}
  0x1f   :  { %s8668_s0 = scalar_lea.vmem %s8947_s24, 4096  ;;  %p8673_p12 = scmp.lt.s32.totalorder %s8947_s24, %s8947_s24 }
  0x20   :  { %p8669_p11 = scmp.ne.s32.totalorder %s8947_s24, %s8668_s0  ;;  %p8674_p13 = scmp.lt.s32.totalorder %s8668_s0, %s8668_s0 }
  0x22   :  { %p8675_p0 = por %p8674_p13, %p8673_p12 }
  0x24   :  { %p8676_p1 = pnand %p8675_p0, %p8669_p11 }
  0x26   :  { %8679 = shalt.err (!%p8676_p1)
}
  0x27   :  { %85 = dma.hbm_to_vmem [thread:$0]  %s9253_s8, 4096, %s8947_s24, [#allocation9], %s8848_s18, %s8848_s18, %s8849_s19  }
  0x28   :  { %s8850_s17 = smov [#allocation2]   ;;  %s8851_s21 = smov [#allocation7]  }
  0x29   :  { %s37_s20 = sshll.u32 %s8850_s17, 4  ;;  %s65_s23 = sshll.u32 %s8851_s21, 4  ;;  %s38_s20 = int_to_ptr.vmem [resolvable:$true] %s37_s20  ;;  %s8984_s23 = int_to_ptr.vmem [resolvable:$true] %s65_s23 }
  0x2a   :  { %s8680_s27 = scalar_lea.hbm %s9247_s2, 28672 }
  0x2b   :  { %p8681_p2 = scmp.ne.s32.totalorder %s9247_s2, %s8680_s27  ;;  %p8684_p3 = scmp.lt.u32.totalorder %s8680_s27, %s9247_s2 }
  0x2d   :  { %p8686_p4 = pnand %p8684_p3, %p8681_p2 }
  0x2f   :  { %8689 = shalt.err (!%p8686_p4)
}
  0x30   :  { %s8690_s8 = scalar_lea.vmem %s38_s20, 28672  ;;  %p8695_p6 = scmp.lt.s32.totalorder %s38_s20, %s38_s20 }
  0x31   :  { %p8691_p5 = scmp.ne.s32.totalorder %s38_s20, %s8690_s8  ;;  %p8696_p7 = scmp.lt.s32.totalorder %s8690_s8, %s8690_s8 }
  0x33   :  { %p8697_p8 = por %p8696_p7, %p8695_p6 }
  0x35   :  { %p8698_p9 = pnand %p8697_p8, %p8691_p5 }
  0x37   :  { %8701 = shalt.err (!%p8698_p9)
}
  0x38   :  { %43 = dma.hbm_to_vmem [thread:$0]  %s9247_s2, 28672, %s38_s20, [#allocation3], %s8848_s18, %s8848_s18, %s8849_s19  }
  0x39   :  { %s8702_s21 = scalar_lea.hbm %s9251_s6, 8192 }
  0x3a   :  { %p8703_p10 = scmp.ne.s32.totalorder %s9251_s6, %s8702_s21  ;;  %p8706_p11 = scmp.lt.u32.totalorder %s8702_s21, %s9251_s6 }
  0x3c   :  { %p8708_p12 = pnand %p8706_p11, %p8703_p10 }
  0x3e   :  { %8711 = shalt.err (!%p8708_p12)
}
  0x3f   :  { %s8712_s29 = scalar_lea.vmem %s8984_s23, 8192  ;;  %p8717_p0 = scmp.lt.s32.totalorder %s8984_s23, %s8984_s23 }
  0x40   :  { %p8713_p13 = scmp.ne.s32.totalorder %s8984_s23, %s8712_s29  ;;  %p8718_p1 = scmp.lt.s32.totalorder %s8712_s29, %s8712_s29 }
  0x42   :  { %p8719_p2 = por %p8718_p1, %p8717_p0 }
  0x44   :  { %p8720_p3 = pnand %p8719_p2, %p8713_p13 }
  0x46   :  { %8723 = shalt.err (!%p8720_p3)
}
  0x47   :  { %s8852_s2 = smov 128   ;;  %s8853_s20 = smov 8  }
  0x48   :  { %71 = dma.hbm_to_vmem [thread:$0]  %s9251_s6, 8192, %s8984_s23, [#allocation6], %s8852_s2, %s8852_s2, %s8853_s20  }
  0x49   :  { %s8854_s8 = smov [#allocation10]   ;;  %s8855_s4 = smov [#allocation11]  }
  0x4a   :  { %s93_s24 = sshll.u32 %s8854_s8, 4  ;;  %s107_s22 = sshll.u32 %s8855_s4, 4  ;;  %s94_s24 = int_to_ptr.vmem [resolvable:$true] %s93_s24  ;;  %s9018_s22 = int_to_ptr.vmem [resolvable:$true] %s107_s22 }
  0x4b   :  { %s8724_s25 = scalar_lea.hbm %s9255_s10, 16384 }
  0x4c   :  { %p8725_p4 = scmp.ne.s32.totalorder %s9255_s10, %s8724_s25  ;;  %p8728_p5 = scmp.lt.u32.totalorder %s8724_s25, %s9255_s10 }
  0x4e   :  { %p8730_p6 = pnand %p8728_p5, %p8725_p4 }
  0x50   :  { %8733 = shalt.err (!%p8730_p6)
}
  0x51   :  { %s8734_s6 = scalar_lea.vmem %s94_s24, 16384  ;;  %p8739_p8 = scmp.lt.s32.totalorder %s94_s24, %s94_s24 }
  0x52   :  { %p8735_p7 = scmp.ne.s32.totalorder %s94_s24, %s8734_s6  ;;  %p8740_p9 = scmp.lt.s32.totalorder %s8734_s6, %s8734_s6 }
  0x54   :  { %p8741_p10 = por %p8740_p9, %p8739_p8 }
  0x56   :  { %p8742_p11 = pnand %p8741_p10, %p8735_p7 }
  0x58   :  { %8745 = shalt.err (!%p8742_p11)
}
  0x59   :  { %99 = dma.hbm_to_vmem [thread:$0]  %s9255_s10, 16384, %s94_s24, [#allocation9], %s8848_s18, %s8848_s18, %s8849_s19  }
  0x5a   :  { %s8746_s0 = scalar_lea.hbm %s9257_s12, 28672 }
  0x5b   :  { %p8747_p12 = scmp.ne.s32.totalorder %s9257_s12, %s8746_s0  ;;  %p8750_p13 = scmp.lt.u32.totalorder %s8746_s0, %s9257_s12 }
  0x5d   :  { %p8752_p0 = pnand %p8750_p13, %p8747_p12 }
  0x5f   :  { %8755 = shalt.err (!%p8752_p0)
}
  0x60   :  { %s8756_s25 = scalar_lea.vmem %s9018_s22, 28672  ;;  %p8761_p2 = scmp.lt.s32.totalorder %s9018_s22, %s9018_s22 }
  0x61   :  { %p8757_p1 = scmp.ne.s32.totalorder %s9018_s22, %s8756_s25  ;;  %p8762_p3 = scmp.lt.s32.totalorder %s8756_s25, %s8756_s25 }
  0x63   :  { %p8763_p4 = por %p8762_p3, %p8761_p2 }
  0x65   :  { %p8764_p5 = pnand %p8763_p4, %p8757_p1 }
  0x67   :  { %8767 = shalt.err (!%p8764_p5)
}
  0x68   :  { %s8856_s10 = smov 448   ;;  %s8857_s18 = smov 28  }
  0x69   :  { %113 = dma.hbm_to_vmem [thread:$0]  %s9257_s12, 28672, %s9018_s22, [#allocation12], %s8856_s10, %s8856_s10, %s8857_s18  }
  0x6a   :  { %8834 = dma.done.wait [#allocation3], 28672  }
  0x6b   :  { %8835 = vsyncadd [#allocation3], 4294938624 }
  0x6c   :  { %8836 = dma.done.wait [#allocation6], 24576  }
  0x6d   :  { %8837 = vsyncadd [#allocation6], 4294942720 }
  0x6e   :  { %8838 = dma.done.wait [#allocation9], 20480  }
  0x6f   :  { %8839 = vsyncadd [#allocation9], 4294946816 }
  0x70   :  { %8840 = dma.done.wait [#allocation12], 28672  }
  0x71   :  { %8841 = vsyncadd [#allocation12], 4294938624  ;;  %v7411_v0 = vld [vmem:[#allocation2 + $0x4] ss:$16 sps:$4 sm:$0xff]   ;;  %v7413_v1 = vld [vmem:[#allocation2 + $0xc] ss:$16 sps:$4 sm:$0xff]  }
  0x72   :  { %1530 = vmatprep.subr.bf16.mxu0 %v7411_v0  ;;  %v7415_v2 = vld [vmem:[#allocation2] ss:$16 sps:$4 sm:$0xff]   ;;  %v7416_v3 = vld [vmem:[#allocation2 + $0x8] ss:$16 sps:$4 sm:$0xff]   ;;  %1694 = vmatprep.subr.bf16.mxu1 %v7413_v1  ;;  %v7417_v4 = vld [vmem:[#allocation2 + $0x24] ss:$16 sps:$4 sm:$0xff]  }
  0x73   :  { %1531 = vmatpush1.bf16.msra.mxu0 %v7415_v2  ;;  %1695 = vmatpush1.bf16.msra.mxu1 %v7416_v3  ;;  %v7419_v5 = vld [vmem:[#allocation2 + $0x2c] ss:$16 sps:$4 sm:$0xff]   ;;  %v7421_v6 = vld [vmem:[#allocation2 + $0x20] ss:$16 sps:$4 sm:$0xff]   ;;  %v7422_v7 = vld [vmem:[#allocation2 + $0x28] ss:$16 sps:$4 sm:$0xff]  }
  0x74   :  { %1532 = vmatprep.subr.bf16.mxu0 %v7417_v4  ;;  %1696 = vmatprep.subr.bf16.mxu1 %v7419_v5  ;;  %v7423_v8 = vld [vmem:[#allocation2 + $0x44] ss:$16 sps:$4 sm:$0xff]   ;;  %v7425_v9 = vld [vmem:[#allocation2 + $0x4c] ss:$16 sps:$4 sm:$0xff]   ;;  %v7427_v10 = vld [vmem:[#allocation2 + $0x40] ss:$16 sps:$4 sm:$0xff]  }
  0x75   :  { %v7428_v11 = vld [vmem:[#allocation2 + $0x48] ss:$16 sps:$4 sm:$0xff]   ;;  %v7429_v12 = vld [vmem:[#allocation2 + $0x64] ss:$16 sps:$4 sm:$0xff]   ;;  %v7431_v13 = vld [vmem:[#allocation2 + $0x6c] ss:$16 sps:$4 sm:$0xff]  }
  0x76   :  { %v7433_v14 = vld [vmem:[#allocation2 + $0x60] ss:$16 sps:$4 sm:$0xff]   ;;  %v7434_v15 = vld [vmem:[#allocation2 + $0x68] ss:$16 sps:$4 sm:$0xff]   ;;  %v7435_v16 = vld [vmem:[#allocation2 + $0x84] ss:$16 sps:$4 sm:$0xff]  }
  0x77   :  { %1533 = vmatpush1.bf16.msra.mxu0 %v7421_v6  ;;  %1697 = vmatpush1.bf16.msra.mxu1 %v7422_v7  ;;  %v7437_v17 = vld [vmem:[#allocation2 + $0x8c] ss:$16 sps:$4 sm:$0xff]   ;;  %v7439_v18 = vld [vmem:[#allocation2 + $0x80] ss:$16 sps:$4 sm:$0xff]   ;;  %v7440_v19 = vld [vmem:[#allocation2 + $0x88] ss:$16 sps:$4 sm:$0xff]  }
  0x78   :  { %1534 = vmatprep.subr.bf16.mxu0 %v7423_v8  ;;  %1698 = vmatprep.subr.bf16.mxu1 %v7425_v9  ;;  %v7441_v20 = vld [vmem:[#allocation2 + $0xa4] ss:$16 sps:$4 sm:$0xff]   ;;  %v7443_v21 = vld [vmem:[#allocation2 + $0xac] ss:$16 sps:$4 sm:$0xff]   ;;  %v7445_v22 = vld [vmem:[#allocation2 + $0xa0] ss:$16 sps:$4 sm:$0xff]  }
  0x79   :  { %v7446_v23 = vld [vmem:[#allocation2 + $0xa8] ss:$16 sps:$4 sm:$0xff]   ;;  %v7447_v24 = vld [vmem:[#allocation2 + $0xc4] ss:$16 sps:$4 sm:$0xff]   ;;  %v7449_v25 = vld [vmem:[#allocation2 + $0xcc] ss:$16 sps:$4 sm:$0xff]  }
  0x7a   :  { %v7451_v26 = vld [vmem:[#allocation2 + $0xc0] ss:$16 sps:$4 sm:$0xff]   ;;  %v7452_v27 = vld [vmem:[#allocation2 + $0xc8] ss:$16 sps:$4 sm:$0xff]   ;;  %v7453_v28 = vld [vmem:[#allocation2 + $0xe4] ss:$16 sps:$4 sm:$0xff]  }
  0x7b   :  { %1535 = vmatpush1.bf16.msra.mxu0 %v7427_v10  ;;  %1699 = vmatpush1.bf16.msra.mxu1 %v7428_v11  ;;  %v7455_v29 = vld [vmem:[#allocation2 + $0xec] ss:$16 sps:$4 sm:$0xff]   ;;  %v7457_v30 = vld [vmem:[#allocation2 + $0xe0] ss:$16 sps:$4 sm:$0xff]   ;;  %v7458_v31 = vld [vmem:[#allocation2 + $0xe8] ss:$16 sps:$4 sm:$0xff]  }
  0x7c   :  { %1536 = vmatprep.subr.bf16.mxu0 %v7429_v12  ;;  %1700 = vmatprep.subr.bf16.mxu1 %v7431_v13  ;;  %v7459_v32 = vld [vmem:[#allocation2 + $0x104] ss:$16 sps:$4 sm:$0xff]   ;;  %v7461_v33 = vld [vmem:[#allocation2 + $0x10c] ss:$16 sps:$4 sm:$0xff]   ;;  %v7463_v34 = vld [vmem:[#allocation2 + $0x100] ss:$16 sps:$4 sm:$0xff]  }
  0x7d   :  { %v7464_v35 = vld [vmem:[#allocation2 + $0x108] ss:$16 sps:$4 sm:$0xff]   ;;  %v7465_v36 = vld [vmem:[#allocation2 + $0x124] ss:$16 sps:$4 sm:$0xff]   ;;  %v7467_v37 = vld [vmem:[#allocation2 + $0x12c] ss:$16 sps:$4 sm:$0xff]  }
  0x7e   :  { %v7469_v38 = vld [vmem:[#allocation2 + $0x120] ss:$16 sps:$4 sm:$0xff]   ;;  %v7470_v39 = vld [vmem:[#allocation2 + $0x128] ss:$16 sps:$4 sm:$0xff]   ;;  %v7471_v40 = vld [vmem:[#allocation2 + $0x144] ss:$16 sps:$4 sm:$0xff]  }
  0x7f   :  { %1537 = vmatpush1.bf16.msra.mxu0 %v7433_v14  ;;  %1701 = vmatpush1.bf16.msra.mxu1 %v7434_v15  ;;  %v7473_v41 = vld [vmem:[#allocation2 + $0x14c] ss:$16 sps:$4 sm:$0xff]   ;;  %v7475_v42 = vld [vmem:[#allocation2 + $0x140] ss:$16 sps:$4 sm:$0xff]   ;;  %v7476_v43 = vld [vmem:[#allocation2 + $0x148] ss:$16 sps:$4 sm:$0xff]  }
  0x80   :  { %1538 = vmatprep.subr.bf16.mxu0 %v7435_v16  ;;  %1702 = vmatprep.subr.bf16.mxu1 %v7437_v17  ;;  %v7477_v44 = vld [vmem:[#allocation2 + $0x164] ss:$16 sps:$4 sm:$0xff]   ;;  %v7479_v45 = vld [vmem:[#allocation2 + $0x16c] ss:$16 sps:$4 sm:$0xff]   ;;  %s9264_s26 = sld [smem:[#allocation23_spill]] }
  0x81   :  { %v7481_v47 = vld [vmem:[#allocation2 + $0x160] ss:$16 sps:$4 sm:$0xff]   ;;  %v7482_v49 = vld [vmem:[#allocation2 + $0x168] ss:$16 sps:$4 sm:$0xff]   ;;  %v7483_v50 = vld [vmem:[#allocation2 + $0x184] ss:$16 sps:$4 sm:$0xff]  }
  0x82   :  { %v7485_v51 = vld [vmem:[#allocation2 + $0x18c] ss:$16 sps:$4 sm:$0xff]   ;;  %v7487_v52 = vld [vmem:[#allocation2 + $0x180] ss:$16 sps:$4 sm:$0xff]   ;;  %v7488_v53 = vld [vmem:[#allocation2 + $0x188] ss:$16 sps:$4 sm:$0xff]  }
  0x83   :  { %1539 = vmatpush1.bf16.msra.mxu0 %v7439_v18  ;;  %1703 = vmatpush1.bf16.msra.mxu1 %v7440_v19  ;;  %v7489_v54 = vld [vmem:[#allocation2 + $0x1a4] ss:$16 sps:$4 sm:$0xff]   ;;  %v7491_v55 = vld [vmem:[#allocation2 + $0x1ac] ss:$16 sps:$4 sm:$0xff]   ;;  %v7493_v56 = vld [vmem:[#allocation2 + $0x1a0] ss:$16 sps:$4 sm:$0xff]  }
  0x84   :  { %1540 = vmatprep.subr.bf16.mxu0 %v7441_v20  ;;  %1704 = vmatprep.subr.bf16.mxu1 %v7443_v21  ;;  %v7494_v57 = vld [vmem:[#allocation2 + $0x1a8] ss:$16 sps:$4 sm:$0xff]   ;;  %v7495_v58 = vld [vmem:[#allocation2 + $0x1c4] ss:$16 sps:$4 sm:$0xff]   ;;  %v7497_v59 = vld [vmem:[#allocation2 + $0x1cc] ss:$16 sps:$4 sm:$0xff]  }
  0x85   :  { %v7499_v60 = vld [vmem:[#allocation2 + $0x1c0] ss:$16 sps:$4 sm:$0xff]   ;;  %v7500_v61 = vld [vmem:[#allocation2 + $0x1c8] ss:$16 sps:$4 sm:$0xff]   ;;  %v7501_v62 = vld [vmem:[#allocation2 + $0x1e4] ss:$16 sps:$4 sm:$0xff]  }
  0x86   :  { %v135_v46 = vld [vmem:[%s9264_s26] sm:$0xff]  ;;  %v7503_v63 = vld [vmem:[#allocation2 + $0x1ec] ss:$16 sps:$4 sm:$0xff]   ;;  %v7506_v1 = vld [vmem:[#allocation2 + $0x1e8] ss:$16 sps:$4 sm:$0xff]  }
  0x87   :  { %1541 = vmatpush1.bf16.msra.mxu0 %v7445_v22  ;;  %1705 = vmatpush1.bf16.msra.mxu1 %v7446_v23  ;;  %v6462_v48 = vcombine.high %v135_v46, %v135_v46  ;;  %v7505_v0 = vld [vmem:[#allocation2 + $0x1e0] ss:$16 sps:$4 sm:$0xff]   ;;  %v7511_v2 = vld [vmem:[#allocation2 + $0x204] ss:$16 sps:$4 sm:$0xff]   ;;  %v7514_v3 = vld [vmem:[#allocation2 + $0x20c] ss:$16 sps:$4 sm:$0xff]   ;;  %v6461_v4 = vcombine.low %v135_v46, %v135_v46 }
  0x88   :  { %1542 = vmatprep.subr.bf16.mxu0 %v7447_v24  ;;  %1706 = vmatprep.subr.bf16.mxu1 %v7449_v25  ;;  %v7509_v5 = vld [vmem:[#allocation2 + $0x200] ss:$16 sps:$4 sm:$0xff]   ;;  %v7512_v6 = vld [vmem:[#allocation2 + $0x208] ss:$16 sps:$4 sm:$0xff]   ;;  %v7517_v7 = vld [vmem:[#allocation2 + $0x224] ss:$16 sps:$4 sm:$0xff]  }
  0x89   :  { %1562 = vmatprep.mubr.bf16.mxu0 %v6462_v48  ;;  %1726 = vmatprep.mubr.bf16.mxu1 %v6462_v48  ;;  %v7520_v8 = vld [vmem:[#allocation2 + $0x22c] ss:$16 sps:$4 sm:$0xff]   ;;  %v7515_v9 = vld [vmem:[#allocation2 + $0x220] ss:$16 sps:$4 sm:$0xff]   ;;  %v7518_v10 = vld [vmem:[#allocation2 + $0x228] ss:$16 sps:$4 sm:$0xff]  }
  0x8a   :  { %v7523_v11 = vld [vmem:[#allocation2 + $0x244] ss:$16 sps:$4 sm:$0xff]   ;;  %v7526_v12 = vld [vmem:[#allocation2 + $0x24c] ss:$16 sps:$4 sm:$0xff]   ;;  %v7521_v13 = vld [vmem:[#allocation2 + $0x240] ss:$16 sps:$4 sm:$0xff]  }
  0x8b   :  { %1543 = vmatpush1.bf16.msra.mxu0 %v7451_v26  ;;  %1707 = vmatpush1.bf16.msra.mxu1 %v7452_v27  ;;  %v7524_v14 = vld [vmem:[#allocation2 + $0x248] ss:$16 sps:$4 sm:$0xff]   ;;  %v7529_v15 = vld [vmem:[#allocation2 + $0x264] ss:$16 sps:$4 sm:$0xff]   ;;  %v7532_v16 = vld [vmem:[#allocation2 + $0x26c] ss:$16 sps:$4 sm:$0xff]  }
  0x8c   :  { %1544 = vmatprep.subr.bf16.mxu0 %v7453_v28  ;;  %1708 = vmatprep.subr.bf16.mxu1 %v7455_v29  ;;  %v7527_v17 = vld [vmem:[#allocation2 + $0x260] ss:$16 sps:$4 sm:$0xff]   ;;  %v7530_v18 = vld [vmem:[#allocation2 + $0x268] ss:$16 sps:$4 sm:$0xff]   ;;  %v7535_v19 = vld [vmem:[#allocation2 + $0x284] ss:$16 sps:$4 sm:$0xff]  }
  0x8d   :  { %v7538_v20 = vld [vmem:[#allocation2 + $0x28c] ss:$16 sps:$4 sm:$0xff]   ;;  %v7533_v21 = vld [vmem:[#allocation2 + $0x280] ss:$16 sps:$4 sm:$0xff]   ;;  %v7536_v22 = vld [vmem:[#allocation2 + $0x288] ss:$16 sps:$4 sm:$0xff]  }
  0x8e   :  { %v7541_v23 = vld [vmem:[#allocation2 + $0x2a4] ss:$16 sps:$4 sm:$0xff]   ;;  %v7544_v24 = vld [vmem:[#allocation2 + $0x2ac] ss:$16 sps:$4 sm:$0xff]   ;;  %v7539_v25 = vld [vmem:[#allocation2 + $0x2a0] ss:$16 sps:$4 sm:$0xff]  }
  0x8f   :  { %1545 = vmatpush1.bf16.msra.mxu0 %v7457_v30  ;;  %1709 = vmatpush1.bf16.msra.mxu1 %v7458_v31  ;;  %v7542_v26 = vld [vmem:[#allocation2 + $0x2a8] ss:$16 sps:$4 sm:$0xff]   ;;  %v7547_v27 = vld [vmem:[#allocation2 + $0x2c4] ss:$16 sps:$4 sm:$0xff]   ;;  %v7550_v28 = vld [vmem:[#allocation2 + $0x2cc] ss:$16 sps:$4 sm:$0xff]  }
  0x90   :  { %1546 = vmatprep.subr.bf16.mxu0 %v7459_v32  ;;  %1710 = vmatprep.subr.bf16.mxu1 %v7461_v33  ;;  %v9058_v29 = vld [vmem:[%s9264_s26 + $0x8] sm:$0xff]  ;;  %v7545_v31 = vld [vmem:[#allocation2 + $0x2c0] ss:$16 sps:$4 sm:$0xff]   ;;  %v7553_v33 = vld [vmem:[#allocation2 + $0x2e4] ss:$16 sps:$4 sm:$0xff]  }
  0x91   :  { %v6464_v30 = vcombine.high %v9058_v29, %v9058_v29  ;;  %v7548_v32 = vld [vmem:[#allocation2 + $0x2c8] ss:$16 sps:$4 sm:$0xff]   ;;  %v7574_v46 = vld [vmem:[#allocation2 + $0x34c] ss:$16 sps:$4 sm:$0xff]  }
  0x92   :  { %v7572_v48 = vld [vmem:[#allocation2 + $0x348] ss:$16 sps:$4 sm:$0xff]  }
  0x93   :  { %1547 = vmatpush1.bf16.msra.mxu0 %v7463_v34  ;;  %1711 = vmatpush1.bf16.msra.mxu1 %v7464_v35  ;;  %v7556_v34 = vld [vmem:[#allocation2 + $0x2ec] ss:$16 sps:$4 sm:$0xff]   ;;  %v7551_v35 = vld [vmem:[#allocation2 + $0x2e0] ss:$16 sps:$4 sm:$0xff]  }
  0x94   :  { %1548 = vmatprep.subr.bf16.mxu0 %v7465_v36  ;;  %1712 = vmatprep.subr.bf16.mxu1 %v7467_v37  ;;  %v7554_v36 = vld [vmem:[#allocation2 + $0x2e8] ss:$16 sps:$4 sm:$0xff]   ;;  %v7559_v37 = vld [vmem:[#allocation2 + $0x304] ss:$16 sps:$4 sm:$0xff]  }
  0x97   :  { %1549 = vmatpush1.bf16.msra.mxu0 %v7469_v38  ;;  %1713 = vmatpush1.bf16.msra.mxu1 %v7470_v39  ;;  %v7562_v38 = vld [vmem:[#allocation2 + $0x30c] ss:$16 sps:$4 sm:$0xff]   ;;  %v7557_v39 = vld [vmem:[#allocation2 + $0x300] ss:$16 sps:$4 sm:$0xff]  }
  0x98   :  { %1550 = vmatprep.subr.bf16.mxu0 %v7471_v40  ;;  %1714 = vmatprep.subr.bf16.mxu1 %v7473_v41  ;;  %v7560_v40 = vld [vmem:[#allocation2 + $0x308] ss:$16 sps:$4 sm:$0xff]   ;;  %v7565_v41 = vld [vmem:[#allocation2 + $0x324] ss:$16 sps:$4 sm:$0xff]  }
  0x9b   :  { %1551 = vmatpush1.bf16.msra.mxu0 %v7475_v42  ;;  %1715 = vmatpush1.bf16.msra.mxu1 %v7476_v43  ;;  %v7568_v42 = vld [vmem:[#allocation2 + $0x32c] ss:$16 sps:$4 sm:$0xff]   ;;  %v7563_v43 = vld [vmem:[#allocation2 + $0x320] ss:$16 sps:$4 sm:$0xff]  }
  0x9c   :  { %1552 = vmatprep.subr.bf16.mxu0 %v7477_v44  ;;  %1716 = vmatprep.subr.bf16.mxu1 %v7479_v45  ;;  %v7566_v44 = vld [vmem:[#allocation2 + $0x328] ss:$16 sps:$4 sm:$0xff]   ;;  %v7571_v45 = vld [vmem:[#allocation2 + $0x344] ss:$16 sps:$4 sm:$0xff]  }
  0x9f   :  { %1553 = vmatpush1.bf16.msra.mxu0 %v7481_v47  ;;  %1717 = vmatpush1.bf16.msra.mxu1 %v7482_v49  ;;  %v7569_v47 = vld [vmem:[#allocation2 + $0x340] ss:$16 sps:$4 sm:$0xff]   ;;  %v7577_v49 = vld [vmem:[#allocation2 + $0x364] ss:$16 sps:$4 sm:$0xff]  }
  0xa0   :  { %1554 = vmatprep.subr.bf16.mxu0 %v7483_v50  ;;  %1718 = vmatprep.subr.bf16.mxu1 %v7485_v51  ;;  %v7580_v50 = vld [vmem:[#allocation2 + $0x36c] ss:$16 sps:$4 sm:$0xff]   ;;  %v7575_v51 = vld [vmem:[#allocation2 + $0x360] ss:$16 sps:$4 sm:$0xff]  }
  0xa3   :  { %1555 = vmatpush1.bf16.msra.mxu0 %v7487_v52  ;;  %1719 = vmatpush1.bf16.msra.mxu1 %v7488_v53  ;;  %v7578_v52 = vld [vmem:[#allocation2 + $0x368] ss:$16 sps:$4 sm:$0xff]   ;;  %v7583_v53 = vld [vmem:[#allocation2 + $0x384] ss:$16 sps:$4 sm:$0xff]  }
  0xa4   :  { %1556 = vmatprep.subr.bf16.mxu0 %v7489_v54  ;;  %1720 = vmatprep.subr.bf16.mxu1 %v7491_v55  ;;  %v7586_v54 = vld [vmem:[#allocation2 + $0x38c] ss:$16 sps:$4 sm:$0xff]   ;;  %v7581_v55 = vld [vmem:[#allocation2 + $0x380] ss:$16 sps:$4 sm:$0xff]  }
  0xa7   :  { %1557 = vmatpush1.bf16.msra.mxu0 %v7493_v56  ;;  %1721 = vmatpush1.bf16.msra.mxu1 %v7494_v57  ;;  %v7584_v56 = vld [vmem:[#allocation2 + $0x388] ss:$16 sps:$4 sm:$0xff]   ;;  %v7589_v57 = vld [vmem:[#allocation2 + $0x3a4] ss:$16 sps:$4 sm:$0xff]  }
  0xa8   :  { %1558 = vmatprep.subr.bf16.mxu0 %v7495_v58  ;;  %1722 = vmatprep.subr.bf16.mxu1 %v7497_v59  ;;  %v7592_v58 = vld [vmem:[#allocation2 + $0x3ac] ss:$16 sps:$4 sm:$0xff]   ;;  %v7587_v59 = vld [vmem:[#allocation2 + $0x3a0] ss:$16 sps:$4 sm:$0xff]  }
  0xab   :  { %1559 = vmatpush1.bf16.msra.mxu0 %v7499_v60  ;;  %1723 = vmatpush1.bf16.msra.mxu1 %v7500_v61  ;;  %v7590_v60 = vld [vmem:[#allocation2 + $0x3a8] ss:$16 sps:$4 sm:$0xff]   ;;  %v7595_v61 = vld [vmem:[#allocation2 + $0x3c4] ss:$16 sps:$4 sm:$0xff]  }
  0xac   :  { %1560 = vmatprep.subr.bf16.mxu0 %v7501_v62  ;;  %1724 = vmatprep.subr.bf16.mxu1 %v7503_v63  ;;  %v7598_v62 = vld [vmem:[#allocation2 + $0x3cc] ss:$16 sps:$4 sm:$0xff]   ;;  %v7593_v63 = vld [vmem:[#allocation2 + $0x3c0] ss:$16 sps:$4 sm:$0xff]  }
  0xaf   :  { %1561 = vmatpush1.bf16.msra.mxu0 %v7505_v0  ;;  %1725 = vmatpush1.bf16.msra.mxu1 %v7506_v1  ;;  %v7596_v0 = vld [vmem:[#allocation2 + $0x3c8] ss:$16 sps:$4 sm:$0xff]   ;;  %v7601_v1 = vld [vmem:[#allocation2 + $0x3e4] ss:$16 sps:$4 sm:$0xff]  }
  0xb0   :  { %1571 = vmatprep.subr.bf16.mxu0 %v7511_v2  ;;  %1735 = vmatprep.subr.bf16.mxu1 %v7514_v3  ;;  %v7604_v2 = vld [vmem:[#allocation2 + $0x3ec] ss:$16 sps:$4 sm:$0xff]   ;;  %v7599_v3 = vld [vmem:[#allocation2 + $0x3e0] ss:$16 sps:$4 sm:$0xff]  }
  0xb2   :  { %1563 = vmatmul.mubr.bf16.vlgmr.msra.gmra.mrb[0].mxu0 %v6461_v4  ;;  %1727 = vmatmul.mubr.bf16.vlgmr.msra.gmra.mrb[0].mxu1 %v6461_v4  ;;  %v7602_v4 = vld [vmem:[#allocation2 + $0x3e8] ss:$16 sps:$4 sm:$0xff]  }
  0xb3   :  { %1572 = vmatpush1.bf16.msra.mxu0 %v7509_v5  ;;  %1736 = vmatpush1.bf16.msra.mxu1 %v7512_v6  ;;  %v7609_v5 = vld [vmem:[#allocation2 + $0x404] ss:$16 sps:$4 sm:$0xff]   ;;  %v7612_v6 = vld [vmem:[#allocation2 + $0x40c] ss:$16 sps:$4 sm:$0xff]  }
  0xb4   :  { %1573 = vmatprep.subr.bf16.mxu0 %v7517_v7  ;;  %1737 = vmatprep.subr.bf16.mxu1 %v7520_v8  ;;  %v6463_v7 = vcombine.low %v9058_v29, %v9058_v29  ;;  %v7607_v8 = vld [vmem:[#allocation2 + $0x400] ss:$16 sps:$4 sm:$0xff]   ;;  %v7642_v29 = vld [vmem:[#allocation2 + $0x4ac] ss:$16 sps:$4 sm:$0xff]  }
  0xb5   :  { %1603 = vmatprep.mubr.bf16.mxu0 %v6464_v30  ;;  %1767 = vmatprep.mubr.bf16.mxu1 %v6464_v30  ;;  %v7637_v30 = vld [vmem:[#allocation2 + $0x4a0] ss:$16 sps:$4 sm:$0xff]  }
  0xb7   :  { %1574 = vmatpush1.bf16.msra.mxu0 %v7515_v9  ;;  %1738 = vmatpush1.bf16.msra.mxu1 %v7518_v10  ;;  %v7610_v9 = vld [vmem:[#allocation2 + $0x408] ss:$16 sps:$4 sm:$0xff]   ;;  %v7615_v10 = vld [vmem:[#allocation2 + $0x424] ss:$16 sps:$4 sm:$0xff]  }
  0xb8   :  { %1575 = vmatprep.subr.bf16.mxu0 %v7523_v11  ;;  %1739 = vmatprep.subr.bf16.mxu1 %v7526_v12  ;;  %v9067_v11 = vld [vmem:[%s9264_s26 + $0x10] sm:$0xff]  ;;  %v7618_v12 = vld [vmem:[#allocation2 + $0x42c] ss:$16 sps:$4 sm:$0xff]  }
  0xbb   :  { %1576 = vmatpush1.bf16.msra.mxu0 %v7521_v13  ;;  %1740 = vmatpush1.bf16.msra.mxu1 %v7524_v14  ;;  %v6466_v13 = vcombine.high %v9067_v11, %v9067_v11  ;;  %v7613_v14 = vld [vmem:[#allocation2 + $0x420] ss:$16 sps:$4 sm:$0xff]  }
  0xbc   :  { %1577 = vmatprep.subr.bf16.mxu0 %v7529_v15  ;;  %1741 = vmatprep.subr.bf16.mxu1 %v7532_v16  ;;  %v7616_v15 = vld [vmem:[#allocation2 + $0x428] ss:$16 sps:$4 sm:$0xff]   ;;  %v7621_v16 = vld [vmem:[#allocation2 + $0x444] ss:$16 sps:$4 sm:$0xff]  }
  0xbf   :  { %1578 = vmatpush1.bf16.msra.mxu0 %v7527_v17  ;;  %1742 = vmatpush1.bf16.msra.mxu1 %v7530_v18  ;;  %v7624_v17 = vld [vmem:[#allocation2 + $0x44c] ss:$16 sps:$4 sm:$0xff]   ;;  %v7619_v18 = vld [vmem:[#allocation2 + $0x440] ss:$16 sps:$4 sm:$0xff]  }
  0xc0   :  { %1579 = vmatprep.subr.bf16.mxu0 %v7535_v19  ;;  %1743 = vmatprep.subr.bf16.mxu1 %v7538_v20  ;;  %v7622_v19 = vld [vmem:[#allocation2 + $0x448] ss:$16 sps:$4 sm:$0xff]   ;;  %v7627_v20 = vld [vmem:[#allocation2 + $0x464] ss:$16 sps:$4 sm:$0xff]  }
  0xc3   :  { %1580 = vmatpush1.bf16.msra.mxu0 %v7533_v21  ;;  %1744 = vmatpush1.bf16.msra.mxu1 %v7536_v22  ;;  %v7630_v21 = vld [vmem:[#allocation2 + $0x46c] ss:$16 sps:$4 sm:$0xff]   ;;  %v7625_v22 = vld [vmem:[#allocation2 + $0x460] ss:$16 sps:$4 sm:$0xff]  }
  0xc4   :  { %1581 = vmatprep.subr.bf16.mxu0 %v7541_v23  ;;  %1745 = vmatprep.subr.bf16.mxu1 %v7544_v24  ;;  %v7628_v23 = vld [vmem:[#allocation2 + $0x468] ss:$16 sps:$4 sm:$0xff]   ;;  %v7633_v24 = vld [vmem:[#allocation2 + $0x484] ss:$16 sps:$4 sm:$0xff]  }
  0xc7   :  { %1582 = vmatpush1.bf16.msra.mxu0 %v7539_v25  ;;  %1746 = vmatpush1.bf16.msra.mxu1 %v7542_v26  ;;  %v7636_v25 = vld [vmem:[#allocation2 + $0x48c] ss:$16 sps:$4 sm:$0xff]   ;;  %v7631_v26 = vld [vmem:[#allocation2 + $0x480] ss:$16 sps:$4 sm:$0xff]  }
  0xc8   :  { %1583 = vmatprep.subr.bf16.mxu0 %v7547_v27  ;;  %1747 = vmatprep.subr.bf16.mxu1 %v7550_v28  ;;  %v7634_v27 = vld [vmem:[#allocation2 + $0x488] ss:$16 sps:$4 sm:$0xff]   ;;  %v7639_v28 = vld [vmem:[#allocation2 + $0x4a4] ss:$16 sps:$4 sm:$0xff]  }
  0xcb   :  { %1584 = vmatpush1.bf16.msra.mxu0 %v7545_v31  ;;  %1748 = vmatpush1.bf16.msra.mxu1 %v7548_v32  ;;  %v7640_v31 = vld [vmem:[#allocation2 + $0x4a8] ss:$16 sps:$4 sm:$0xff]   ;;  %v7645_v32 = vld [vmem:[#allocation2 + $0x4c4] ss:$16 sps:$4 sm:$0xff]  }
  0xcc   :  { %1585 = vmatprep.subr.bf16.mxu0 %v7553_v33  ;;  %1749 = vmatprep.subr.bf16.mxu1 %v7556_v34  ;;  %v7648_v33 = vld [vmem:[#allocation2 + $0x4cc] ss:$16 sps:$4 sm:$0xff]   ;;  %v7643_v34 = vld [vmem:[#allocation2 + $0x4c0] ss:$16 sps:$4 sm:$0xff]  }
  0xcf   :  { %1586 = vmatpush1.bf16.msra.mxu0 %v7551_v35  ;;  %1750 = vmatpush1.bf16.msra.mxu1 %v7554_v36  ;;  %v7646_v35 = vld [vmem:[#allocation2 + $0x4c8] ss:$16 sps:$4 sm:$0xff]   ;;  %v7651_v36 = vld [vmem:[#allocation2 + $0x4e4] ss:$16 sps:$4 sm:$0xff]  }
  0xd0   :  { %1587 = vmatprep.subr.bf16.mxu0 %v7559_v37  ;;  %1751 = vmatprep.subr.bf16.mxu1 %v7562_v38  ;;  %v7654_v37 = vld [vmem:[#allocation2 + $0x4ec] ss:$16 sps:$4 sm:$0xff]   ;;  %v7649_v38 = vld [vmem:[#allocation2 + $0x4e0] ss:$16 sps:$4 sm:$0xff]  }
  0xd3   :  { %1588 = vmatpush1.bf16.msra.mxu0 %v7557_v39  ;;  %1752 = vmatpush1.bf16.msra.mxu1 %v7560_v40  ;;  %v7652_v39 = vld [vmem:[#allocation2 + $0x4e8] ss:$16 sps:$4 sm:$0xff]   ;;  %v7657_v40 = vld [vmem:[#allocation2 + $0x504] ss:$16 sps:$4 sm:$0xff]  }
  0xd4   :  { %1589 = vmatprep.subr.bf16.mxu0 %v7565_v41  ;;  %1753 = vmatprep.subr.bf16.mxu1 %v7568_v42  ;;  %v7660_v41 = vld [vmem:[#allocation2 + $0x50c] ss:$16 sps:$4 sm:$0xff]   ;;  %v7655_v42 = vld [vmem:[#allocation2 + $0x500] ss:$16 sps:$4 sm:$0xff]  }
  0xd7   :  { %1590 = vmatpush1.bf16.msra.mxu0 %v7563_v43  ;;  %1754 = vmatpush1.bf16.msra.mxu1 %v7566_v44  ;;  %v7658_v43 = vld [vmem:[#allocation2 + $0x508] ss:$16 sps:$4 sm:$0xff]   ;;  %v7663_v44 = vld [vmem:[#allocation2 + $0x524] ss:$16 sps:$4 sm:$0xff]  }
  0xd8   :  { %1591 = vmatprep.subr.bf16.mxu0 %v7571_v45  ;;  %1755 = vmatprep.subr.bf16.mxu1 %v7574_v46  ;;  %v7666_v45 = vld [vmem:[#allocation2 + $0x52c] ss:$16 sps:$4 sm:$0xff]   ;;  %v7661_v46 = vld [vmem:[#allocation2 + $0x520] ss:$16 sps:$4 sm:$0xff]  }
  0xdb   :  { %1592 = vmatpush1.bf16.msra.mxu0 %v7569_v47  ;;  %1756 = vmatpush1.bf16.msra.mxu1 %v7572_v48  ;;  %v7664_v47 = vld [vmem:[#allocation2 + $0x528] ss:$16 sps:$4 sm:$0xff]   ;;  %v7669_v48 = vld [vmem:[#allocation2 + $0x544] ss:$16 sps:$4 sm:$0xff]  }
  0xdc   :  { %1593 = vmatprep.subr.bf16.mxu0 %v7577_v49  ;;  %1757 = vmatprep.subr.bf16.mxu1 %v7580_v50  ;;  %v7672_v49 = vld [vmem:[#allocation2 + $0x54c] ss:$16 sps:$4 sm:$0xff]   ;;  %v7667_v50 = vld [vmem:[#allocation2 + $0x540] ss:$16 sps:$4 sm:$0xff]  }
  0xdf   :  { %1594 = vmatpush1.bf16.msra.mxu0 %v7575_v51  ;;  %1758 = vmatpush1.bf16.msra.mxu1 %v7578_v52  ;;  %v7670_v51 = vld [vmem:[#allocation2 + $0x548] ss:$16 sps:$4 sm:$0xff]   ;;  %v7675_v52 = vld [vmem:[#allocation2 + $0x564] ss:$16 sps:$4 sm:$0xff]  }
  0xe0   :  { %1595 = vmatprep.subr.bf16.mxu0 %v7583_v53  ;;  %1759 = vmatprep.subr.bf16.mxu1 %v7586_v54  ;;  %v7678_v53 = vld [vmem:[#allocation2 + $0x56c] ss:$16 sps:$4 sm:$0xff]   ;;  %v7673_v54 = vld [vmem:[#allocation2 + $0x560] ss:$16 sps:$4 sm:$0xff]  }
  0xe3   :  { %1596 = vmatpush1.bf16.msra.mxu0 %v7581_v55  ;;  %1760 = vmatpush1.bf16.msra.mxu1 %v7584_v56  ;;  %v7676_v55 = vld [vmem:[#allocation2 + $0x568] ss:$16 sps:$4 sm:$0xff]   ;;  %v7681_v56 = vld [vmem:[#allocation2 + $0x584] ss:$16 sps:$4 sm:$0xff]  }
  0xe4   :  { %1597 = vmatprep.subr.bf16.mxu0 %v7589_v57  ;;  %1761 = vmatprep.subr.bf16.mxu1 %v7592_v58  ;;  %v7684_v57 = vld [vmem:[#allocation2 + $0x58c] ss:$16 sps:$4 sm:$0xff]   ;;  %v7679_v58 = vld [vmem:[#allocation2 + $0x580] ss:$16 sps:$4 sm:$0xff]  }
  0xe7   :  { %1598 = vmatpush1.bf16.msra.mxu0 %v7587_v59  ;;  %1762 = vmatpush1.bf16.msra.mxu1 %v7590_v60  ;;  %v7682_v59 = vld [vmem:[#allocation2 + $0x588] ss:$16 sps:$4 sm:$0xff]   ;;  %v7687_v60 = vld [vmem:[#allocation2 + $0x5a4] ss:$16 sps:$4 sm:$0xff]  }
  0xe8   :  { %1599 = vmatprep.subr.bf16.mxu0 %v7595_v61  ;;  %1763 = vmatprep.subr.bf16.mxu1 %v7598_v62  ;;  %v7690_v61 = vld [vmem:[#allocation2 + $0x5ac] ss:$16 sps:$4 sm:$0xff]   ;;  %v7685_v62 = vld [vmem:[#allocation2 + $0x5a0] ss:$16 sps:$4 sm:$0xff]  }
  0xeb   :  { %1600 = vmatpush1.bf16.msra.mxu0 %v7593_v63  ;;  %1764 = vmatpush1.bf16.msra.mxu1 %v7596_v0  ;;  %v7688_v63 = vld [vmem:[#allocation2 + $0x5a8] ss:$16 sps:$4 sm:$0xff]   ;;  %v7693_v0 = vld [vmem:[#allocation2 + $0x5c4] ss:$16 sps:$4 sm:$0xff]  }
  0xec   :  { %1601 = vmatprep.subr.bf16.mxu0 %v7601_v1  ;;  %1765 = vmatprep.subr.bf16.mxu1 %v7604_v2  ;;  %v7696_v1 = vld [vmem:[#allocation2 + $0x5cc] ss:$16 sps:$4 sm:$0xff]   ;;  %v7691_v2 = vld [vmem:[#allocation2 + $0x5c0] ss:$16 sps:$4 sm:$0xff]  }
  0xef   :  { %1602 = vmatpush1.bf16.msra.mxu0 %v7599_v3  ;;  %1766 = vmatpush1.bf16.msra.mxu1 %v7602_v4  ;;  %v7694_v3 = vld [vmem:[#allocation2 + $0x5c8] ss:$16 sps:$4 sm:$0xff]   ;;  %v7699_v4 = vld [vmem:[#allocation2 + $0x5e4] ss:$16 sps:$4 sm:$0xff]  }
  0xf0   :  { %1612 = vmatprep.subr.bf16.mxu0 %v7609_v5  ;;  %1776 = vmatprep.subr.bf16.mxu1 %v7612_v6  ;;  %v7702_v5 = vld [vmem:[#allocation2 + $0x5ec] ss:$16 sps:$4 sm:$0xff]   ;;  %v7697_v6 = vld [vmem:[#allocation2 + $0x5e0] ss:$16 sps:$4 sm:$0xff]  }
  0xf2   :  { %1604 = vmatmul.mubr.bf16.vlgmr.msra.gmra.mrb[0].mxu0 %v6463_v7  ;;  %1768 = vmatmul.mubr.bf16.vlgmr.msra.gmra.mrb[0].mxu1 %v6463_v7  ;;  %v7700_v7 = vld [vmem:[#allocation2 + $0x5e8] ss:$16 sps:$4 sm:$0xff]  }
  0xf3   :  { %1613 = vmatpush1.bf16.msra.mxu0 %v7607_v8  ;;  %1777 = vmatpush1.bf16.msra.mxu1 %v7610_v9  ;;  %v7707_v8 = vld [vmem:[#allocation2 + $0x604] ss:$16 sps:$4 sm:$0xff]   ;;  %v7710_v9 = vld [vmem:[#allocation2 + $0x60c] ss:$16 sps:$4 sm:$0xff]  }
  0xf4   :  { %1614 = vmatprep.subr.bf16.mxu0 %v7615_v10  ;;  %1778 = vmatprep.subr.bf16.mxu1 %v7618_v12  ;;  %v7705_v10 = vld [vmem:[#allocation2 + $0x600] ss:$16 sps:$4 sm:$0xff]   ;;  %v7708_v12 = vld [vmem:[#allocation2 + $0x608] ss:$16 sps:$4 sm:$0xff]  }
  0xf5   :  { %1644 = vmatprep.mubr.bf16.mxu0 %v6466_v13  ;;  %1808 = vmatprep.mubr.bf16.mxu1 %v6466_v13  ;;  %v6465_v13 = vcombine.low %v9067_v11, %v9067_v11  ;;  %v7725_v11 = vld [vmem:[#allocation2 + $0x664] ss:$16 sps:$4 sm:$0xff]  }
  0xf7   :  { %1615 = vmatpush1.bf16.msra.mxu0 %v7613_v14  ;;  %1779 = vmatpush1.bf16.msra.mxu1 %v7616_v15  ;;  %v7713_v14 = vld [vmem:[#allocation2 + $0x624] ss:$16 sps:$4 sm:$0xff]   ;;  %v7716_v15 = vld [vmem:[#allocation2 + $0x62c] ss:$16 sps:$4 sm:$0xff]  }
  0xf8   :  { %1616 = vmatprep.subr.bf16.mxu0 %v7621_v16  ;;  %1780 = vmatprep.subr.bf16.mxu1 %v7624_v17  ;;  %v7711_v16 = vld [vmem:[#allocation2 + $0x620] ss:$16 sps:$4 sm:$0xff]   ;;  %v7714_v17 = vld [vmem:[#allocation2 + $0x628] ss:$16 sps:$4 sm:$0xff]  }
  0xfb   :  { %1617 = vmatpush1.bf16.msra.mxu0 %v7619_v18  ;;  %1781 = vmatpush1.bf16.msra.mxu1 %v7622_v19  ;;  %v7719_v18 = vld [vmem:[#allocation2 + $0x644] ss:$16 sps:$4 sm:$0xff]   ;;  %v7722_v19 = vld [vmem:[#allocation2 + $0x64c] ss:$16 sps:$4 sm:$0xff]  }
  0xfc   :  { %1618 = vmatprep.subr.bf16.mxu0 %v7627_v20  ;;  %1782 = vmatprep.subr.bf16.mxu1 %v7630_v21  ;;  %v7717_v20 = vld [vmem:[#allocation2 + $0x640] ss:$16 sps:$4 sm:$0xff]   ;;  %v7720_v21 = vld [vmem:[#allocation2 + $0x648] ss:$16 sps:$4 sm:$0xff]  }
  0xff   :  { %1619 = vmatpush1.bf16.msra.mxu0 %v7625_v22  ;;  %1783 = vmatpush1.bf16.msra.mxu1 %v7628_v23  ;;  %v8858_v22 = vmov 0   ;;  %v7728_v23 = vld [vmem:[#allocation2 + $0x66c] ss:$16 sps:$4 sm:$0xff]  }
 0x100   :  { %1620 = vmatprep.subr.bf16.mxu0 %v7633_v24  ;;  %1784 = vmatprep.subr.bf16.mxu1 %v7636_v25  ;;  %v7723_v24 = vld [vmem:[#allocation2 + $0x660] ss:$16 sps:$4 sm:$0xff]   ;;  %v7726_v25 = vld [vmem:[#allocation2 + $0x668] ss:$16 sps:$4 sm:$0xff]  }
 0x103   :  { %1621 = vmatpush1.bf16.msra.mxu0 %v7631_v26  ;;  %1785 = vmatpush1.bf16.msra.mxu1 %v7634_v27  ;;  %v7731_v26 = vld [vmem:[#allocation2 + $0x684] ss:$16 sps:$4 sm:$0xff]   ;;  %v7734_v27 = vld [vmem:[#allocation2 + $0x68c] ss:$16 sps:$4 sm:$0xff]  }
 0x104   :  { %1622 = vmatprep.subr.bf16.mxu0 %v7639_v28  ;;  %1786 = vmatprep.subr.bf16.mxu1 %v7642_v29  ;;  %v7729_v28 = vld [vmem:[#allocation2 + $0x680] ss:$16 sps:$4 sm:$0xff]   ;;  %v7732_v29 = vld [vmem:[#allocation2 + $0x688] ss:$16 sps:$4 sm:$0xff]  }
 0x107   :  { %1623 = vmatpush1.bf16.msra.mxu0 %v7637_v30  ;;  %1787 = vmatpush1.bf16.msra.mxu1 %v7640_v31  ;;  %v7737_v30 = vld [vmem:[#allocation2 + $0x6a4] ss:$16 sps:$4 sm:$0xff]   ;;  %v7740_v31 = vld [vmem:[#allocation2 + $0x6ac] ss:$16 sps:$4 sm:$0xff]  }
 0x108   :  { %1624 = vmatprep.subr.bf16.mxu0 %v7645_v32  ;;  %1788 = vmatprep.subr.bf16.mxu1 %v7648_v33  ;;  %v7735_v32 = vld [vmem:[#allocation2 + $0x6a0] ss:$16 sps:$4 sm:$0xff]   ;;  %v7738_v33 = vld [vmem:[#allocation2 + $0x6a8] ss:$16 sps:$4 sm:$0xff]  }
 0x10b   :  { %1625 = vmatpush1.bf16.msra.mxu0 %v7643_v34  ;;  %1789 = vmatpush1.bf16.msra.mxu1 %v7646_v35  ;;  %v7743_v34 = vld [vmem:[#allocation2 + $0x6c4] ss:$16 sps:$4 sm:$0xff]   ;;  %v7746_v35 = vld [vmem:[#allocation2 + $0x6cc] ss:$16 sps:$4 sm:$0xff]  }
 0x10c   :  { %1626 = vmatprep.subr.bf16.mxu0 %v7651_v36  ;;  %1790 = vmatprep.subr.bf16.mxu1 %v7654_v37  ;;  %v7741_v36 = vld [vmem:[#allocation2 + $0x6c0] ss:$16 sps:$4 sm:$0xff]   ;;  %v7744_v37 = vld [vmem:[#allocation2 + $0x6c8] ss:$16 sps:$4 sm:$0xff]  }
 0x10f   :  { %1627 = vmatpush1.bf16.msra.mxu0 %v7649_v38  ;;  %1791 = vmatpush1.bf16.msra.mxu1 %v7652_v39  ;;  %v7749_v38 = vld [vmem:[#allocation2 + $0x6e4] ss:$16 sps:$4 sm:$0xff]   ;;  %v7752_v39 = vld [vmem:[#allocation2 + $0x6ec] ss:$16 sps:$4 sm:$0xff]  }
 0x110   :  { %1628 = vmatprep.subr.bf16.mxu0 %v7657_v40  ;;  %1792 = vmatprep.subr.bf16.mxu1 %v7660_v41  ;;  %v7747_v40 = vld [vmem:[#allocation2 + $0x6e0] ss:$16 sps:$4 sm:$0xff]   ;;  %v7750_v41 = vld [vmem:[#allocation2 + $0x6e8] ss:$16 sps:$4 sm:$0xff]  }
 0x113   :  { %1629 = vmatpush1.bf16.msra.mxu0 %v7655_v42  ;;  %1793 = vmatpush1.bf16.msra.mxu1 %v7658_v43  ;;  %v7756_v42 = vld [vmem:[#allocation5 + $0x4] ss:$16 sps:$4 sm:$0xff]   ;;  %v7759_v43 = vld [vmem:[#allocation5 + $0xc] ss:$16 sps:$4 sm:$0xff]  }
 0x114   :  { %1630 = vmatprep.subr.bf16.mxu0 %v7663_v44  ;;  %1794 = vmatprep.subr.bf16.mxu1 %v7666_v45  ;;  %v7753_v44 = vld [vmem:[%s9264_s26 + $0x18] ss:$0 sps:$4 sm:$0xff]   ;;  %v7754_v45 = vld [vmem:[#allocation5] ss:$16 sps:$4 sm:$0xff]  }
 0x117   :  { %1631 = vmatpush1.bf16.msra.mxu0 %v7661_v46  ;;  %1795 = vmatpush1.bf16.msra.mxu1 %v7664_v47  ;;  %v7757_v46 = vld [vmem:[#allocation5 + $0x8] ss:$16 sps:$4 sm:$0xff]   ;;  %v7762_v47 = vld [vmem:[#allocation5 + $0x24] ss:$16 sps:$4 sm:$0xff]  }
 0x118   :  { %1632 = vmatprep.subr.bf16.mxu0 %v7669_v48  ;;  %1796 = vmatprep.subr.bf16.mxu1 %v7672_v49  ;;  %v7765_v48 = vld [vmem:[#allocation5 + $0x2c] ss:$16 sps:$4 sm:$0xff]   ;;  %v7760_v49 = vld [vmem:[#allocation5 + $0x20] ss:$16 sps:$4 sm:$0xff]  }
 0x11b   :  { %1633 = vmatpush1.bf16.msra.mxu0 %v7667_v50  ;;  %1797 = vmatpush1.bf16.msra.mxu1 %v7670_v51  ;;  %v7763_v50 = vld [vmem:[#allocation5 + $0x28] ss:$16 sps:$4 sm:$0xff]   ;;  %v7768_v51 = vld [vmem:[#allocation5 + $0x44] ss:$16 sps:$4 sm:$0xff]  }
 0x11c   :  { %1634 = vmatprep.subr.bf16.mxu0 %v7675_v52  ;;  %1798 = vmatprep.subr.bf16.mxu1 %v7678_v53  ;;  %v7771_v52 = vld [vmem:[#allocation5 + $0x4c] ss:$16 sps:$4 sm:$0xff]   ;;  %v7766_v53 = vld [vmem:[#allocation5 + $0x40] ss:$16 sps:$4 sm:$0xff]  }
 0x11f   :  { %1635 = vmatpush1.bf16.msra.mxu0 %v7673_v54  ;;  %1799 = vmatpush1.bf16.msra.mxu1 %v7676_v55  ;;  %v7769_v54 = vld [vmem:[#allocation5 + $0x48] ss:$16 sps:$4 sm:$0xff]   ;;  %v7774_v55 = vld [vmem:[#allocation5 + $0x64] ss:$16 sps:$4 sm:$0xff]  }
 0x120   :  { %1636 = vmatprep.subr.bf16.mxu0 %v7681_v56  ;;  %1800 = vmatprep.subr.bf16.mxu1 %v7684_v57  ;;  %v7777_v56 = vld [vmem:[#allocation5 + $0x6c] ss:$16 sps:$4 sm:$0xff]   ;;  %v7772_v57 = vld [vmem:[#allocation5 + $0x60] ss:$16 sps:$4 sm:$0xff]  }
 0x123   :  { %1637 = vmatpush1.bf16.msra.mxu0 %v7679_v58  ;;  %1801 = vmatpush1.bf16.msra.mxu1 %v7682_v59  ;;  %v7775_v58 = vld [vmem:[#allocation5 + $0x68] ss:$16 sps:$4 sm:$0xff]   ;;  %v7780_v59 = vld [vmem:[#allocation5 + $0x84] ss:$16 sps:$4 sm:$0xff]  }
 0x124   :  { %1638 = vmatprep.subr.bf16.mxu0 %v7687_v60  ;;  %1802 = vmatprep.subr.bf16.mxu1 %v7690_v61  ;;  %v7783_v60 = vld [vmem:[#allocation5 + $0x8c] ss:$16 sps:$4 sm:$0xff]   ;;  %v7778_v61 = vld [vmem:[#allocation5 + $0x80] ss:$16 sps:$4 sm:$0xff]  }
 0x127   :  { %1639 = vmatpush1.bf16.msra.mxu0 %v7685_v62  ;;  %1803 = vmatpush1.bf16.msra.mxu1 %v7688_v63  ;;  %v7781_v62 = vld [vmem:[#allocation5 + $0x88] ss:$16 sps:$4 sm:$0xff]   ;;  %v7786_v63 = vld [vmem:[#allocation5 + $0xa4] ss:$16 sps:$4 sm:$0xff]  }
 0x128   :  { %1640 = vmatprep.subr.bf16.mxu0 %v7693_v0  ;;  %1804 = vmatprep.subr.bf16.mxu1 %v7696_v1  ;;  %v7789_v0 = vld [vmem:[#allocation5 + $0xac] ss:$16 sps:$4 sm:$0xff]   ;;  %v7784_v1 = vld [vmem:[#allocation5 + $0xa0] ss:$16 sps:$4 sm:$0xff]  }
 0x12b   :  { %1641 = vmatpush1.bf16.msra.mxu0 %v7691_v2  ;;  %1805 = vmatpush1.bf16.msra.mxu1 %v7694_v3  ;;  %v7787_v2 = vld [vmem:[#allocation5 + $0xa8] ss:$16 sps:$4 sm:$0xff]   ;;  %v7792_v3 = vld [vmem:[#allocation5 + $0xc4] ss:$16 sps:$4 sm:$0xff]  }
 0x12c   :  { %1642 = vmatprep.subr.bf16.mxu0 %v7699_v4  ;;  %1806 = vmatprep.subr.bf16.mxu1 %v7702_v5  ;;  %v7795_v4 = vld [vmem:[#allocation5 + $0xcc] ss:$16 sps:$4 sm:$0xff]   ;;  %v7790_v5 = vld [vmem:[#allocation5 + $0xc0] ss:$16 sps:$4 sm:$0xff]  }
 0x12f   :  { %1643 = vmatpush1.bf16.msra.mxu0 %v7697_v6  ;;  %1807 = vmatpush1.bf16.msra.mxu1 %v7700_v7  ;;  %v7793_v6 = vld [vmem:[#allocation5 + $0xc8] ss:$16 sps:$4 sm:$0xff]   ;;  %v7798_v7 = vld [vmem:[#allocation5 + $0xe4] ss:$16 sps:$4 sm:$0xff]  }
 0x130   :  { %1653 = vmatprep.subr.bf16.mxu0 %v7707_v8  ;;  %1817 = vmatprep.subr.bf16.mxu1 %v7710_v9  ;;  %v7801_v8 = vld [vmem:[#allocation5 + $0xec] ss:$16 sps:$4 sm:$0xff]   ;;  %v7796_v9 = vld [vmem:[#allocation5 + $0xe0] ss:$16 sps:$4 sm:$0xff]  }
 0x132   :  { %1645 = vmatmul.mubr.bf16.vlgmr.msra.gmra.mrb[0].mxu0 %v6465_v13  ;;  %1809 = vmatmul.mubr.bf16.vlgmr.msra.gmra.mrb[0].mxu1 %v6465_v13  ;;  %v7807_v13 = vld [vmem:[#allocation5 + $0x10c] ss:$16 sps:$4 sm:$0xff]  }
 0x133   :  { %1654 = vmatpush1.bf16.msra.mxu0 %v7705_v10  ;;  %1818 = vmatpush1.bf16.msra.mxu1 %v7708_v12  ;;  %v7799_v10 = vld [vmem:[#allocation5 + $0xe8] ss:$16 sps:$4 sm:$0xff]   ;;  %v7804_v12 = vld [vmem:[#allocation5 + $0x104] ss:$16 sps:$4 sm:$0xff]  }
 0x134   :  { %1655 = vmatprep.subr.bf16.mxu0 %v7713_v14  ;;  %1819 = vmatprep.subr.bf16.mxu1 %v7716_v15  ;;  %v7802_v14 = vld [vmem:[#allocation5 + $0x100] ss:$16 sps:$4 sm:$0xff]   ;;  %v7805_v15 = vld [vmem:[#allocation5 + $0x108] ss:$16 sps:$4 sm:$0xff]  }
 0x135   :  { %1685 = vmatprep.mubr.bf16.mxu0 %v8858_v22  ;;  %1849 = vmatprep.mubr.bf16.mxu1 %v8858_v22 }
 0x137   :  { %1656 = vmatpush1.bf16.msra.mxu0 %v7711_v16  ;;  %1820 = vmatpush1.bf16.msra.mxu1 %v7714_v17  ;;  %v7810_v16 = vld [vmem:[#allocation5 + $0x124] ss:$16 sps:$4 sm:$0xff]   ;;  %v7813_v17 = vld [vmem:[#allocation5 + $0x12c] ss:$16 sps:$4 sm:$0xff]  }
 0x138   :  { %1657 = vmatprep.subr.bf16.mxu0 %v7719_v18  ;;  %1821 = vmatprep.subr.bf16.mxu1 %v7722_v19  ;;  %v7808_v18 = vld [vmem:[#allocation5 + $0x120] ss:$16 sps:$4 sm:$0xff]   ;;  %v7811_v19 = vld [vmem:[#allocation5 + $0x128] ss:$16 sps:$4 sm:$0xff]  }
 0x13b   :  { %1658 = vmatpush1.bf16.msra.mxu0 %v7717_v20  ;;  %1822 = vmatpush1.bf16.msra.mxu1 %v7720_v21  ;;  %v7816_v20 = vld [vmem:[#allocation5 + $0x144] ss:$16 sps:$4 sm:$0xff]   ;;  %v7819_v21 = vld [vmem:[#allocation5 + $0x14c] ss:$16 sps:$4 sm:$0xff]  }
 0x13c   :  { %1659 = vmatprep.subr.bf16.mxu0 %v7725_v11  ;;  %1823 = vmatprep.subr.bf16.mxu1 %v7728_v23  ;;  %v7814_v11 = vld [vmem:[#allocation5 + $0x140] ss:$16 sps:$4 sm:$0xff]   ;;  %v7817_v23 = vld [vmem:[#allocation5 + $0x148] ss:$16 sps:$4 sm:$0xff]  }
 0x13f   :  { %1660 = vmatpush1.bf16.msra.mxu0 %v7723_v24  ;;  %1824 = vmatpush1.bf16.msra.mxu1 %v7726_v25  ;;  %v7822_v24 = vld [vmem:[#allocation5 + $0x164] ss:$16 sps:$4 sm:$0xff]   ;;  %v7825_v25 = vld [vmem:[#allocation5 + $0x16c] ss:$16 sps:$4 sm:$0xff]  }
 0x140   :  { %1661 = vmatprep.subr.bf16.mxu0 %v7731_v26  ;;  %1825 = vmatprep.subr.bf16.mxu1 %v7734_v27  ;;  %v7820_v26 = vld [vmem:[#allocation5 + $0x160] ss:$16 sps:$4 sm:$0xff]   ;;  %v7823_v27 = vld [vmem:[#allocation5 + $0x168] ss:$16 sps:$4 sm:$0xff]  }
 0x143   :  { %1662 = vmatpush1.bf16.msra.mxu0 %v7729_v28  ;;  %1826 = vmatpush1.bf16.msra.mxu1 %v7732_v29  ;;  %v7828_v28 = vld [vmem:[#allocation5 + $0x184] ss:$16 sps:$4 sm:$0xff]   ;;  %v7831_v29 = vld [vmem:[#allocation5 + $0x18c] ss:$16 sps:$4 sm:$0xff]  }
 0x144   :  { %1663 = vmatprep.subr.bf16.mxu0 %v7737_v30  ;;  %1827 = vmatprep.subr.bf16.mxu1 %v7740_v31  ;;  %v7826_v30 = vld [vmem:[#allocation5 + $0x180] ss:$16 sps:$4 sm:$0xff]   ;;  %v7829_v31 = vld [vmem:[#allocation5 + $0x188] ss:$16 sps:$4 sm:$0xff]  }
 0x147   :  { %1664 = vmatpush1.bf16.msra.mxu0 %v7735_v32  ;;  %1828 = vmatpush1.bf16.msra.mxu1 %v7738_v33  ;;  %v7834_v32 = vld [vmem:[#allocation5 + $0x1a4] ss:$16 sps:$4 sm:$0xff]   ;;  %v7837_v33 = vld [vmem:[#allocation5 + $0x1ac] ss:$16 sps:$4 sm:$0xff]  }
 0x148   :  { %1665 = vmatprep.subr.bf16.mxu0 %v7743_v34  ;;  %1829 = vmatprep.subr.bf16.mxu1 %v7746_v35  ;;  %v7832_v34 = vld [vmem:[#allocation5 + $0x1a0] ss:$16 sps:$4 sm:$0xff]   ;;  %v7835_v35 = vld [vmem:[#allocation5 + $0x1a8] ss:$16 sps:$4 sm:$0xff]  }
 0x14b   :  { %1666 = vmatpush1.bf16.msra.mxu0 %v7741_v36  ;;  %1830 = vmatpush1.bf16.msra.mxu1 %v7744_v37  ;;  %v7840_v36 = vld [vmem:[#allocation5 + $0x1c4] ss:$16 sps:$4 sm:$0xff]   ;;  %v7843_v37 = vld [vmem:[#allocation5 + $0x1cc] ss:$16 sps:$4 sm:$0xff]  }
 0x14c   :  { %1667 = vmatprep.subr.bf16.mxu0 %v7749_v38  ;;  %1831 = vmatprep.subr.bf16.mxu1 %v7752_v39  ;;  %v7838_v38 = vld [vmem:[#allocation5 + $0x1c0] ss:$16 sps:$4 sm:$0xff]   ;;  %v7841_v39 = vld [vmem:[#allocation5 + $0x1c8] ss:$16 sps:$4 sm:$0xff]  }
 0x14f   :  { %1668 = vmatpush1.bf16.msra.mxu0 %v7747_v40  ;;  %1832 = vmatpush1.bf16.msra.mxu1 %v7750_v41  ;;  %v7846_v40 = vld [vmem:[#allocation5 + $0x1e4] ss:$16 sps:$4 sm:$0xff]   ;;  %v7849_v41 = vld [vmem:[#allocation5 + $0x1ec] ss:$16 sps:$4 sm:$0xff]  }
 0x150   :  { %2656 = vmatprep.subr.bf16.mxu0 %v7756_v42  ;;  %2738 = vmatprep.subr.bf16.mxu1 %v7759_v43  ;;  %v7844_v42 = vld [vmem:[#allocation5 + $0x1e0] ss:$16 sps:$4 sm:$0xff]   ;;  %v7847_v43 = vld [vmem:[#allocation5 + $0x1e8] ss:$16 sps:$4 sm:$0xff]  }
 0x152   :  { %1686 = vmatmul.mubr.bf16.vlgmr.msra.gmra.mrb[0].mxu0 %v7753_v44  ;;  %1850 = vmatmul.mubr.bf16.vlgmr.msra.gmra.mrb[0].mxu1 %v7753_v44  ;;  %v7852_v44 = vld [vmem:[#allocation5 + $0x204] ss:$16 sps:$4 sm:$0xff]  }
 0x153   :  { %2657 = vmatpush1.bf16.msra.mxu0 %v7754_v45  ;;  %2739 = vmatpush1.bf16.msra.mxu1 %v7757_v46  ;;  %v7855_v45 = vld [vmem:[#allocation5 + $0x20c] ss:$16 sps:$4 sm:$0xff]   ;;  %v365_v46 = vlaneseq }
 0x154   :  { %2658 = vmatprep.subr.bf16.mxu0 %v7762_v47  ;;  %2740 = vmatprep.subr.bf16.mxu1 %v7765_v48 }
 0x155   :  { %v9078_v47 = vshrl.u32 %v365_v46, 7  ;;  %v7907_v46 = vld [vmem:[#allocation5 + $0x328] ss:$16 sps:$4 sm:$0xff]  }
 0x157   :  { %2659 = vmatpush1.bf16.msra.mxu0 %v7760_v49  ;;  %2741 = vmatpush1.bf16.msra.mxu1 %v7763_v50  ;;  %v9081_v48 = vsub.s32 0, %v9078_v47  ;;  %v9086_v49 = vld [vmem:[%s9248_s3] sm:$0xf]  ;;  %v9089_v50 = vsub.s32 1, %v9078_v47 }
 0x158   :  { %2660 = vmatprep.subr.bf16.mxu0 %v7768_v51  ;;  %2742 = vmatprep.subr.bf16.mxu1 %v7771_v52  ;;  %v9092_v51 = vsub.s32 3, %v9078_v47 }
 0x159   :  { %v368_v52 = vrot.slane %v9086_v49, %v9081_v48 }
 0x15b   :  { %2661 = vmatpush1.bf16.msra.mxu0 %v7766_v53  ;;  %2743 = vmatpush1.bf16.msra.mxu1 %v7769_v54  ;;  %v372_v53 = vrot.slane %v9086_v49, %v9089_v50  ;;  %v380_v54 = vrot.slane %v9086_v49, %v9092_v51 }
 0x15c   :  { %2662 = vmatprep.subr.bf16.mxu0 %v7774_v55  ;;  %2744 = vmatprep.subr.bf16.mxu1 %v7777_v56 }
 0x15f   :  { %2663 = vmatpush1.bf16.msra.mxu0 %v7772_v57  ;;  %2745 = vmatpush1.bf16.msra.mxu1 %v7775_v58 }
 0x160   :  { %2664 = vmatprep.subr.bf16.mxu0 %v7780_v59  ;;  %2746 = vmatprep.subr.bf16.mxu1 %v7783_v60 }
 0x163   :  { %2665 = vmatpush1.bf16.msra.mxu0 %v7778_v61  ;;  %2747 = vmatpush1.bf16.msra.mxu1 %v7781_v62 }
 0x164   :  { %2666 = vmatprep.subr.bf16.mxu0 %v7786_v63  ;;  %2748 = vmatprep.subr.bf16.mxu1 %v7789_v0 }
 0x167   :  { %2667 = vmatpush1.bf16.msra.mxu0 %v7784_v1  ;;  %2749 = vmatpush1.bf16.msra.mxu1 %v7787_v2 }
 0x168   :  { %2668 = vmatprep.subr.bf16.mxu0 %v7792_v3  ;;  %2750 = vmatprep.subr.bf16.mxu1 %v7795_v4 }
 0x16b   :  { %2669 = vmatpush1.bf16.msra.mxu0 %v7790_v5  ;;  %2751 = vmatpush1.bf16.msra.mxu1 %v7793_v6  ;;  %v7850_v6 = vld [vmem:[#allocation5 + $0x200] ss:$16 sps:$4 sm:$0xff]  }
 0x16c   :  { %2670 = vmatprep.subr.bf16.mxu0 %v7798_v7  ;;  %2752 = vmatprep.subr.bf16.mxu1 %v7801_v8  ;;  %v7853_v7 = vld [vmem:[#allocation5 + $0x208] ss:$16 sps:$4 sm:$0xff]  }
 0x16f   :  { %2671 = vmatpush1.bf16.msra.mxu0 %v7796_v9  ;;  %2753 = vmatpush1.bf16.msra.mxu1 %v7799_v10  ;;  %v7858_v9 = vld [vmem:[#allocation5 + $0x224] ss:$16 sps:$4 sm:$0xff]   ;;  %v7861_v10 = vld [vmem:[#allocation5 + $0x22c] ss:$16 sps:$4 sm:$0xff]  }
 0x170   :  { %2672 = vmatprep.subr.bf16.mxu0 %v7804_v12  ;;  %2754 = vmatprep.subr.bf16.mxu1 %v7807_v13  ;;  %v7856_v13 = vld [vmem:[#allocation5 + $0x220] ss:$16 sps:$4 sm:$0xff]  }
 0x173   :  { %2673 = vmatpush1.bf16.msra.mxu0 %v7802_v14  ;;  %2755 = vmatpush1.bf16.msra.mxu1 %v7805_v15  ;;  %v7859_v14 = vld [vmem:[#allocation5 + $0x228] ss:$16 sps:$4 sm:$0xff]   ;;  %v7864_v15 = vld [vmem:[#allocation5 + $0x244] ss:$16 sps:$4 sm:$0xff]  }
 0x174   :  { %2674 = vmatprep.subr.bf16.mxu0 %v7810_v16  ;;  %2756 = vmatprep.subr.bf16.mxu1 %v7813_v17  ;;  %v7867_v16 = vld [vmem:[#allocation5 + $0x24c] ss:$16 sps:$4 sm:$0xff]   ;;  %v7862_v17 = vld [vmem:[#allocation5 + $0x240] ss:$16 sps:$4 sm:$0xff]  }
 0x177   :  { %2675 = vmatpush1.bf16.msra.mxu0 %v7808_v18  ;;  %2757 = vmatpush1.bf16.msra.mxu1 %v7811_v19  ;;  %v7865_v18 = vld [vmem:[#allocation5 + $0x248] ss:$16 sps:$4 sm:$0xff]   ;;  %v7870_v19 = vld [vmem:[#allocation5 + $0x264] ss:$16 sps:$4 sm:$0xff]  }
 0x178   :  { %2676 = vmatprep.subr.bf16.mxu0 %v7816_v20  ;;  %2758 = vmatprep.subr.bf16.mxu1 %v7819_v21  ;;  %v7873_v20 = vld [vmem:[#allocation5 + $0x26c] ss:$16 sps:$4 sm:$0xff]   ;;  %v7868_v21 = vld [vmem:[#allocation5 + $0x260] ss:$16 sps:$4 sm:$0xff]  }
 0x17b   :  { %2677 = vmatpush1.bf16.msra.mxu0 %v7814_v11  ;;  %2759 = vmatpush1.bf16.msra.mxu1 %v7817_v23  ;;  %v7871_v11 = vld [vmem:[#allocation5 + $0x268] ss:$16 sps:$4 sm:$0xff]   ;;  %v7876_v23 = vld [vmem:[#allocation5 + $0x284] ss:$16 sps:$4 sm:$0xff]  }
 0x17c   :  { %2678 = vmatprep.subr.bf16.mxu0 %v7822_v24  ;;  %2760 = vmatprep.subr.bf16.mxu1 %v7825_v25  ;;  %v7879_v24 = vld [vmem:[#allocation5 + $0x28c] ss:$16 sps:$4 sm:$0xff]   ;;  %v7874_v25 = vld [vmem:[#allocation5 + $0x280] ss:$16 sps:$4 sm:$0xff]  }
 0x17f   :  { %2679 = vmatpush1.bf16.msra.mxu0 %v7820_v26  ;;  %2761 = vmatpush1.bf16.msra.mxu1 %v7823_v27  ;;  %v7877_v26 = vld [vmem:[#allocation5 + $0x288] ss:$16 sps:$4 sm:$0xff]   ;;  %v7882_v27 = vld [vmem:[#allocation5 + $0x2a4] ss:$16 sps:$4 sm:$0xff]  }
 0x180   :  { %2680 = vmatprep.subr.bf16.mxu0 %v7828_v28  ;;  %2762 = vmatprep.subr.bf16.mxu1 %v7831_v29  ;;  %v7885_v28 = vld [vmem:[#allocation5 + $0x2ac] ss:$16 sps:$4 sm:$0xff]   ;;  %v7880_v29 = vld [vmem:[#allocation5 + $0x2a0] ss:$16 sps:$4 sm:$0xff]  }
 0x183   :  { %2681 = vmatpush1.bf16.msra.mxu0 %v7826_v30  ;;  %2763 = vmatpush1.bf16.msra.mxu1 %v7829_v31  ;;  %v7883_v30 = vld [vmem:[#allocation5 + $0x2a8] ss:$16 sps:$4 sm:$0xff]   ;;  %v7888_v31 = vld [vmem:[#allocation5 + $0x2c4] ss:$16 sps:$4 sm:$0xff]  }
 0x184   :  { %2682 = vmatprep.subr.bf16.mxu0 %v7834_v32  ;;  %2764 = vmatprep.subr.bf16.mxu1 %v7837_v33  ;;  %v7891_v32 = vld [vmem:[#allocation5 + $0x2cc] ss:$16 sps:$4 sm:$0xff]   ;;  %v7886_v33 = vld [vmem:[#allocation5 + $0x2c0] ss:$16 sps:$4 sm:$0xff]  }
 0x187   :  { %2683 = vmatpush1.bf16.msra.mxu0 %v7832_v34  ;;  %2765 = vmatpush1.bf16.msra.mxu1 %v7835_v35  ;;  %v7889_v34 = vld [vmem:[#allocation5 + $0x2c8] ss:$16 sps:$4 sm:$0xff]   ;;  %v7894_v35 = vld [vmem:[#allocation5 + $0x2e4] ss:$16 sps:$4 sm:$0xff]  }
 0x188   :  { %2684 = vmatprep.subr.bf16.mxu0 %v7840_v36  ;;  %2766 = vmatprep.subr.bf16.mxu1 %v7843_v37  ;;  %v7897_v36 = vld [vmem:[#allocation5 + $0x2ec] ss:$16 sps:$4 sm:$0xff]   ;;  %v7892_v37 = vld [vmem:[#allocation5 + $0x2e0] ss:$16 sps:$4 sm:$0xff]  }
 0x18b   :  { %2685 = vmatpush1.bf16.msra.mxu0 %v7838_v38  ;;  %2767 = vmatpush1.bf16.msra.mxu1 %v7841_v39  ;;  %v7895_v38 = vld [vmem:[#allocation5 + $0x2e8] ss:$16 sps:$4 sm:$0xff]   ;;  %v7900_v39 = vld [vmem:[#allocation5 + $0x304] ss:$16 sps:$4 sm:$0xff]  }
 0x18c   :  { %2686 = vmatprep.subr.bf16.mxu0 %v7846_v40  ;;  %2768 = vmatprep.subr.bf16.mxu1 %v7849_v41  ;;  %v7903_v40 = vld [vmem:[#allocation5 + $0x30c] ss:$16 sps:$4 sm:$0xff]   ;;  %v7898_v41 = vld [vmem:[#allocation5 + $0x300] ss:$16 sps:$4 sm:$0xff]  }
 0x18f   :  { %2687 = vmatpush1.bf16.msra.mxu0 %v7844_v42  ;;  %2769 = vmatpush1.bf16.msra.mxu1 %v7847_v43  ;;  %v7901_v42 = vld [vmem:[#allocation5 + $0x308] ss:$16 sps:$4 sm:$0xff]   ;;  %v7906_v43 = vld [vmem:[#allocation5 + $0x324] ss:$16 sps:$4 sm:$0xff]  }
 0x190   :  { %2697 = vmatprep.subr.bf16.mxu0 %v7852_v44  ;;  %2779 = vmatprep.subr.bf16.mxu1 %v7855_v45  ;;  %v7909_v44 = vld [vmem:[#allocation5 + $0x32c] ss:$16 sps:$4 sm:$0xff]   ;;  %v7904_v45 = vld [vmem:[#allocation5 + $0x320] ss:$16 sps:$4 sm:$0xff]  }
 0x225   :  { %v1687_v55 = vpop.f32.mrb[0].mxu0  ;;  %v9100_v56 = vpop.f32.mrb[0].mxu1 }
 0x226   :  { %v7319_v57 = vadd.f32 %v1687_v55, %v368_v52  ;;  %v1689_v58 = vpop.f32.mrb[1].mxu0  ;;  %v1853_v59 = vpop.f32.mrb[1].mxu1  ;;  %v7912_v52 = vld [vmem:[#allocation5 + $0x344] ss:$16 sps:$4 sm:$0xff]   ;;  %v7913_v55 = vld [vmem:[#allocation5 + $0x348] ss:$16 sps:$4 sm:$0xff]  }
 0x227   :  { %v7320_v60 = vadd.f32 %v1689_v58, %v372_v53  ;;  %v7322_v61 = vadd.f32 %v1853_v59, %v380_v54  ;;  %v1691_v62 = vpop.f32.mrb[2].mxu0  ;;  %v1855_v63 = vpop.f32.mrb[2].mxu1  ;;  %v7915_v53 = vld [vmem:[#allocation5 + $0x34c] ss:$16 sps:$4 sm:$0xff]   ;;  %v7910_v54 = vld [vmem:[#allocation5 + $0x340] ss:$16 sps:$4 sm:$0xff]  }
 0x228   :  { %v1858_v0 = vmax.f32 %v7319_v57, 0.0  ;;  %v1692_v1 = vpop.f32.mrb[3].mxu0  ;;  %v1856_v2 = vpop.f32.mrb[3].mxu1  ;;  %v7918_v57 = vld [vmem:[#allocation5 + $0x364] ss:$16 sps:$4 sm:$0xff]  }
 0x229   :  { %v1859_v3 = vmax.f32 %v7320_v60, 0.0  ;;  %v1861_v4 = vmax.f32 %v7322_v61, 0.0  ;;  %v7921_v58 = vld [vmem:[#allocation5 + $0x36c] ss:$16 sps:$4 sm:$0xff]   ;;  %v7916_v59 = vld [vmem:[#allocation5 + $0x360] ss:$16 sps:$4 sm:$0xff]  }
 0x22a   :  { %v1862_v8 = vpack.c.bf16 %v1858_v0, %v1858_v0  ;;  %v7919_v60 = vld [vmem:[#allocation5 + $0x368] ss:$16 sps:$4 sm:$0xff]   ;;  %v7924_v61 = vld [vmem:[#allocation5 + $0x384] ss:$16 sps:$4 sm:$0xff]   ;;  %v7927_v62 = vld [vmem:[#allocation5 + $0x38c] ss:$16 sps:$4 sm:$0xff]  }
 0x22b   :  { %v1863_v5 = vpack.c.bf16 %v1859_v3, %v1859_v3  ;;  %v1865_v12 = vpack.c.bf16 %v1861_v4, %v1861_v4  ;;  %v7922_v63 = vld [vmem:[#allocation5 + $0x380] ss:$16 sps:$4 sm:$0xff]   ;;  %v7925_v0 = vld [vmem:[#allocation5 + $0x388] ss:$16 sps:$4 sm:$0xff]   ;;  %v9103_v1 = vsub.s32 2, %v9078_v47 }
 0x22c   :  { %v7930_v2 = vld [vmem:[#allocation5 + $0x3a4] ss:$16 sps:$4 sm:$0xff]   ;;  %v7933_v3 = vld [vmem:[#allocation5 + $0x3ac] ss:$16 sps:$4 sm:$0xff]   ;;  %v7928_v4 = vld [vmem:[#allocation5 + $0x3a0] ss:$16 sps:$4 sm:$0xff]  }
 0x22d   :  { %2688 = vmatprep.mubr.bf16.mxu0 %v1863_v5  ;;  %2770 = vmatprep.mubr.bf16.mxu1 %v1863_v5  ;;  %v7931_v5 = vld [vmem:[#allocation5 + $0x3a8] ss:$16 sps:$4 sm:$0xff]  }
 0x22e   :  { %2689 = vmatmul.mubr.bf16.vlgmr.msra.gmra.mrb[4].mxu0 %v1862_v8  ;;  %2771 = vmatmul.mubr.bf16.vlgmr.msra.gmra.mrb[4].mxu1 %v1862_v8  ;;  %v7939_v8 = vld [vmem:[#allocation5 + $0x3cc] ss:$16 sps:$4 sm:$0xff]  }
 0x22f   :  { %2698 = vmatpush1.bf16.msra.mxu0 %v7850_v6  ;;  %2780 = vmatpush1.bf16.msra.mxu1 %v7853_v7  ;;  %v376_v6 = vrot.slane %v9086_v49, %v9103_v1  ;;  %v7936_v7 = vld [vmem:[#allocation5 + $0x3c4] ss:$16 sps:$4 sm:$0xff]  }
 0x230   :  { %2729 = vmatprep.mubr.bf16.mxu0 %v1865_v12  ;;  %2811 = vmatprep.mubr.bf16.mxu1 %v1865_v12  ;;  %v7948_v49 = vld [vmem:[#allocation7 + $0x4] ss:$8 sps:$4 sm:$0xff]  }
 0x231   :  { %2699 = vmatprep.subr.bf16.mxu0 %v7858_v9  ;;  %2781 = vmatprep.subr.bf16.mxu1 %v7861_v10  ;;  %v7934_v9 = vld [vmem:[#allocation5 + $0x3c0] ss:$16 sps:$4 sm:$0xff]   ;;  %v7937_v10 = vld [vmem:[#allocation5 + $0x3c8] ss:$16 sps:$4 sm:$0xff]   ;;  %v7321_v12 = vadd.f32 %v9100_v56, %v376_v6 }
 0x232   :  { %v7949_v56 = vld [vmem:[#allocation7 + $0x10] ss:$8 sps:$4 sm:$0xff]  }
 0x233   :  { %2700 = vmatpush1.bf16.msra.mxu0 %v7856_v13  ;;  %2782 = vmatpush1.bf16.msra.mxu1 %v7859_v14  ;;  %v7942_v13 = vld [vmem:[#allocation5 + $0x3e4] ss:$16 sps:$4 sm:$0xff]   ;;  %v7945_v14 = vld [vmem:[#allocation5 + $0x3ec] ss:$16 sps:$4 sm:$0xff]  }
 0x234   :  { %2701 = vmatprep.subr.bf16.mxu0 %v7864_v15  ;;  %2783 = vmatprep.subr.bf16.mxu1 %v7867_v16  ;;  %v7940_v15 = vld [vmem:[#allocation5 + $0x3e0] ss:$16 sps:$4 sm:$0xff]   ;;  %v7943_v16 = vld [vmem:[#allocation5 + $0x3e8] ss:$16 sps:$4 sm:$0xff]  }
 0x237   :  { %2702 = vmatpush1.bf16.msra.mxu0 %v7862_v17  ;;  %2784 = vmatpush1.bf16.msra.mxu1 %v7865_v18  ;;  %v1860_v17 = vmax.f32 %v7321_v12, 0.0  ;;  %v7946_v18 = vld [vmem:[#allocation7] ss:$8 sps:$4 sm:$0xff]  }
 0x238   :  { %2703 = vmatprep.subr.bf16.mxu0 %v7870_v19  ;;  %2785 = vmatprep.subr.bf16.mxu1 %v7873_v20  ;;  %v7951_v20 = vld [vmem:[#allocation7 + $0x14] ss:$8 sps:$4 sm:$0xff]  }
 0x239   :  { %v1864_v19 = vpack.c.bf16 %v1860_v17, %v1860_v17  ;;  %v7997_v17 = vld [vmem:[#allocation7 + $0x110] ss:$8 sps:$4 sm:$0xff]  }
 0x23b   :  { %2704 = vmatpush1.bf16.msra.mxu0 %v7868_v21  ;;  %2786 = vmatpush1.bf16.msra.mxu1 %v7871_v11  ;;  %v7954_v21 = vld [vmem:[#allocation7 + $0x24] ss:$8 sps:$4 sm:$0xff]   ;;  %v7952_v11 = vld [vmem:[#allocation7 + $0x20] ss:$8 sps:$4 sm:$0xff]  }
 0x23c   :  { %2705 = vmatprep.subr.bf16.mxu0 %v7876_v23  ;;  %2787 = vmatprep.subr.bf16.mxu1 %v7879_v24  ;;  %v7957_v23 = vld [vmem:[#allocation7 + $0x34] ss:$8 sps:$4 sm:$0xff]   ;;  %v7955_v24 = vld [vmem:[#allocation7 + $0x30] ss:$8 sps:$4 sm:$0xff]  }
 0x23f   :  { %2706 = vmatpush1.bf16.msra.mxu0 %v7874_v25  ;;  %2788 = vmatpush1.bf16.msra.mxu1 %v7877_v26  ;;  %v7960_v25 = vld [vmem:[#allocation7 + $0x44] ss:$8 sps:$4 sm:$0xff]   ;;  %v7958_v26 = vld [vmem:[#allocation7 + $0x40] ss:$8 sps:$4 sm:$0xff]  }
 0x240   :  { %2707 = vmatprep.subr.bf16.mxu0 %v7882_v27  ;;  %2789 = vmatprep.subr.bf16.mxu1 %v7885_v28  ;;  %v7963_v27 = vld [vmem:[#allocation7 + $0x54] ss:$8 sps:$4 sm:$0xff]   ;;  %v7961_v28 = vld [vmem:[#allocation7 + $0x50] ss:$8 sps:$4 sm:$0xff]  }
 0x243   :  { %2708 = vmatpush1.bf16.msra.mxu0 %v7880_v29  ;;  %2790 = vmatpush1.bf16.msra.mxu1 %v7883_v30  ;;  %v7966_v29 = vld [vmem:[#allocation7 + $0x64] ss:$8 sps:$4 sm:$0xff]   ;;  %v7964_v30 = vld [vmem:[#allocation7 + $0x60] ss:$8 sps:$4 sm:$0xff]  }
 0x244   :  { %2709 = vmatprep.subr.bf16.mxu0 %v7888_v31  ;;  %2791 = vmatprep.subr.bf16.mxu1 %v7891_v32  ;;  %v7969_v31 = vld [vmem:[#allocation7 + $0x74] ss:$8 sps:$4 sm:$0xff]   ;;  %v7967_v32 = vld [vmem:[#allocation7 + $0x70] ss:$8 sps:$4 sm:$0xff]  }
 0x247   :  { %2710 = vmatpush1.bf16.msra.mxu0 %v7886_v33  ;;  %2792 = vmatpush1.bf16.msra.mxu1 %v7889_v34  ;;  %v7972_v33 = vld [vmem:[#allocation7 + $0x84] ss:$8 sps:$4 sm:$0xff]   ;;  %v7970_v34 = vld [vmem:[#allocation7 + $0x80] ss:$8 sps:$4 sm:$0xff]  }
 0x248   :  { %2711 = vmatprep.subr.bf16.mxu0 %v7894_v35  ;;  %2793 = vmatprep.subr.bf16.mxu1 %v7897_v36  ;;  %v7975_v35 = vld [vmem:[#allocation7 + $0x94] ss:$8 sps:$4 sm:$0xff]   ;;  %v7973_v36 = vld [vmem:[#allocation7 + $0x90] ss:$8 sps:$4 sm:$0xff]  }
 0x24b   :  { %2712 = vmatpush1.bf16.msra.mxu0 %v7892_v37  ;;  %2794 = vmatpush1.bf16.msra.mxu1 %v7895_v38  ;;  %v7978_v37 = vld [vmem:[#allocation7 + $0xa4] ss:$8 sps:$4 sm:$0xff]   ;;  %v7976_v38 = vld [vmem:[#allocation7 + $0xa0] ss:$8 sps:$4 sm:$0xff]  }
 0x24c   :  { %2713 = vmatprep.subr.bf16.mxu0 %v7900_v39  ;;  %2795 = vmatprep.subr.bf16.mxu1 %v7903_v40  ;;  %v7981_v39 = vld [vmem:[#allocation7 + $0xb4] ss:$8 sps:$4 sm:$0xff]   ;;  %v7979_v40 = vld [vmem:[#allocation7 + $0xb0] ss:$8 sps:$4 sm:$0xff]  }
 0x24f   :  { %2714 = vmatpush1.bf16.msra.mxu0 %v7898_v41  ;;  %2796 = vmatpush1.bf16.msra.mxu1 %v7901_v42  ;;  %v7984_v41 = vld [vmem:[#allocation7 + $0xc4] ss:$8 sps:$4 sm:$0xff]   ;;  %v7982_v42 = vld [vmem:[#allocation7 + $0xc0] ss:$8 sps:$4 sm:$0xff]  }
 0x250   :  { %2715 = vmatprep.subr.bf16.mxu0 %v7906_v43  ;;  %2797 = vmatprep.subr.bf16.mxu1 %v7909_v44  ;;  %v7987_v43 = vld [vmem:[#allocation7 + $0xd4] ss:$8 sps:$4 sm:$0xff]   ;;  %v7985_v44 = vld [vmem:[#allocation7 + $0xd0] ss:$8 sps:$4 sm:$0xff]  }
 0x253   :  { %2716 = vmatpush1.bf16.msra.mxu0 %v7904_v45  ;;  %2798 = vmatpush1.bf16.msra.mxu1 %v7907_v46  ;;  %v7990_v45 = vld [vmem:[#allocation7 + $0xe4] ss:$8 sps:$4 sm:$0xff]   ;;  %v7988_v46 = vld [vmem:[#allocation7 + $0xe0] ss:$8 sps:$4 sm:$0xff]  }
 0x254   :  { %2717 = vmatprep.subr.bf16.mxu0 %v7912_v52  ;;  %2799 = vmatprep.subr.bf16.mxu1 %v7915_v53  ;;  %v7993_v52 = vld [vmem:[#allocation7 + $0xf4] ss:$8 sps:$4 sm:$0xff]   ;;  %v7991_v53 = vld [vmem:[#allocation7 + $0xf0] ss:$8 sps:$4 sm:$0xff]  }
 0x257   :  { %2718 = vmatpush1.bf16.msra.mxu0 %v7910_v54  ;;  %2800 = vmatpush1.bf16.msra.mxu1 %v7913_v55  ;;  %v7996_v54 = vld [vmem:[#allocation7 + $0x104] ss:$8 sps:$4 sm:$0xff]   ;;  %v9112_v55 = vld [vmem:[%s9250_s5] sm:$0xf] }
 0x258   :  { %2719 = vmatprep.subr.bf16.mxu0 %v7918_v57  ;;  %2801 = vmatprep.subr.bf16.mxu1 %v7921_v58  ;;  %v1999_v57 = vrot.slane %v9112_v55, %v9081_v48  ;;  %v2003_v58 = vrot.slane %v9112_v55, %v9089_v50 }
 0x25b   :  { %2720 = vmatpush1.bf16.msra.mxu0 %v7916_v59  ;;  %2802 = vmatpush1.bf16.msra.mxu1 %v7919_v60  ;;  %v2011_v59 = vrot.slane %v9112_v55, %v9092_v51 }
 0x25c   :  { %2721 = vmatprep.subr.bf16.mxu0 %v7924_v61  ;;  %2803 = vmatprep.subr.bf16.mxu1 %v7927_v62 }
 0x25f   :  { %2722 = vmatpush1.bf16.msra.mxu0 %v7922_v63  ;;  %2804 = vmatpush1.bf16.msra.mxu1 %v7925_v0 }
 0x260   :  { %2723 = vmatprep.subr.bf16.mxu0 %v7930_v2  ;;  %2805 = vmatprep.subr.bf16.mxu1 %v7933_v3 }
 0x263   :  { %2724 = vmatpush1.bf16.msra.mxu0 %v7928_v4  ;;  %2806 = vmatpush1.bf16.msra.mxu1 %v7931_v5 }
 0x264   :  { %2725 = vmatprep.subr.bf16.mxu0 %v7936_v7  ;;  %2807 = vmatprep.subr.bf16.mxu1 %v7939_v8 }
 0x267   :  { %2726 = vmatpush1.bf16.msra.mxu0 %v7934_v9  ;;  %2808 = vmatpush1.bf16.msra.mxu1 %v7937_v10 }
 0x268   :  { %2727 = vmatprep.subr.bf16.mxu0 %v7942_v13  ;;  %2809 = vmatprep.subr.bf16.mxu1 %v7945_v14  ;;  %v7994_v13 = vld [vmem:[#allocation7 + $0x100] ss:$8 sps:$4 sm:$0xff]  }
 0x26b   :  { %2728 = vmatpush1.bf16.msra.mxu0 %v7940_v15  ;;  %2810 = vmatpush1.bf16.msra.mxu1 %v7943_v16  ;;  %v7999_v15 = vld [vmem:[#allocation7 + $0x114] ss:$8 sps:$4 sm:$0xff]  }
 0x26c   :  { %3224 = vmatprep.subr.bf16.mxu0 %v7948_v49  ;;  %v8002_v49 = vld [vmem:[#allocation7 + $0x124] ss:$8 sps:$4 sm:$0xff]  }
 0x26e   :  { %2730 = vmatmul.mubr.bf16.vlgmr.msra.gmra.mrb[4].mxu0 %v1864_v19  ;;  %2812 = vmatmul.mubr.bf16.vlgmr.msra.gmra.mrb[4].mxu1 %v1864_v19  ;;  %v8005_v19 = vld [vmem:[#allocation7 + $0x134] ss:$8 sps:$4 sm:$0xff]  }
 0x26f   :  { %3225 = vmatpush1.bf16.msra.mxu0 %v7946_v18  ;;  %3574 = vmatprep.mubr.bf16.mxu1 %v8858_v22  ;;  %v8000_v18 = vld [vmem:[#allocation7 + $0x120] ss:$8 sps:$4 sm:$0xff]  }
 0x270   :  { %3226 = vmatprep.subr.bf16.mxu0 %v7951_v20  ;;  %v8003_v20 = vld [vmem:[#allocation7 + $0x130] ss:$8 sps:$4 sm:$0xff]  }
 0x273   :  { %3227 = vmatpush1.bf16.msra.mxu0 %v7949_v56  ;;  %v8008_v56 = vld [vmem:[#allocation7 + $0x144] ss:$8 sps:$4 sm:$0xff]  }
 0x274   :  { %3228 = vmatprep.subr.bf16.mxu0 %v7954_v21  ;;  %v8006_v21 = vld [vmem:[#allocation7 + $0x140] ss:$8 sps:$4 sm:$0xff]  }
 0x277   :  { %3229 = vmatpush1.bf16.msra.mxu0 %v7952_v11  ;;  %v8011_v11 = vld [vmem:[#allocation7 + $0x154] ss:$8 sps:$4 sm:$0xff]  }
 0x278   :  { %3230 = vmatprep.subr.bf16.mxu0 %v7957_v23  ;;  %v8009_v23 = vld [vmem:[#allocation7 + $0x150] ss:$8 sps:$4 sm:$0xff]  }
 0x27b   :  { %3231 = vmatpush1.bf16.msra.mxu0 %v7955_v24  ;;  %v8014_v24 = vld [vmem:[#allocation7 + $0x164] ss:$8 sps:$4 sm:$0xff]  }
 0x27c   :  { %3232 = vmatprep.subr.bf16.mxu0 %v7960_v25  ;;  %v8012_v25 = vld [vmem:[#allocation7 + $0x160] ss:$8 sps:$4 sm:$0xff]  }
 0x27f   :  { %3233 = vmatpush1.bf16.msra.mxu0 %v7958_v26  ;;  %v8017_v26 = vld [vmem:[#allocation7 + $0x174] ss:$8 sps:$4 sm:$0xff]  }
 0x280   :  { %3234 = vmatprep.subr.bf16.mxu0 %v7963_v27  ;;  %v8015_v27 = vld [vmem:[#allocation7 + $0x170] ss:$8 sps:$4 sm:$0xff]  }
 0x283   :  { %3235 = vmatpush1.bf16.msra.mxu0 %v7961_v28  ;;  %v8020_v28 = vld [vmem:[#allocation7 + $0x184] ss:$8 sps:$4 sm:$0xff]  }
 0x284   :  { %3236 = vmatprep.subr.bf16.mxu0 %v7966_v29  ;;  %v8018_v29 = vld [vmem:[#allocation7 + $0x180] ss:$8 sps:$4 sm:$0xff]  }
 0x287   :  { %3237 = vmatpush1.bf16.msra.mxu0 %v7964_v30  ;;  %v8023_v30 = vld [vmem:[#allocation7 + $0x194] ss:$8 sps:$4 sm:$0xff]  }
 0x288   :  { %3238 = vmatprep.subr.bf16.mxu0 %v7969_v31  ;;  %v8021_v31 = vld [vmem:[#allocation7 + $0x190] ss:$8 sps:$4 sm:$0xff]  }
 0x28b   :  { %3239 = vmatpush1.bf16.msra.mxu0 %v7967_v32  ;;  %v8026_v32 = vld [vmem:[#allocation7 + $0x1a4] ss:$8 sps:$4 sm:$0xff]  }
 0x28c   :  { %3240 = vmatprep.subr.bf16.mxu0 %v7972_v33  ;;  %v8024_v33 = vld [vmem:[#allocation7 + $0x1a0] ss:$8 sps:$4 sm:$0xff]  }
 0x28f   :  { %3241 = vmatpush1.bf16.msra.mxu0 %v7970_v34  ;;  %v8029_v34 = vld [vmem:[#allocation7 + $0x1b4] ss:$8 sps:$4 sm:$0xff]  }
 0x290   :  { %3242 = vmatprep.subr.bf16.mxu0 %v7975_v35  ;;  %v8027_v35 = vld [vmem:[#allocation7 + $0x1b0] ss:$8 sps:$4 sm:$0xff]  }
 0x293   :  { %3243 = vmatpush1.bf16.msra.mxu0 %v7973_v36  ;;  %v8032_v36 = vld [vmem:[#allocation7 + $0x1c4] ss:$8 sps:$4 sm:$0xff]  }
 0x294   :  { %3244 = vmatprep.subr.bf16.mxu0 %v7978_v37  ;;  %v8030_v37 = vld [vmem:[#allocation7 + $0x1c0] ss:$8 sps:$4 sm:$0xff]  }
 0x297   :  { %3245 = vmatpush1.bf16.msra.mxu0 %v7976_v38  ;;  %v8035_v38 = vld [vmem:[#allocation7 + $0x1d4] ss:$8 sps:$4 sm:$0xff]  }
 0x298   :  { %3246 = vmatprep.subr.bf16.mxu0 %v7981_v39  ;;  %v8033_v39 = vld [vmem:[#allocation7 + $0x1d0] ss:$8 sps:$4 sm:$0xff]  }
 0x29b   :  { %3247 = vmatpush1.bf16.msra.mxu0 %v7979_v40  ;;  %v2007_v40 = vrot.slane %v9112_v55, %v9103_v1  ;;  %v8047_v55 = vld [vmem:[#allocation8 + $0x24] ss:$16 sps:$4 sm:$0xff]  }
 0x29c   :  { %3248 = vmatprep.subr.bf16.mxu0 %v7984_v41  ;;  %v8038_v41 = vld [vmem:[#allocation7 + $0x1e4] ss:$8 sps:$4 sm:$0xff]  }
 0x29f   :  { %3249 = vmatpush1.bf16.msra.mxu0 %v7982_v42  ;;  %v8036_v42 = vld [vmem:[#allocation7 + $0x1e0] ss:$8 sps:$4 sm:$0xff]  }
 0x2a0   :  { %3250 = vmatprep.subr.bf16.mxu0 %v7987_v43 }
 0x2a3   :  { %3251 = vmatpush1.bf16.msra.mxu0 %v7985_v44  ;;  %v8041_v44 = vld [vmem:[#allocation7 + $0x1f4] ss:$8 sps:$4 sm:$0xff]  }
 0x2a4   :  { %3252 = vmatprep.subr.bf16.mxu0 %v7990_v45  ;;  %v8039_v45 = vld [vmem:[#allocation7 + $0x1f0] ss:$8 sps:$4 sm:$0xff]  }
 0x2a7   :  { %3253 = vmatpush1.bf16.msra.mxu0 %v7988_v46 }
 0x2a8   :  { %3254 = vmatprep.subr.bf16.mxu0 %v7993_v52 }
 0x2ab   :  { %3255 = vmatpush1.bf16.msra.mxu0 %v7991_v53  ;;  %v8044_v53 = vld [vmem:[#allocation8 + $0x4] ss:$16 sps:$4 sm:$0xff]  }
 0x2ac   :  { %3265 = vmatprep.subr.bf16.mxu0 %v7996_v54  ;;  %v8042_v54 = vld [vmem:[#allocation8] ss:$16 sps:$4 sm:$0xff]   ;;  %3542 = vmatprep.subr.bf16.mxu1 %v8044_v53 }
 0x2ad   :  { %3543 = vmatpush1.bf16.msra.mxu1 %v8042_v54 }
 0x2ae   :  { %3544 = vmatprep.subr.bf16.mxu1 %v8047_v55 }
 0x341   :  { %v2731_v60 = vpop.f32.mrb[4].mxu0  ;;  %v9120_v61 = vpop.f32.mrb[4].mxu1 }
 0x342   :  { %v7323_v62 = vadd.f32 %v2731_v60, %v1999_v57  ;;  %v2733_v63 = vpop.f32.mrb[5].mxu0  ;;  %v2815_v0 = vpop.f32.mrb[5].mxu1  ;;  %v7325_v43 = vadd.f32 %v9120_v61, %v2007_v40  ;;  %v8045_v57 = vld [vmem:[#allocation8 + $0x20] ss:$16 sps:$4 sm:$0xff]   ;;  %v8053_v60 = vld [vmem:[#allocation8 + $0x64] ss:$16 sps:$4 sm:$0xff]  }
 0x343   :  { %v7324_v2 = vadd.f32 %v2733_v63, %v2003_v58  ;;  %v7326_v3 = vadd.f32 %v2815_v0, %v2011_v59  ;;  %v2735_v4 = vpop.f32.mrb[6].mxu0  ;;  %v2817_v5 = vpop.f32.mrb[6].mxu1  ;;  %3545 = vmatpush1.bf16.msra.mxu1 %v8045_v57  ;;  %v8050_v58 = vld [vmem:[#allocation8 + $0x44] ss:$16 sps:$4 sm:$0xff]   ;;  %v8048_v59 = vld [vmem:[#allocation8 + $0x40] ss:$16 sps:$4 sm:$0xff]  }
 0x344   :  { %v2820_v6 = vmax.f32 %v7323_v62, 0.0  ;;  %v2736_v7 = vpop.f32.mrb[7].mxu0  ;;  %v2818_v8 = vpop.f32.mrb[7].mxu1  ;;  %v2822_v46 = vmax.f32 %v7325_v43, 0.0  ;;  %3546 = vmatprep.subr.bf16.mxu1 %v8050_v58  ;;  %v8051_v61 = vld [vmem:[#allocation8 + $0x60] ss:$16 sps:$4 sm:$0xff]  }
 0x345   :  { %v2821_v9 = vmax.f32 %v7324_v2, 0.0  ;;  %v2823_v10 = vmax.f32 %v7326_v3, 0.0  ;;  %v8056_v62 = vld [vmem:[#allocation8 + $0x84] ss:$16 sps:$4 sm:$0xff]   ;;  %v8054_v63 = vld [vmem:[#allocation8 + $0x80] ss:$16 sps:$4 sm:$0xff]  }
 0x346   :  { %v2824_v14 = vpack.c.bf16 %v2820_v6, %v2820_v6  ;;  %v2826_v52 = vpack.c.bf16 %v2822_v46, %v2822_v46  ;;  %v8059_v0 = vld [vmem:[#allocation8 + $0xa4] ss:$16 sps:$4 sm:$0xff]   ;;  %v8057_v2 = vld [vmem:[#allocation8 + $0xa0] ss:$16 sps:$4 sm:$0xff]   ;;  %v8068_v7 = vld [vmem:[#allocation8 + $0xc] ss:$16 sps:$4 sm:$0xff]  }
 0x347   :  { %v2825_v12 = vpack.c.bf16 %v2821_v9, %v2821_v9  ;;  %v2827_v16 = vpack.c.bf16 %v2823_v10, %v2823_v10  ;;  %3547 = vmatpush1.bf16.msra.mxu1 %v8048_v59  ;;  %v8062_v3 = vld [vmem:[#allocation8 + $0xc4] ss:$16 sps:$4 sm:$0xff]   ;;  %v8060_v4 = vld [vmem:[#allocation8 + $0xc0] ss:$16 sps:$4 sm:$0xff]   ;;  %v8093_v8 = vld [vmem:[#allocation10 + $0x8] ss:$16 sps:$4 sm:$0xff]  }
 0x348   :  { %3548 = vmatprep.subr.bf16.mxu1 %v8053_v60  ;;  %v8065_v5 = vld [vmem:[#allocation8 + $0xe4] ss:$16 sps:$4 sm:$0xff]   ;;  %v8063_v6 = vld [vmem:[#allocation8 + $0xe0] ss:$16 sps:$4 sm:$0xff]   ;;  %v8095_v9 = vld [vmem:[#allocation10 + $0xc] ss:$16 sps:$4 sm:$0xff]  }
 0x349   :  { %3256 = vmatprep.mubr.bf16.mxu0 %v2825_v12  ;;  %v8101_v10 = vld [vmem:[#allocation10 + $0x2c] ss:$16 sps:$4 sm:$0xff]   ;;  %v8099_v12 = vld [vmem:[#allocation10 + $0x28] ss:$16 sps:$4 sm:$0xff]  }
 0x34a   :  { %3257 = vmatmul.mubr.bf16.vlgmr.msra.gmra.mrb[8].mxu0 %v2824_v14  ;;  %v8105_v14 = vld [vmem:[#allocation10 + $0x48] ss:$16 sps:$4 sm:$0xff]   ;;  %v8161_v40 = vld [vmem:[#allocation10 + $0x16c] ss:$16 sps:$4 sm:$0xff]  }
 0x34b   :  { %3266 = vmatpush1.bf16.msra.mxu0 %v7994_v13  ;;  %3297 = vmatprep.mubr.bf16.mxu0 %v2827_v16  ;;  %v8107_v13 = vld [vmem:[#allocation10 + $0x4c] ss:$16 sps:$4 sm:$0xff]   ;;  %v8111_v16 = vld [vmem:[#allocation10 + $0x68] ss:$16 sps:$4 sm:$0xff]  }
 0x34c   :  { %3267 = vmatprep.subr.bf16.mxu0 %v7999_v15  ;;  %3549 = vmatpush1.bf16.msra.mxu1 %v8051_v61  ;;  %v8113_v15 = vld [vmem:[#allocation10 + $0x6c] ss:$16 sps:$4 sm:$0xff]   ;;  %v8171_v46 = vld [vmem:[#allocation10 + $0x1a8] ss:$16 sps:$4 sm:$0xff]  }
 0x34d   :  { %3550 = vmatprep.subr.bf16.mxu1 %v8056_v62  ;;  %v8167_v43 = vld [vmem:[#allocation10 + $0x18c] ss:$16 sps:$4 sm:$0xff]  }
 0x34f   :  { %3268 = vmatpush1.bf16.msra.mxu0 %v7997_v17  ;;  %v8119_v17 = vld [vmem:[#allocation10 + $0x8c] ss:$16 sps:$4 sm:$0xff]  }
 0x350   :  { %3269 = vmatprep.subr.bf16.mxu0 %v8002_v49  ;;  %3551 = vmatpush1.bf16.msra.mxu1 %v8054_v63  ;;  %v8117_v49 = vld [vmem:[#allocation10 + $0x88] ss:$16 sps:$4 sm:$0xff]  }
 0x351   :  { %3552 = vmatprep.subr.bf16.mxu1 %v8059_v0 }
 0x353   :  { %3270 = vmatpush1.bf16.msra.mxu0 %v8000_v18  ;;  %v8125_v18 = vld [vmem:[#allocation10 + $0xac] ss:$16 sps:$4 sm:$0xff]  }
 0x354   :  { %3271 = vmatprep.subr.bf16.mxu0 %v8005_v19  ;;  %3553 = vmatpush1.bf16.msra.mxu1 %v8057_v2  ;;  %v8123_v19 = vld [vmem:[#allocation10 + $0xa8] ss:$16 sps:$4 sm:$0xff]  }
 0x355   :  { %3554 = vmatprep.subr.bf16.mxu1 %v8062_v3  ;;  %v3321_v3 = vld [vmem:[%s9246_s1] sm:$0xff] }
 0x357   :  { %3272 = vmatpush1.bf16.msra.mxu0 %v8003_v20  ;;  %v8131_v20 = vld [vmem:[#allocation10 + $0xcc] ss:$16 sps:$4 sm:$0xff]  }
 0x358   :  { %3273 = vmatprep.subr.bf16.mxu0 %v8008_v56  ;;  %3555 = vmatpush1.bf16.msra.mxu1 %v8060_v4  ;;  %v8129_v56 = vld [vmem:[#allocation10 + $0xc8] ss:$16 sps:$4 sm:$0xff]  }
 0x359   :  { %3556 = vmatprep.subr.bf16.mxu1 %v8065_v5 }
 0x35b   :  { %3274 = vmatpush1.bf16.msra.mxu0 %v8006_v21  ;;  %v8137_v21 = vld [vmem:[#allocation10 + $0xec] ss:$16 sps:$4 sm:$0xff]  }
 0x35c   :  { %3275 = vmatprep.subr.bf16.mxu0 %v8011_v11  ;;  %3557 = vmatpush1.bf16.msra.mxu1 %v8063_v6  ;;  %v8135_v11 = vld [vmem:[#allocation10 + $0xe8] ss:$16 sps:$4 sm:$0xff]  }
 0x35d   :  { %3583 = vmatprep.subr.bf16.mxu1 %v8068_v7  ;;  %v8066_v7 = vld [vmem:[#allocation8 + $0x8] ss:$16 sps:$4 sm:$0xff]  }
 0x35f   :  { %3276 = vmatpush1.bf16.msra.mxu0 %v8009_v23  ;;  %v2892_v23 = vld [vmem:[%s9252_s7] sm:$0x3] }
 0x360   :  { %3277 = vmatprep.subr.bf16.mxu0 %v8014_v24  ;;  %v8143_v24 = vld [vmem:[#allocation10 + $0x10c] ss:$16 sps:$4 sm:$0xff]  }
 0x363   :  { %3278 = vmatpush1.bf16.msra.mxu0 %v8012_v25  ;;  %v8141_v25 = vld [vmem:[#allocation10 + $0x108] ss:$16 sps:$4 sm:$0xff]  }
 0x364   :  { %3279 = vmatprep.subr.bf16.mxu0 %v8017_v26  ;;  %v2897_v26 = vrot.slane %v2892_v23, %v9081_v48 }
 0x367   :  { %3280 = vmatpush1.bf16.msra.mxu0 %v8015_v27  ;;  %v2901_v27 = vrot.slane %v2892_v23, %v9089_v50  ;;  %v8098_v23 = vld [vmem:[#allocation10 + $0x24] ss:$16 sps:$4 sm:$0xff]  }
 0x368   :  { %3281 = vmatprep.subr.bf16.mxu0 %v8020_v28  ;;  %v8149_v28 = vld [vmem:[#allocation10 + $0x12c] ss:$16 sps:$4 sm:$0xff]  }
 0x36b   :  { %3282 = vmatpush1.bf16.msra.mxu0 %v8018_v29 }
 0x36c   :  { %3283 = vmatprep.subr.bf16.mxu0 %v8023_v30  ;;  %v8147_v30 = vld [vmem:[#allocation10 + $0x128] ss:$16 sps:$4 sm:$0xff]  }
 0x36f   :  { %3284 = vmatpush1.bf16.msra.mxu0 %v8021_v31 }
 0x370   :  { %3285 = vmatprep.subr.bf16.mxu0 %v8026_v32 }
 0x373   :  { %3286 = vmatpush1.bf16.msra.mxu0 %v8024_v33 }
 0x374   :  { %3287 = vmatprep.subr.bf16.mxu0 %v8029_v34 }
 0x377   :  { %3288 = vmatpush1.bf16.msra.mxu0 %v8027_v35  ;;  %v8155_v35 = vld [vmem:[#allocation10 + $0x14c] ss:$16 sps:$4 sm:$0xff]  }
 0x378   :  { %3289 = vmatprep.subr.bf16.mxu0 %v8032_v36 }
 0x37b   :  { %3290 = vmatpush1.bf16.msra.mxu0 %v8030_v37 }
 0x37c   :  { %3291 = vmatprep.subr.bf16.mxu0 %v8035_v38  ;;  %v8153_v38 = vld [vmem:[#allocation10 + $0x148] ss:$16 sps:$4 sm:$0xff]  }
 0x37f   :  { %3292 = vmatpush1.bf16.msra.mxu0 %v8033_v39 }
 0x380   :  { %3293 = vmatprep.subr.bf16.mxu0 %v8038_v41 }
 0x383   :  { %3294 = vmatpush1.bf16.msra.mxu0 %v8036_v42  ;;  %v8159_v42 = vld [vmem:[#allocation10 + $0x168] ss:$16 sps:$4 sm:$0xff]  }
 0x384   :  { %3295 = vmatprep.subr.bf16.mxu0 %v8041_v44  ;;  %v8165_v44 = vld [vmem:[#allocation10 + $0x188] ss:$16 sps:$4 sm:$0xff]  }
 0x387   :  { %3296 = vmatpush1.bf16.msra.mxu0 %v8039_v45  ;;  %v8173_v45 = vld [vmem:[#allocation10 + $0x1ac] ss:$16 sps:$4 sm:$0xff]  }
 0x388   :  { %4504 = vmatprep.subr.bf16.mxu0 %v8095_v9  ;;  %v8071_v9 = vld [vmem:[#allocation8 + $0x2c] ss:$16 sps:$4 sm:$0xff]  }
 0x38a   :  { %3298 = vmatmul.mubr.bf16.vlgmr.msra.gmra.mrb[8].mxu0 %v2826_v52 }
 0x38b   :  { %4505 = vmatpush1.bf16.msra.mxu0 %v8093_v8 }
 0x38c   :  { %4506 = vmatprep.subr.bf16.mxu0 %v8101_v10  ;;  %v8069_v10 = vld [vmem:[#allocation8 + $0x28] ss:$16 sps:$4 sm:$0xff]  }
 0x38f   :  { %4507 = vmatpush1.bf16.msra.mxu0 %v8099_v12  ;;  %v8074_v12 = vld [vmem:[#allocation8 + $0x4c] ss:$16 sps:$4 sm:$0xff]  }
 0x390   :  { %4508 = vmatprep.subr.bf16.mxu0 %v8107_v13  ;;  %v8072_v13 = vld [vmem:[#allocation8 + $0x48] ss:$16 sps:$4 sm:$0xff]  }
 0x393   :  { %4509 = vmatpush1.bf16.msra.mxu0 %v8105_v14  ;;  %v8077_v14 = vld [vmem:[#allocation8 + $0x6c] ss:$16 sps:$4 sm:$0xff]  }
 0x394   :  { %4510 = vmatprep.subr.bf16.mxu0 %v8113_v15  ;;  %v8075_v15 = vld [vmem:[#allocation8 + $0x68] ss:$16 sps:$4 sm:$0xff]  }
 0x397   :  { %4511 = vmatpush1.bf16.msra.mxu0 %v8111_v16  ;;  %v8080_v16 = vld [vmem:[#allocation8 + $0x8c] ss:$16 sps:$4 sm:$0xff]  }
 0x398   :  { %4512 = vmatprep.subr.bf16.mxu0 %v8119_v17  ;;  %v8078_v17 = vld [vmem:[#allocation8 + $0x88] ss:$16 sps:$4 sm:$0xff]  }
 0x39b   :  { %4513 = vmatpush1.bf16.msra.mxu0 %v8117_v49  ;;  %v8083_v49 = vld [vmem:[#allocation8 + $0xac] ss:$16 sps:$4 sm:$0xff]  }
 0x39c   :  { %4514 = vmatprep.subr.bf16.mxu0 %v8125_v18  ;;  %v8081_v18 = vld [vmem:[#allocation8 + $0xa8] ss:$16 sps:$4 sm:$0xff]  }
 0x39f   :  { %4515 = vmatpush1.bf16.msra.mxu0 %v8123_v19  ;;  %v8086_v19 = vld [vmem:[#allocation8 + $0xcc] ss:$16 sps:$4 sm:$0xff]  }
 0x3a0   :  { %4516 = vmatprep.subr.bf16.mxu0 %v8131_v20  ;;  %v8089_v20 = vld [vmem:[#allocation8 + $0xec] ss:$16 sps:$4 sm:$0xff]  }
 0x3a3   :  { %4517 = vmatpush1.bf16.msra.mxu0 %v8129_v56  ;;  %v8087_v56 = vld [vmem:[#allocation8 + $0xe8] ss:$16 sps:$4 sm:$0xff]  }
 0x3a4   :  { %4518 = vmatprep.subr.bf16.mxu0 %v8137_v21  ;;  %v8092_v21 = vld [vmem:[#allocation10 + $0x4] ss:$16 sps:$4 sm:$0xff]  }
 0x3a7   :  { %4519 = vmatpush1.bf16.msra.mxu0 %v8135_v11  ;;  %v8090_v11 = vld [vmem:[#allocation10] ss:$16 sps:$4 sm:$0xff]  }
 0x3a8   :  { %4520 = vmatprep.subr.bf16.mxu0 %v8143_v24  ;;  %v8096_v24 = vld [vmem:[#allocation10 + $0x20] ss:$16 sps:$4 sm:$0xff]  }
 0x3ab   :  { %4521 = vmatpush1.bf16.msra.mxu0 %v8141_v25  ;;  %v8104_v25 = vld [vmem:[#allocation10 + $0x44] ss:$16 sps:$4 sm:$0xff]  }
 0x3ac   :  { %4522 = vmatprep.subr.bf16.mxu0 %v8149_v28  ;;  %v8108_v28 = vld [vmem:[#allocation10 + $0x60] ss:$16 sps:$4 sm:$0xff]  }
 0x3af   :  { %4523 = vmatpush1.bf16.msra.mxu0 %v8147_v30  ;;  %v8114_v30 = vld [vmem:[#allocation10 + $0x80] ss:$16 sps:$4 sm:$0xff]  }
 0x3b0   :  { %4524 = vmatprep.subr.bf16.mxu0 %v8155_v35  ;;  %v8134_v35 = vld [vmem:[#allocation10 + $0xe4] ss:$16 sps:$4 sm:$0xff]  }
 0x3b3   :  { %4525 = vmatpush1.bf16.msra.mxu0 %v8153_v38  ;;  %v8138_v38 = vld [vmem:[#allocation10 + $0x100] ss:$16 sps:$4 sm:$0xff]  }
 0x3b4   :  { %4526 = vmatprep.subr.bf16.mxu0 %v8161_v40  ;;  %v8144_v40 = vld [vmem:[#allocation10 + $0x120] ss:$16 sps:$4 sm:$0xff]  }
 0x3b7   :  { %4527 = vmatpush1.bf16.msra.mxu0 %v8159_v42  ;;  %v8150_v42 = vld [vmem:[#allocation10 + $0x140] ss:$16 sps:$4 sm:$0xff]  }
 0x3b8   :  { %4528 = vmatprep.subr.bf16.mxu0 %v8167_v43  ;;  %v8158_v43 = vld [vmem:[#allocation10 + $0x164] ss:$16 sps:$4 sm:$0xff]  }
 0x3bb   :  { %4529 = vmatpush1.bf16.msra.mxu0 %v8165_v44  ;;  %v8156_v44 = vld [vmem:[#allocation10 + $0x160] ss:$16 sps:$4 sm:$0xff]  }
 0x3bc   :  { %4530 = vmatprep.subr.bf16.mxu0 %v8173_v45  ;;  %v8164_v45 = vld [vmem:[#allocation10 + $0x184] ss:$16 sps:$4 sm:$0xff]  }
 0x3bf   :  { %4531 = vmatpush1.bf16.msra.mxu0 %v8171_v46  ;;  %v8162_v46 = vld [vmem:[#allocation10 + $0x180] ss:$16 sps:$4 sm:$0xff]  }
 0x45d   :  { %v3299_v29 = vpop.f32.mrb[8].mxu0 }
 0x45e   :  { %v7327_v31 = vadd.f32 %v3299_v29, %v2897_v26  ;;  %v3301_v32 = vpop.f32.mrb[9].mxu0  ;;  %v8102_v26 = vld [vmem:[#allocation10 + $0x40] ss:$16 sps:$4 sm:$0xff]   ;;  %v8116_v29 = vld [vmem:[#allocation10 + $0x84] ss:$16 sps:$4 sm:$0xff]  }
 0x45f   :  { %v7328_v33 = vadd.f32 %v3301_v32, %v2901_v27  ;;  %v3303_v34 = vpop.f32.mrb[10].mxu0  ;;  %v8110_v27 = vld [vmem:[#allocation10 + $0x64] ss:$16 sps:$4 sm:$0xff]   ;;  %v8120_v32 = vld [vmem:[#allocation10 + $0xa0] ss:$16 sps:$4 sm:$0xff]  }
 0x460   :  { %6414 = vst [vmem:[#allocation14] sm:$0xff] %v7327_v31  ;;  %v3304_v36 = vpop.f32.mrb[11].mxu0  ;;  %v8126_v34 = vld [vmem:[#allocation10 + $0xc0] ss:$16 sps:$4 sm:$0xff]  }
 0x461   :  { %v3307_v37 = vand.u32 2147483647, %v7328_v33  ;;  %v3306_v61 = vmax.f32 %v7328_v33, 0.0  ;;  %v8128_v33 = vld [vmem:[#allocation10 + $0xc4] ss:$16 sps:$4 sm:$0xff]  }
 0x462   :  { %v8132_v36 = vld [vmem:[#allocation10 + $0xe0] ss:$16 sps:$4 sm:$0xff]  }
 0x463   :  { %v3308_v39 = vsub.f32 0.0, %v3307_v37  ;;  %v8140_v37 = vld [vmem:[#allocation10 + $0x104] ss:$16 sps:$4 sm:$0xff]  }
 0x465   :  { %v3309_v41 = vmul.f32 1.442695, %v3308_v39  ;;  %v8146_v39 = vld [vmem:[#allocation10 + $0x124] ss:$16 sps:$4 sm:$0xff]  }
 0x467   :  { %8602 = vpow2.f32 %v3309_v41  ;;  %v8152_v41 = vld [vmem:[#allocation10 + $0x144] ss:$16 sps:$4 sm:$0xff]  }
 0x471   :  { %v8603_v52 = vpop.eup %8602 }
 0x472   :  { %v3311_v53 = vadd.f32 1.0, %v8603_v52  ;;  %v3314_v54 = vmul.f32 -0.5, %v8603_v52  ;;  %v3317_v57 = vand.u32 2147483647, %v8603_v52 }
 0x474   :  { %8604 = vlog2.f32 %v3311_v53  ;;  %v3315_v55 = vadd.f32 1.0, %v3314_v54  ;;  %vm3318_vm0 = vcmp.lt.f32.partialorder %v3317_v57, 0.0004427343  ;;  %v8168_v53 = vld [vmem:[#allocation10 + $0x1a0] ss:$16 sps:$4 sm:$0xff]  }
 0x475   :  { %v8176_v54 = vld [vmem:[#allocation10 + $0x1c4] ss:$16 sps:$4 sm:$0xff]   ;;  %v8177_v57 = vld [vmem:[#allocation10 + $0x1c8] ss:$16 sps:$4 sm:$0xff]  }
 0x476   :  { %v3316_v60 = vmul.f32 %v8603_v52, %v3315_v55  ;;  %v8170_v52 = vld [vmem:[#allocation10 + $0x1a4] ss:$16 sps:$4 sm:$0xff]   ;;  %v8179_v55 = vld [vmem:[#allocation10 + $0x1cc] ss:$16 sps:$4 sm:$0xff]  }
 0x477   :  { %4532 = vmatprep.subr.bf16.mxu0 %v8179_v55  ;;  %v8239_v55 = vld [vmem:[#allocation10 + $0x30c] ss:$16 sps:$4 sm:$0xff]  }
 0x478   :  { %4533 = vmatpush1.bf16.msra.mxu0 %v8177_v57 }
 0x47e   :  { %v8605_v58 = vpop.eup %8604 }
 0x47f   :  { %v3313_v59 = vmul.f32 0.6931472, %v8605_v58  ;;  %v8174_v58 = vld [vmem:[#allocation10 + $0x1c0] ss:$16 sps:$4 sm:$0xff]  }
 0x481   :  { %v3319_v62 = vsel %vm3318_vm0, %v3316_v60, %v3313_v59  ;;  %v8182_v59 = vld [vmem:[#allocation10 + $0x1e4] ss:$16 sps:$4 sm:$0xff]   ;;  %v8185_v60 = vld [vmem:[#allocation10 + $0x1ec] ss:$16 sps:$4 sm:$0xff]  }
 0x482   :  { %v3320_v63 = vadd.f32 %v3319_v62, %v3306_v61  ;;  %v8183_v61 = vld [vmem:[#allocation10 + $0x1e8] ss:$16 sps:$4 sm:$0xff]   ;;  %4534 = vmatprep.subr.bf16.mxu0 %v8185_v60  ;;  %v8180_v62 = vld [vmem:[#allocation10 + $0x1e0] ss:$16 sps:$4 sm:$0xff]  }
 0x483   :  { %4535 = vmatpush1.bf16.msra.mxu0 %v8183_v61  ;;  %v8237_v60 = vld [vmem:[#allocation10 + $0x308] ss:$16 sps:$4 sm:$0xff]   ;;  %v8242_v61 = vld [vmem:[#allocation10 + $0x324] ss:$16 sps:$4 sm:$0xff]  }
 0x484   :  { %v3322_v0 = vmul.f32 0.5, %v3320_v63  ;;  %6415 = vst [vmem:[#allocation16] sm:$0xff] %v3320_v63  ;;  %v8188_v63 = vld [vmem:[#allocation10 + $0x204] ss:$16 sps:$4 sm:$0xff]  }
 0x486   :  { %v3323_v2 = vmul.f32 1.442695, %v3322_v0  ;;  %v8191_v0 = vld [vmem:[#allocation10 + $0x20c] ss:$16 sps:$4 sm:$0xff]  }
 0x487   :  { %4545 = vmatprep.subr.bf16.mxu0 %v8191_v0  ;;  %v8243_v0 = vld [vmem:[#allocation10 + $0x328] ss:$16 sps:$4 sm:$0xff]  }
 0x488   :  { %8606 = vpow2.f32 %v3323_v2  ;;  %v9137_v2 = vld [vmem:[%s9254_s9] sm:$0xf] }
 0x492   :  { %v8607_v4 = vpop.eup %8606 }
 0x493   :  { %v3325_v5 = vmul.f32 %v8607_v4, %v3321_v3  ;;  %v3365_v3 = vrot.slane %v9137_v2, %v9081_v48  ;;  %v3369_v4 = vrot.slane %v9137_v2, %v9089_v50 }
 0x495   :  { %v3326_v6 = vadd.f32 %v7327_v31, %v3325_v5  ;;  %v8122_v31 = vld [vmem:[#allocation10 + $0xa4] ss:$16 sps:$4 sm:$0xff]  }
 0x497   :  { %v3327_v8 = vpack.c.bf16 %v3326_v6, %v3326_v6 }
 0x499   :  { %3575 = vmatmul.mubr.bf16.vlgmr.msra.gmra.mrb[8].mxu1 %v3327_v8 }
 0x49a   :  { %3584 = vmatpush1.bf16.msra.mxu1 %v8066_v7  ;;  %3615 = vmatprep.mubr.bf16.mxu1 %v8858_v22  ;;  %v8084_v22 = vld [vmem:[#allocation8 + $0xc8] ss:$16 sps:$4 sm:$0xff]  }
 0x49b   :  { %3585 = vmatprep.subr.bf16.mxu1 %v8071_v9 }
 0x49e   :  { %3586 = vmatpush1.bf16.msra.mxu1 %v8069_v10 }
 0x49f   :  { %3587 = vmatprep.subr.bf16.mxu1 %v8074_v12 }
 0x4a2   :  { %3588 = vmatpush1.bf16.msra.mxu1 %v8072_v13 }
 0x4a3   :  { %3589 = vmatprep.subr.bf16.mxu1 %v8077_v14 }
 0x4a6   :  { %3590 = vmatpush1.bf16.msra.mxu1 %v8075_v15  ;;  %v8186_v15 = vld [vmem:[#allocation10 + $0x200] ss:$16 sps:$4 sm:$0xff]  }
 0x4a7   :  { %3591 = vmatprep.subr.bf16.mxu1 %v8080_v16  ;;  %v8189_v16 = vld [vmem:[#allocation10 + $0x208] ss:$16 sps:$4 sm:$0xff]  }
 0x4aa   :  { %3592 = vmatpush1.bf16.msra.mxu1 %v8078_v17 }
 0x4ab   :  { %3593 = vmatprep.subr.bf16.mxu1 %v8083_v49  ;;  %v8194_v49 = vld [vmem:[#allocation10 + $0x224] ss:$16 sps:$4 sm:$0xff]  }
 0x4ae   :  { %3594 = vmatpush1.bf16.msra.mxu1 %v8081_v18  ;;  %v8197_v18 = vld [vmem:[#allocation10 + $0x22c] ss:$16 sps:$4 sm:$0xff]  }
 0x4af   :  { %3595 = vmatprep.subr.bf16.mxu1 %v8086_v19  ;;  %v8192_v19 = vld [vmem:[#allocation10 + $0x220] ss:$16 sps:$4 sm:$0xff]  }
 0x4b2   :  { %3596 = vmatpush1.bf16.msra.mxu1 %v8084_v22  ;;  %v8195_v22 = vld [vmem:[#allocation10 + $0x228] ss:$16 sps:$4 sm:$0xff]  }
 0x4b3   :  { %3597 = vmatprep.subr.bf16.mxu1 %v8089_v20  ;;  %v8200_v20 = vld [vmem:[#allocation10 + $0x244] ss:$16 sps:$4 sm:$0xff]  }
 0x4b6   :  { %3598 = vmatpush1.bf16.msra.mxu1 %v8087_v56  ;;  %v8203_v56 = vld [vmem:[#allocation10 + $0x24c] ss:$16 sps:$4 sm:$0xff]  }
 0x4b7   :  { %4422 = vmatprep.subr.bf16.mxu1 %v8092_v21  ;;  %v8198_v21 = vld [vmem:[#allocation10 + $0x240] ss:$16 sps:$4 sm:$0xff]  }
 0x4b9   :  { %3616 = vmatmul.mubr.bf16.vlgmr.msra.gmra.mrb[12].mxu1 %v3327_v8 }
 0x4ba   :  { %4423 = vmatpush1.bf16.msra.mxu1 %v8090_v11  ;;  %v8201_v11 = vld [vmem:[#allocation10 + $0x248] ss:$16 sps:$4 sm:$0xff]  }
 0x4bb   :  { %4424 = vmatprep.subr.bf16.mxu1 %v8098_v23  ;;  %v8206_v23 = vld [vmem:[#allocation10 + $0x264] ss:$16 sps:$4 sm:$0xff]  }
 0x4be   :  { %4425 = vmatpush1.bf16.msra.mxu1 %v8096_v24  ;;  %v8209_v24 = vld [vmem:[#allocation10 + $0x26c] ss:$16 sps:$4 sm:$0xff]  }
 0x4bf   :  { %4426 = vmatprep.subr.bf16.mxu1 %v8104_v25  ;;  %v8204_v25 = vld [vmem:[#allocation10 + $0x260] ss:$16 sps:$4 sm:$0xff]  }
 0x4c2   :  { %4427 = vmatpush1.bf16.msra.mxu1 %v8102_v26  ;;  %v8207_v26 = vld [vmem:[#allocation10 + $0x268] ss:$16 sps:$4 sm:$0xff]  }
 0x4c3   :  { %4428 = vmatprep.subr.bf16.mxu1 %v8110_v27  ;;  %v8212_v27 = vld [vmem:[#allocation10 + $0x284] ss:$16 sps:$4 sm:$0xff]  }
 0x4c6   :  { %4429 = vmatpush1.bf16.msra.mxu1 %v8108_v28  ;;  %v8215_v28 = vld [vmem:[#allocation10 + $0x28c] ss:$16 sps:$4 sm:$0xff]  }
 0x4c7   :  { %4430 = vmatprep.subr.bf16.mxu1 %v8116_v29  ;;  %v8210_v29 = vld [vmem:[#allocation10 + $0x280] ss:$16 sps:$4 sm:$0xff]  }
 0x4ca   :  { %4431 = vmatpush1.bf16.msra.mxu1 %v8114_v30  ;;  %v8213_v30 = vld [vmem:[#allocation10 + $0x288] ss:$16 sps:$4 sm:$0xff]  }
 0x4cb   :  { %4432 = vmatprep.subr.bf16.mxu1 %v8122_v31  ;;  %v8218_v31 = vld [vmem:[#allocation10 + $0x2a4] ss:$16 sps:$4 sm:$0xff]  }
 0x4ce   :  { %4433 = vmatpush1.bf16.msra.mxu1 %v8120_v32  ;;  %v8221_v32 = vld [vmem:[#allocation10 + $0x2ac] ss:$16 sps:$4 sm:$0xff]  }
 0x4cf   :  { %4434 = vmatprep.subr.bf16.mxu1 %v8128_v33  ;;  %v8216_v33 = vld [vmem:[#allocation10 + $0x2a0] ss:$16 sps:$4 sm:$0xff]  }
 0x4d2   :  { %4435 = vmatpush1.bf16.msra.mxu1 %v8126_v34  ;;  %v8219_v34 = vld [vmem:[#allocation10 + $0x2a8] ss:$16 sps:$4 sm:$0xff]  }
 0x4d3   :  { %4436 = vmatprep.subr.bf16.mxu1 %v8134_v35  ;;  %v8224_v35 = vld [vmem:[#allocation10 + $0x2c4] ss:$16 sps:$4 sm:$0xff]  }
 0x4d6   :  { %4437 = vmatpush1.bf16.msra.mxu1 %v8132_v36  ;;  %v8227_v36 = vld [vmem:[#allocation10 + $0x2cc] ss:$16 sps:$4 sm:$0xff]  }
 0x4d7   :  { %4438 = vmatprep.subr.bf16.mxu1 %v8140_v37  ;;  %v3377_v37 = vrot.slane %v9137_v2, %v9092_v51 }
 0x4da   :  { %4439 = vmatpush1.bf16.msra.mxu1 %v8138_v38  ;;  %v8222_v38 = vld [vmem:[#allocation10 + $0x2c0] ss:$16 sps:$4 sm:$0xff]  }
 0x4db   :  { %4440 = vmatprep.subr.bf16.mxu1 %v8146_v39  ;;  %v8225_v39 = vld [vmem:[#allocation10 + $0x2c8] ss:$16 sps:$4 sm:$0xff]  }
 0x4de   :  { %4441 = vmatpush1.bf16.msra.mxu1 %v8144_v40  ;;  %v8230_v40 = vld [vmem:[#allocation10 + $0x2e4] ss:$16 sps:$4 sm:$0xff]  }
 0x4df   :  { %4442 = vmatprep.subr.bf16.mxu1 %v8152_v41  ;;  %v8233_v41 = vld [vmem:[#allocation10 + $0x2ec] ss:$16 sps:$4 sm:$0xff]  }
 0x4e2   :  { %4443 = vmatpush1.bf16.msra.mxu1 %v8150_v42 }
 0x4e3   :  { %4444 = vmatprep.subr.bf16.mxu1 %v8158_v43 }
 0x4e6   :  { %4445 = vmatpush1.bf16.msra.mxu1 %v8156_v44 }
 0x4e7   :  { %4446 = vmatprep.subr.bf16.mxu1 %v8164_v45 }
 0x4ea   :  { %4447 = vmatpush1.bf16.msra.mxu1 %v8162_v46  ;;  %v8228_v46 = vld [vmem:[#allocation10 + $0x2e0] ss:$16 sps:$4 sm:$0xff]  }
 0x4eb   :  { %4448 = vmatprep.subr.bf16.mxu1 %v8170_v52  ;;  %v8231_v52 = vld [vmem:[#allocation10 + $0x2e8] ss:$16 sps:$4 sm:$0xff]  }
 0x4ee   :  { %4449 = vmatpush1.bf16.msra.mxu1 %v8168_v53 }
 0x4ef   :  { %4450 = vmatprep.subr.bf16.mxu1 %v8176_v54  ;;  %v8236_v54 = vld [vmem:[#allocation10 + $0x304] ss:$16 sps:$4 sm:$0xff]  }
 0x4f2   :  { %4451 = vmatpush1.bf16.msra.mxu1 %v8174_v58 }
 0x4f3   :  { %4452 = vmatprep.subr.bf16.mxu1 %v8182_v59  ;;  %v8234_v59 = vld [vmem:[#allocation10 + $0x300] ss:$16 sps:$4 sm:$0xff]  }
 0x4f6   :  { %4453 = vmatpush1.bf16.msra.mxu1 %v8180_v62  ;;  %v8245_v62 = vld [vmem:[#allocation10 + $0x32c] ss:$16 sps:$4 sm:$0xff]  }
 0x4f7   :  { %4463 = vmatprep.subr.bf16.mxu1 %v8188_v63  ;;  %v8240_v63 = vld [vmem:[#allocation10 + $0x320] ss:$16 sps:$4 sm:$0xff]  }
 0x56c   :  { %v3576_v5 = vpop.f32.mrb[8].mxu1 }
 0x56d   :  { %v3577_v6 = vadd.f32 %v3576_v5, %v3365_v3  ;;  %v3578_v7 = vpop.f32.mrb[9].mxu1  ;;  %v8248_v3 = vld [vmem:[#allocation10 + $0x344] ss:$16 sps:$4 sm:$0xff]   ;;  %v8246_v5 = vld [vmem:[#allocation10 + $0x340] ss:$16 sps:$4 sm:$0xff]  }
 0x56e   :  { %v3579_v8 = vadd.f32 %v3578_v7, %v3369_v4  ;;  %v3580_v9 = vpop.f32.mrb[10].mxu1  ;;  %v8251_v4 = vld [vmem:[#allocation10 + $0x34c] ss:$16 sps:$4 sm:$0xff]   ;;  %v8254_v7 = vld [vmem:[#allocation10 + $0x364] ss:$16 sps:$4 sm:$0xff]  }
 0x56f   :  { %v3624_v10 = vmax.f32 %v3577_v6, 0.0  ;;  %v3581_v12 = vpop.f32.mrb[11].mxu1  ;;  %v8249_v6 = vld [vmem:[#allocation10 + $0x348] ss:$16 sps:$4 sm:$0xff]   ;;  %v8252_v9 = vld [vmem:[#allocation10 + $0x360] ss:$16 sps:$4 sm:$0xff]  }
 0x570   :  { %v3625_v13 = vmax.f32 %v3579_v8, 0.0  ;;  %v8257_v8 = vld [vmem:[#allocation10 + $0x36c] ss:$16 sps:$4 sm:$0xff]   ;;  %v8260_v12 = vld [vmem:[#allocation10 + $0x384] ss:$16 sps:$4 sm:$0xff]  }
 0x571   :  { %v3628_v17 = vpack.c.bf16 %v3624_v10, %v3624_v10  ;;  %v8255_v10 = vld [vmem:[#allocation10 + $0x368] ss:$16 sps:$4 sm:$0xff]  }
 0x572   :  { %v3629_v14 = vpack.c.bf16 %v3625_v13, %v3625_v13  ;;  %v8263_v13 = vld [vmem:[#allocation10 + $0x38c] ss:$16 sps:$4 sm:$0xff]  }
 0x574   :  { %4454 = vmatprep.mubr.bf16.mxu1 %v3629_v14  ;;  %4536 = vmatprep.mubr.bf16.mxu0 %v3629_v14  ;;  %v8258_v14 = vld [vmem:[#allocation10 + $0x380] ss:$16 sps:$4 sm:$0xff]  }
 0x575   :  { %4455 = vmatmul.mubr.bf16.vlgmr.msra.gmra.mrb[16].mxu1 %v3628_v17  ;;  %4537 = vmatmul.mubr.bf16.vlgmr.msra.gmra.mrb[12].mxu0 %v3628_v17  ;;  %v8269_v17 = vld [vmem:[#allocation10 + $0x3ac] ss:$16 sps:$4 sm:$0xff]  }
 0x576   :  { %4464 = vmatpush1.bf16.msra.mxu1 %v8186_v15  ;;  %4546 = vmatpush1.bf16.msra.mxu0 %v8189_v16  ;;  %v8261_v15 = vld [vmem:[#allocation10 + $0x388] ss:$16 sps:$4 sm:$0xff]   ;;  %v8266_v16 = vld [vmem:[#allocation10 + $0x3a4] ss:$16 sps:$4 sm:$0xff]  }
 0x577   :  { %4465 = vmatprep.subr.bf16.mxu1 %v8194_v49  ;;  %4547 = vmatprep.subr.bf16.mxu0 %v8197_v18  ;;  %v8264_v49 = vld [vmem:[#allocation10 + $0x3a0] ss:$16 sps:$4 sm:$0xff]   ;;  %v8267_v18 = vld [vmem:[#allocation10 + $0x3a8] ss:$16 sps:$4 sm:$0xff]  }
 0x57a   :  { %4466 = vmatpush1.bf16.msra.mxu1 %v8192_v19  ;;  %4548 = vmatpush1.bf16.msra.mxu0 %v8195_v22  ;;  %v3373_v19 = vrot.slane %v9137_v2, %v9103_v1  ;;  %v8272_v22 = vld [vmem:[#allocation10 + $0x3c4] ss:$16 sps:$4 sm:$0xff]  }
 0x57b   :  { %4467 = vmatprep.subr.bf16.mxu1 %v8200_v20  ;;  %4549 = vmatprep.subr.bf16.mxu0 %v8203_v56  ;;  %v8275_v20 = vld [vmem:[#allocation10 + $0x3cc] ss:$16 sps:$4 sm:$0xff]   ;;  %v8270_v56 = vld [vmem:[#allocation10 + $0x3c0] ss:$16 sps:$4 sm:$0xff]  }
 0x57c   :  { %v8284_v2 = vld [vmem:[#allocation11 + $0x4] ss:$28 sps:$4 sm:$0xff]  }
 0x57e   :  { %4468 = vmatpush1.bf16.msra.mxu1 %v8198_v21  ;;  %4550 = vmatpush1.bf16.msra.mxu0 %v8201_v11  ;;  %v8273_v21 = vld [vmem:[#allocation10 + $0x3c8] ss:$16 sps:$4 sm:$0xff]  }
 0x57f   :  { %4469 = vmatprep.subr.bf16.mxu1 %v8206_v23  ;;  %4551 = vmatprep.subr.bf16.mxu0 %v8209_v24  ;;  %v8278_v23 = vld [vmem:[#allocation10 + $0x3e4] ss:$16 sps:$4 sm:$0xff]   ;;  %v8281_v24 = vld [vmem:[#allocation10 + $0x3ec] ss:$16 sps:$4 sm:$0xff]  }
 0x582   :  { %4470 = vmatpush1.bf16.msra.mxu1 %v8204_v25  ;;  %4552 = vmatpush1.bf16.msra.mxu0 %v8207_v26  ;;  %v8276_v25 = vld [vmem:[#allocation10 + $0x3e0] ss:$16 sps:$4 sm:$0xff]   ;;  %v8279_v26 = vld [vmem:[#allocation10 + $0x3e8] ss:$16 sps:$4 sm:$0xff]  }
 0x583   :  { %4471 = vmatprep.subr.bf16.mxu1 %v8212_v27  ;;  %4553 = vmatprep.subr.bf16.mxu0 %v8215_v28  ;;  %v8287_v28 = vld [vmem:[#allocation11 + $0xc] ss:$28 sps:$4 sm:$0xff]  }
 0x586   :  { %4472 = vmatpush1.bf16.msra.mxu1 %v8210_v29  ;;  %4554 = vmatpush1.bf16.msra.mxu0 %v8213_v30  ;;  %v8282_v29 = vld [vmem:[#allocation11] ss:$28 sps:$4 sm:$0xff]   ;;  %v8285_v30 = vld [vmem:[#allocation11 + $0x8] ss:$28 sps:$4 sm:$0xff]  }
 0x587   :  { %4473 = vmatprep.subr.bf16.mxu1 %v8218_v31  ;;  %4555 = vmatprep.subr.bf16.mxu0 %v8221_v32  ;;  %v8290_v32 = vld [vmem:[#allocation11 + $0x3c] ss:$28 sps:$4 sm:$0xff]  }
 0x58a   :  { %4474 = vmatpush1.bf16.msra.mxu1 %v8216_v33  ;;  %4556 = vmatpush1.bf16.msra.mxu0 %v8219_v34  ;;  %v8293_v33 = vld [vmem:[#allocation11 + $0x44] ss:$28 sps:$4 sm:$0xff]   ;;  %v8288_v34 = vld [vmem:[#allocation11 + $0x38] ss:$28 sps:$4 sm:$0xff]  }
 0x58b   :  { %4475 = vmatprep.subr.bf16.mxu1 %v8224_v35  ;;  %4557 = vmatprep.subr.bf16.mxu0 %v8227_v36  ;;  %v8291_v35 = vld [vmem:[#allocation11 + $0x40] ss:$28 sps:$4 sm:$0xff]   ;;  %v8296_v36 = vld [vmem:[#allocation11 + $0x74] ss:$28 sps:$4 sm:$0xff]  }
 0x58c   :  { %v9145_v42 = vpop.f32.mrb[12].mxu1 }
 0x58d   :  { %v3619_v43 = vpop.f32.mrb[13].mxu1  ;;  %v3618_v11 = vadd.f32 %v9145_v42, %v3373_v19  ;;  %v8300_v42 = vld [vmem:[#allocation11 + $0xa8] ss:$28 sps:$4 sm:$0xff]   ;;  %v8351_v19 = vld [vmem:[#allocation11 + $0x270] ss:$28 sps:$4 sm:$0xff]  }
 0x58e   :  { %v3620_v44 = vadd.f32 %v3619_v43, %v3377_v37  ;;  %v3621_v45 = vpop.f32.mrb[14].mxu1  ;;  %4476 = vmatpush1.bf16.msra.mxu1 %v8222_v38  ;;  %4558 = vmatpush1.bf16.msra.mxu0 %v8225_v39  ;;  %v8299_v37 = vld [vmem:[#allocation11 + $0x7c] ss:$28 sps:$4 sm:$0xff]   ;;  %v8294_v38 = vld [vmem:[#allocation11 + $0x70] ss:$28 sps:$4 sm:$0xff]  }
 0x58f   :  { %v3622_v53 = vpop.f32.mrb[15].mxu1  ;;  %4477 = vmatprep.subr.bf16.mxu1 %v8230_v40  ;;  %4559 = vmatprep.subr.bf16.mxu0 %v8233_v41  ;;  %v3626_v27 = vmax.f32 %v3618_v11, 0.0  ;;  %v8297_v39 = vld [vmem:[#allocation11 + $0x78] ss:$28 sps:$4 sm:$0xff]   ;;  %v8302_v40 = vld [vmem:[#allocation11 + $0xac] ss:$28 sps:$4 sm:$0xff]  }
 0x590   :  { %v3627_v57 = vmax.f32 %v3620_v44, 0.0  ;;  %v8305_v41 = vld [vmem:[#allocation11 + $0xb4] ss:$28 sps:$4 sm:$0xff]   ;;  %v8308_v44 = vld [vmem:[#allocation11 + $0xe4] ss:$28 sps:$4 sm:$0xff]  }
 0x591   :  { %v3630_v31 = vpack.c.bf16 %v3626_v27, %v3626_v27  ;;  %v8303_v43 = vld [vmem:[#allocation11 + $0xb0] ss:$28 sps:$4 sm:$0xff]   ;;  %v8314_v53 = vld [vmem:[#allocation11 + $0x11c] ss:$28 sps:$4 sm:$0xff]  }
 0x592   :  { %v3631_v58 = vpack.c.bf16 %v3627_v57, %v3627_v57  ;;  %4478 = vmatpush1.bf16.msra.mxu1 %v8228_v46  ;;  %4560 = vmatpush1.bf16.msra.mxu0 %v8231_v52  ;;  %v8311_v45 = vld [vmem:[#allocation11 + $0xec] ss:$28 sps:$4 sm:$0xff]   ;;  %v8306_v46 = vld [vmem:[#allocation11 + $0xe0] ss:$28 sps:$4 sm:$0xff]  }
 0x593   :  { %4479 = vmatprep.subr.bf16.mxu1 %v8236_v54  ;;  %4561 = vmatprep.subr.bf16.mxu0 %v8239_v55  ;;  %v8309_v52 = vld [vmem:[#allocation11 + $0xe8] ss:$28 sps:$4 sm:$0xff]   ;;  %v8312_v55 = vld [vmem:[#allocation11 + $0x118] ss:$28 sps:$4 sm:$0xff]   ;;  %v8315_v57 = vld [vmem:[#allocation11 + $0x120] ss:$28 sps:$4 sm:$0xff]  }
 0x594   :  { %4495 = vmatprep.mubr.bf16.mxu1 %v3631_v58  ;;  %4577 = vmatprep.mubr.bf16.mxu0 %v3631_v58  ;;  %v8317_v54 = vld [vmem:[#allocation11 + $0x124] ss:$28 sps:$4 sm:$0xff]   ;;  %v8320_v58 = vld [vmem:[#allocation11 + $0x154] ss:$28 sps:$4 sm:$0xff]   ;;  %v8362_v11 = vld [vmem:[#allocation11 + $0x2dc] ss:$28 sps:$4 sm:$0xff]  }
 0x595   :  { %v8371_v27 = vld [vmem:[#allocation11 + $0x31c] ss:$28 sps:$4 sm:$0xff]  }
 0x596   :  { %4480 = vmatpush1.bf16.msra.mxu1 %v8234_v59  ;;  %4562 = vmatpush1.bf16.msra.mxu0 %v8237_v60  ;;  %v8323_v59 = vld [vmem:[#allocation11 + $0x15c] ss:$28 sps:$4 sm:$0xff]   ;;  %v8318_v60 = vld [vmem:[#allocation11 + $0x150] ss:$28 sps:$4 sm:$0xff]  }
 0x597   :  { %4481 = vmatprep.subr.bf16.mxu1 %v8242_v61  ;;  %4563 = vmatprep.subr.bf16.mxu0 %v8245_v62  ;;  %v8321_v61 = vld [vmem:[#allocation11 + $0x158] ss:$28 sps:$4 sm:$0xff]   ;;  %v8326_v62 = vld [vmem:[#allocation11 + $0x18c] ss:$28 sps:$4 sm:$0xff]  }
 0x59a   :  { %4482 = vmatpush1.bf16.msra.mxu1 %v8240_v63  ;;  %4564 = vmatpush1.bf16.msra.mxu0 %v8243_v0  ;;  %v8329_v63 = vld [vmem:[#allocation11 + $0x194] ss:$28 sps:$4 sm:$0xff]   ;;  %v8324_v0 = vld [vmem:[#allocation11 + $0x188] ss:$28 sps:$4 sm:$0xff]  }
 0x59b   :  { %4483 = vmatprep.subr.bf16.mxu1 %v8248_v3  ;;  %4565 = vmatprep.subr.bf16.mxu0 %v8251_v4  ;;  %v8327_v3 = vld [vmem:[#allocation11 + $0x190] ss:$28 sps:$4 sm:$0xff]   ;;  %v8332_v4 = vld [vmem:[#allocation11 + $0x1c4] ss:$28 sps:$4 sm:$0xff]  }
 0x59e   :  { %4484 = vmatpush1.bf16.msra.mxu1 %v8246_v5  ;;  %4566 = vmatpush1.bf16.msra.mxu0 %v8249_v6  ;;  %v8335_v5 = vld [vmem:[#allocation11 + $0x1cc] ss:$28 sps:$4 sm:$0xff]   ;;  %v8330_v6 = vld [vmem:[#allocation11 + $0x1c0] ss:$28 sps:$4 sm:$0xff]  }
 0x59f   :  { %4485 = vmatprep.subr.bf16.mxu1 %v8254_v7  ;;  %4567 = vmatprep.subr.bf16.mxu0 %v8257_v8  ;;  %v8333_v7 = vld [vmem:[#allocation11 + $0x1c8] ss:$28 sps:$4 sm:$0xff]   ;;  %v8338_v8 = vld [vmem:[#allocation11 + $0x1fc] ss:$28 sps:$4 sm:$0xff]  }
 0x5a2   :  { %4486 = vmatpush1.bf16.msra.mxu1 %v8252_v9  ;;  %4568 = vmatpush1.bf16.msra.mxu0 %v8255_v10  ;;  %v8341_v9 = vld [vmem:[#allocation11 + $0x204] ss:$28 sps:$4 sm:$0xff]   ;;  %v8336_v10 = vld [vmem:[#allocation11 + $0x1f8] ss:$28 sps:$4 sm:$0xff]  }
 0x5a3   :  { %4487 = vmatprep.subr.bf16.mxu1 %v8260_v12  ;;  %4569 = vmatprep.subr.bf16.mxu0 %v8263_v13  ;;  %v8339_v12 = vld [vmem:[#allocation11 + $0x200] ss:$28 sps:$4 sm:$0xff]   ;;  %v8344_v13 = vld [vmem:[#allocation11 + $0x234] ss:$28 sps:$4 sm:$0xff]  }
 0x5a6   :  { %4488 = vmatpush1.bf16.msra.mxu1 %v8258_v14  ;;  %4570 = vmatpush1.bf16.msra.mxu0 %v8261_v15  ;;  %v8347_v14 = vld [vmem:[#allocation11 + $0x23c] ss:$28 sps:$4 sm:$0xff]   ;;  %v8342_v15 = vld [vmem:[#allocation11 + $0x230] ss:$28 sps:$4 sm:$0xff]  }
 0x5a7   :  { %4489 = vmatprep.subr.bf16.mxu1 %v8266_v16  ;;  %4571 = vmatprep.subr.bf16.mxu0 %v8269_v17  ;;  %v8345_v16 = vld [vmem:[#allocation11 + $0x238] ss:$28 sps:$4 sm:$0xff]   ;;  %v8350_v17 = vld [vmem:[#allocation11 + $0x26c] ss:$28 sps:$4 sm:$0xff]  }
 0x5aa   :  { %4490 = vmatpush1.bf16.msra.mxu1 %v8264_v49  ;;  %4572 = vmatpush1.bf16.msra.mxu0 %v8267_v18  ;;  %v8353_v49 = vld [vmem:[#allocation11 + $0x274] ss:$28 sps:$4 sm:$0xff]   ;;  %v8348_v18 = vld [vmem:[#allocation11 + $0x268] ss:$28 sps:$4 sm:$0xff]  }
 0x5ab   :  { %4491 = vmatprep.subr.bf16.mxu1 %v8272_v22  ;;  %4573 = vmatprep.subr.bf16.mxu0 %v8275_v20  ;;  %v8356_v22 = vld [vmem:[#allocation11 + $0x2a4] ss:$28 sps:$4 sm:$0xff]   ;;  %v8359_v20 = vld [vmem:[#allocation11 + $0x2ac] ss:$28 sps:$4 sm:$0xff]  }
 0x5ae   :  { %4492 = vmatpush1.bf16.msra.mxu1 %v8270_v56  ;;  %4574 = vmatpush1.bf16.msra.mxu0 %v8273_v21  ;;  %v8354_v56 = vld [vmem:[#allocation11 + $0x2a0] ss:$28 sps:$4 sm:$0xff]   ;;  %v8357_v21 = vld [vmem:[#allocation11 + $0x2a8] ss:$28 sps:$4 sm:$0xff]  }
 0x5af   :  { %4493 = vmatprep.subr.bf16.mxu1 %v8278_v23  ;;  %4575 = vmatprep.subr.bf16.mxu0 %v8281_v24  ;;  %v8365_v23 = vld [vmem:[#allocation11 + $0x2e4] ss:$28 sps:$4 sm:$0xff]   ;;  %v8360_v24 = vld [vmem:[#allocation11 + $0x2d8] ss:$28 sps:$4 sm:$0xff]  }
 0x5b2   :  { %4494 = vmatpush1.bf16.msra.mxu1 %v8276_v25  ;;  %4576 = vmatpush1.bf16.msra.mxu0 %v8279_v26  ;;  %v8363_v25 = vld [vmem:[#allocation11 + $0x2e0] ss:$28 sps:$4 sm:$0xff]   ;;  %v8368_v26 = vld [vmem:[#allocation11 + $0x314] ss:$28 sps:$4 sm:$0xff]  }
 0x5b3   :  { %6039 = vmatprep.subr.bf16.mxu1 %v8284_v2  ;;  %6121 = vmatprep.subr.bf16.mxu0 %v8287_v28  ;;  %v8366_v2 = vld [vmem:[#allocation11 + $0x310] ss:$28 sps:$4 sm:$0xff]   ;;  %v8369_v28 = vld [vmem:[#allocation11 + $0x318] ss:$28 sps:$4 sm:$0xff]  }
 0x5b5   :  { %4496 = vmatmul.mubr.bf16.vlgmr.msra.gmra.mrb[16].mxu1 %v3630_v31  ;;  %4578 = vmatmul.mubr.bf16.vlgmr.msra.gmra.mrb[12].mxu0 %v3630_v31  ;;  %v8372_v31 = vld [vmem:[#allocation11 + $0x348] ss:$28 sps:$4 sm:$0xff]  }
 0x5b6   :  { %6040 = vmatpush1.bf16.msra.mxu1 %v8282_v29  ;;  %6122 = vmatpush1.bf16.msra.mxu0 %v8285_v30  ;;  %v8374_v29 = vld [vmem:[#allocation11 + $0x34c] ss:$28 sps:$4 sm:$0xff]   ;;  %v8377_v30 = vld [vmem:[#allocation11 + $0x354] ss:$28 sps:$4 sm:$0xff]  }
 0x5b7   :  { %6041 = vmatprep.subr.bf16.mxu1 %v8290_v32  ;;  %6123 = vmatprep.subr.bf16.mxu0 %v8293_v33  ;;  %v8375_v32 = vld [vmem:[#allocation11 + $0x350] ss:$28 sps:$4 sm:$0xff]   ;;  %v8380_v33 = vld [vmem:[#allocation11 + $0x384] ss:$28 sps:$4 sm:$0xff]  }
 0x5ba   :  { %6042 = vmatpush1.bf16.msra.mxu1 %v8288_v34  ;;  %6124 = vmatpush1.bf16.msra.mxu0 %v8291_v35  ;;  %v8383_v34 = vld [vmem:[#allocation11 + $0x38c] ss:$28 sps:$4 sm:$0xff]   ;;  %v9153_v35 = vld [vmem:[%s9256_s11] sm:$0xf] }
 0x5bb   :  { %6043 = vmatprep.subr.bf16.mxu1 %v8296_v36  ;;  %6125 = vmatprep.subr.bf16.mxu0 %v8299_v37  ;;  %v3765_v36 = vrot.slane %v9153_v35, %v9081_v48  ;;  %v3769_v37 = vrot.slane %v9153_v35, %v9089_v50 }
 0x5be   :  { %6044 = vmatpush1.bf16.msra.mxu1 %v8294_v38  ;;  %6126 = vmatpush1.bf16.msra.mxu0 %v8297_v39  ;;  %v3777_v38 = vrot.slane %v9153_v35, %v9092_v51 }
 0x5bf   :  { %6045 = vmatprep.subr.bf16.mxu1 %v8302_v40  ;;  %6127 = vmatprep.subr.bf16.mxu0 %v8305_v41 }
 0x5c2   :  { %6046 = vmatpush1.bf16.msra.mxu1 %v8300_v42  ;;  %6128 = vmatpush1.bf16.msra.mxu0 %v8303_v43 }
 0x5c3   :  { %6047 = vmatprep.subr.bf16.mxu1 %v8308_v44  ;;  %6129 = vmatprep.subr.bf16.mxu0 %v8311_v45 }
 0x5c6   :  { %6048 = vmatpush1.bf16.msra.mxu1 %v8306_v46  ;;  %6130 = vmatpush1.bf16.msra.mxu0 %v8309_v52 }
 0x5c7   :  { %6049 = vmatprep.subr.bf16.mxu1 %v8314_v53  ;;  %6131 = vmatprep.subr.bf16.mxu0 %v8317_v54 }
 0x5ca   :  { %6050 = vmatpush1.bf16.msra.mxu1 %v8312_v55  ;;  %6132 = vmatpush1.bf16.msra.mxu0 %v8315_v57 }
 0x5cb   :  { %6051 = vmatprep.subr.bf16.mxu1 %v8320_v58  ;;  %6133 = vmatprep.subr.bf16.mxu0 %v8323_v59 }
 0x5ce   :  { %6052 = vmatpush1.bf16.msra.mxu1 %v8318_v60  ;;  %6134 = vmatpush1.bf16.msra.mxu0 %v8321_v61  ;;  %v8378_v60 = vld [vmem:[#allocation11 + $0x380] ss:$28 sps:$4 sm:$0xff]   ;;  %v8381_v61 = vld [vmem:[#allocation11 + $0x388] ss:$28 sps:$4 sm:$0xff]  }
 0x5cf   :  { %6053 = vmatprep.subr.bf16.mxu1 %v8326_v62  ;;  %6135 = vmatprep.subr.bf16.mxu0 %v8329_v63  ;;  %v8386_v63 = vld [vmem:[#allocation11 + $0x3bc] ss:$28 sps:$4 sm:$0xff]  }
 0x5d2   :  { %6054 = vmatpush1.bf16.msra.mxu1 %v8324_v0  ;;  %6136 = vmatpush1.bf16.msra.mxu0 %v8327_v3  ;;  %v8389_v0 = vld [vmem:[#allocation11 + $0x3c4] ss:$28 sps:$4 sm:$0xff]  }
 0x5d3   :  { %6055 = vmatprep.subr.bf16.mxu1 %v8332_v4  ;;  %6137 = vmatprep.subr.bf16.mxu0 %v8335_v5  ;;  %v8384_v4 = vld [vmem:[#allocation11 + $0x3b8] ss:$28 sps:$4 sm:$0xff]   ;;  %v8387_v5 = vld [vmem:[#allocation11 + $0x3c0] ss:$28 sps:$4 sm:$0xff]  }
 0x5d6   :  { %6056 = vmatpush1.bf16.msra.mxu1 %v8330_v6  ;;  %6138 = vmatpush1.bf16.msra.mxu0 %v8333_v7  ;;  %v8392_v6 = vld [vmem:[#allocation11 + $0x3f4] ss:$28 sps:$4 sm:$0xff]   ;;  %v8395_v7 = vld [vmem:[#allocation11 + $0x3fc] ss:$28 sps:$4 sm:$0xff]  }
 0x5d7   :  { %6057 = vmatprep.subr.bf16.mxu1 %v8338_v8  ;;  %6139 = vmatprep.subr.bf16.mxu0 %v8341_v9  ;;  %v8390_v8 = vld [vmem:[#allocation11 + $0x3f0] ss:$28 sps:$4 sm:$0xff]   ;;  %v8393_v9 = vld [vmem:[#allocation11 + $0x3f8] ss:$28 sps:$4 sm:$0xff]  }
 0x5da   :  { %6058 = vmatpush1.bf16.msra.mxu1 %v8336_v10  ;;  %6140 = vmatpush1.bf16.msra.mxu0 %v8339_v12  ;;  %v8398_v10 = vld [vmem:[#allocation11 + $0x42c] ss:$28 sps:$4 sm:$0xff]   ;;  %v8401_v12 = vld [vmem:[#allocation11 + $0x434] ss:$28 sps:$4 sm:$0xff]  }
 0x5db   :  { %6059 = vmatprep.subr.bf16.mxu1 %v8344_v13  ;;  %6141 = vmatprep.subr.bf16.mxu0 %v8347_v14  ;;  %v8396_v13 = vld [vmem:[#allocation11 + $0x428] ss:$28 sps:$4 sm:$0xff]   ;;  %v8399_v14 = vld [vmem:[#allocation11 + $0x430] ss:$28 sps:$4 sm:$0xff]  }
 0x5de   :  { %6060 = vmatpush1.bf16.msra.mxu1 %v8342_v15  ;;  %6142 = vmatpush1.bf16.msra.mxu0 %v8345_v16  ;;  %v8404_v15 = vld [vmem:[#allocation11 + $0x464] ss:$28 sps:$4 sm:$0xff]   ;;  %v8407_v16 = vld [vmem:[#allocation11 + $0x46c] ss:$28 sps:$4 sm:$0xff]  }
 0x5df   :  { %6061 = vmatprep.subr.bf16.mxu1 %v8350_v17  ;;  %6143 = vmatprep.subr.bf16.mxu0 %v8353_v49  ;;  %v8402_v17 = vld [vmem:[#allocation11 + $0x460] ss:$28 sps:$4 sm:$0xff]   ;;  %v8405_v49 = vld [vmem:[#allocation11 + $0x468] ss:$28 sps:$4 sm:$0xff]  }
 0x5e2   :  { %6062 = vmatpush1.bf16.msra.mxu1 %v8348_v18  ;;  %6144 = vmatpush1.bf16.msra.mxu0 %v8351_v19  ;;  %v8410_v18 = vld [vmem:[#allocation11 + $0x49c] ss:$28 sps:$4 sm:$0xff]   ;;  %v8413_v19 = vld [vmem:[#allocation11 + $0x4a4] ss:$28 sps:$4 sm:$0xff]  }
 0x5e3   :  { %6063 = vmatprep.subr.bf16.mxu1 %v8356_v22  ;;  %6145 = vmatprep.subr.bf16.mxu0 %v8359_v20  ;;  %v8408_v22 = vld [vmem:[#allocation11 + $0x498] ss:$28 sps:$4 sm:$0xff]   ;;  %v8411_v20 = vld [vmem:[#allocation11 + $0x4a0] ss:$28 sps:$4 sm:$0xff]  }
 0x5e6   :  { %6064 = vmatpush1.bf16.msra.mxu1 %v8354_v56  ;;  %6146 = vmatpush1.bf16.msra.mxu0 %v8357_v21  ;;  %v8416_v56 = vld [vmem:[#allocation11 + $0x4d4] ss:$28 sps:$4 sm:$0xff]   ;;  %v8419_v21 = vld [vmem:[#allocation11 + $0x4dc] ss:$28 sps:$4 sm:$0xff]  }
 0x5e7   :  { %6065 = vmatprep.subr.bf16.mxu1 %v8362_v11  ;;  %6147 = vmatprep.subr.bf16.mxu0 %v8365_v23  ;;  %v8414_v11 = vld [vmem:[#allocation11 + $0x4d0] ss:$28 sps:$4 sm:$0xff]   ;;  %v8417_v23 = vld [vmem:[#allocation11 + $0x4d8] ss:$28 sps:$4 sm:$0xff]  }
 0x5ea   :  { %6066 = vmatpush1.bf16.msra.mxu1 %v8360_v24  ;;  %6148 = vmatpush1.bf16.msra.mxu0 %v8363_v25  ;;  %v8422_v24 = vld [vmem:[#allocation11 + $0x50c] ss:$28 sps:$4 sm:$0xff]   ;;  %v8425_v25 = vld [vmem:[#allocation11 + $0x514] ss:$28 sps:$4 sm:$0xff]  }
 0x5eb   :  { %6067 = vmatprep.subr.bf16.mxu1 %v8368_v26  ;;  %6149 = vmatprep.subr.bf16.mxu0 %v8371_v27  ;;  %v8420_v26 = vld [vmem:[#allocation11 + $0x508] ss:$28 sps:$4 sm:$0xff]   ;;  %v8423_v27 = vld [vmem:[#allocation11 + $0x510] ss:$28 sps:$4 sm:$0xff]  }
 0x5ee   :  { %6068 = vmatpush1.bf16.msra.mxu1 %v8366_v2  ;;  %6150 = vmatpush1.bf16.msra.mxu0 %v8369_v28  ;;  %v8428_v2 = vld [vmem:[#allocation11 + $0x544] ss:$28 sps:$4 sm:$0xff]   ;;  %v8431_v28 = vld [vmem:[#allocation11 + $0x54c] ss:$28 sps:$4 sm:$0xff]  }
 0x5ef   :  { %6069 = vmatprep.subr.bf16.mxu1 %v8374_v29  ;;  %6151 = vmatprep.subr.bf16.mxu0 %v8377_v30  ;;  %v8426_v29 = vld [vmem:[#allocation11 + $0x540] ss:$28 sps:$4 sm:$0xff]   ;;  %v8429_v30 = vld [vmem:[#allocation11 + $0x548] ss:$28 sps:$4 sm:$0xff]  }
 0x5f2   :  { %6070 = vmatpush1.bf16.msra.mxu1 %v8372_v31  ;;  %6152 = vmatpush1.bf16.msra.mxu0 %v8375_v32  ;;  %v8434_v31 = vld [vmem:[#allocation11 + $0x57c] ss:$28 sps:$4 sm:$0xff]   ;;  %v8437_v32 = vld [vmem:[#allocation11 + $0x584] ss:$28 sps:$4 sm:$0xff]  }
 0x5f3   :  { %6080 = vmatprep.subr.bf16.mxu1 %v8380_v33  ;;  %6162 = vmatprep.subr.bf16.mxu0 %v8383_v34  ;;  %v8432_v33 = vld [vmem:[#allocation11 + $0x578] ss:$28 sps:$4 sm:$0xff]   ;;  %v8435_v34 = vld [vmem:[#allocation11 + $0x580] ss:$28 sps:$4 sm:$0xff]  }
 0x688   :  { %v4497_v39 = vpop.f32.mrb[16].mxu1  ;;  %v9161_v40 = vpop.f32.mrb[12].mxu0 }
 0x689   :  { %v7329_v41 = vadd.f32 %v4497_v39, %v3765_v36  ;;  %v4499_v42 = vpop.f32.mrb[17].mxu1  ;;  %v4581_v43 = vpop.f32.mrb[13].mxu0  ;;  %v8440_v36 = vld [vmem:[#allocation11 + $0x5b4] ss:$28 sps:$4 sm:$0xff]  }
 0x68a   :  { %v7330_v44 = vadd.f32 %v4499_v42, %v3769_v37  ;;  %v7332_v45 = vadd.f32 %v4581_v43, %v3777_v38  ;;  %v4501_v46 = vpop.f32.mrb[18].mxu1  ;;  %v4583_v52 = vpop.f32.mrb[14].mxu0  ;;  %v8443_v37 = vld [vmem:[#allocation11 + $0x5bc] ss:$28 sps:$4 sm:$0xff]   ;;  %v8438_v38 = vld [vmem:[#allocation11 + $0x5b0] ss:$28 sps:$4 sm:$0xff]  }
 0x68b   :  { %v4586_v53 = vmax.f32 %v7329_v41, 0.0  ;;  %v4502_v54 = vpop.f32.mrb[19].mxu1  ;;  %v4584_v55 = vpop.f32.mrb[15].mxu0  ;;  %v8441_v39 = vld [vmem:[#allocation11 + $0x5b8] ss:$28 sps:$4 sm:$0xff]  }
 0x68c   :  { %v4587_v57 = vmax.f32 %v7330_v44, 0.0  ;;  %v4589_v58 = vmax.f32 %v7332_v45, 0.0  ;;  %v8446_v41 = vld [vmem:[#allocation11 + $0x5ec] ss:$28 sps:$4 sm:$0xff]   ;;  %v8449_v42 = vld [vmem:[#allocation11 + $0x5f4] ss:$28 sps:$4 sm:$0xff]  }
 0x68d   :  { %v9165_v62 = vpack.c.bf16 %v4586_v53, %v4586_v53  ;;  %v8444_v43 = vld [vmem:[#allocation11 + $0x5e8] ss:$28 sps:$4 sm:$0xff]   ;;  %v8447_v44 = vld [vmem:[#allocation11 + $0x5f0] ss:$28 sps:$4 sm:$0xff]   ;;  %v8450_v52 = vld [vmem:[#allocation11 + $0x620] ss:$28 sps:$4 sm:$0xff]  }
 0x68e   :  { %v9163_v59 = vpack.c.bf16 %v4587_v57, %v4587_v57  ;;  %v9169_v3 = vpack.c.bf16 %v4589_v58, %v4589_v58  ;;  %v8452_v45 = vld [vmem:[#allocation11 + $0x624] ss:$28 sps:$4 sm:$0xff]   ;;  %v8455_v46 = vld [vmem:[#allocation11 + $0x62c] ss:$28 sps:$4 sm:$0xff]   ;;  %v8458_v54 = vld [vmem:[#allocation11 + $0x65c] ss:$28 sps:$4 sm:$0xff]  }
 0x68f   :  { %v8453_v53 = vld [vmem:[#allocation11 + $0x628] ss:$28 sps:$4 sm:$0xff]   ;;  %v8456_v57 = vld [vmem:[#allocation11 + $0x658] ss:$28 sps:$4 sm:$0xff]   ;;  %v8459_v58 = vld [vmem:[#allocation11 + $0x660] ss:$28 sps:$4 sm:$0xff]  }
 0x690   :  { %6071 = vmatprep.mubr.bf16.mxu1 %v9163_v59  ;;  %6153 = vmatprep.mubr.bf16.mxu0 %v9163_v59  ;;  %v8461_v55 = vld [vmem:[#allocation11 + $0x664] ss:$28 sps:$4 sm:$0xff]  }
 0x691   :  { %6072 = vmatmul.mubr.bf16.vlgmr.msra.gmra.mrb[20].mxu1 %v9165_v62  ;;  %6154 = vmatmul.mubr.bf16.vlgmr.msra.gmra.mrb[16].mxu0 %v9165_v62 }
 0x692   :  { %6081 = vmatpush1.bf16.msra.mxu1 %v8378_v60  ;;  %6163 = vmatpush1.bf16.msra.mxu0 %v8381_v61  ;;  %v3773_v60 = vrot.slane %v9153_v35, %v9103_v1  ;;  %v8464_v61 = vld [vmem:[#allocation11 + $0x694] ss:$28 sps:$4 sm:$0xff]  }
 0x693   :  { %6112 = vmatprep.mubr.bf16.mxu1 %v9169_v3  ;;  %6194 = vmatprep.mubr.bf16.mxu0 %v9169_v3  ;;  %v8476_v35 = vld [vmem:[#allocation11 + $0x14] ss:$28 sps:$4 sm:$0xff]  }
 0x694   :  { %6082 = vmatprep.subr.bf16.mxu1 %v8386_v63  ;;  %6164 = vmatprep.subr.bf16.mxu0 %v8389_v0  ;;  %v8467_v63 = vld [vmem:[#allocation11 + $0x69c] ss:$28 sps:$4 sm:$0xff]   ;;  %v8462_v0 = vld [vmem:[#allocation11 + $0x690] ss:$28 sps:$4 sm:$0xff]  }
 0x696   :  { %6083 = vmatpush1.bf16.msra.mxu1 %v8384_v4  ;;  %6165 = vmatpush1.bf16.msra.mxu0 %v8387_v5  ;;  %v8465_v4 = vld [vmem:[#allocation11 + $0x698] ss:$28 sps:$4 sm:$0xff]   ;;  %v7331_v5 = vadd.f32 %v9161_v40, %v3773_v60  ;;  %v8532_v60 = vld [vmem:[#allocation11 + $0x600] ss:$28 sps:$4 sm:$0xff]  }
 0x697   :  { %6084 = vmatprep.subr.bf16.mxu1 %v8392_v6  ;;  %6166 = vmatprep.subr.bf16.mxu0 %v8395_v7  ;;  %v8470_v6 = vld [vmem:[#allocation11 + $0x6cc] ss:$28 sps:$4 sm:$0xff]   ;;  %v8473_v7 = vld [vmem:[#allocation11 + $0x6d4] ss:$28 sps:$4 sm:$0xff]  }
 0x698   :  { %v8478_v40 = vld [vmem:[#allocation11 + $0x18] ss:$28 sps:$4 sm:$0xff]  }
 0x69a   :  { %6085 = vmatpush1.bf16.msra.mxu1 %v8390_v8  ;;  %6167 = vmatpush1.bf16.msra.mxu0 %v8393_v9  ;;  %v8468_v8 = vld [vmem:[#allocation11 + $0x6c8] ss:$28 sps:$4 sm:$0xff]   ;;  %v8471_v9 = vld [vmem:[#allocation11 + $0x6d0] ss:$28 sps:$4 sm:$0xff]  }
 0x69b   :  { %6086 = vmatprep.subr.bf16.mxu1 %v8398_v10  ;;  %6168 = vmatprep.subr.bf16.mxu0 %v8401_v12  ;;  %v4588_v10 = vmax.f32 %v7331_v5, 0.0  ;;  %v8477_v12 = vld [vmem:[#allocation11 + $0x1d8] ss:$28 sps:$4 sm:$0xff]   ;;  %v8534_v5 = vld [vmem:[#allocation11 + $0x2b0] ss:$28 sps:$4 sm:$0xff]  }
 0x69e   :  { %6087 = vmatpush1.bf16.msra.mxu1 %v8396_v13  ;;  %6169 = vmatpush1.bf16.msra.mxu0 %v8399_v14  ;;  %v8474_v13 = vld [vmem:[#allocation11 + $0x10] ss:$28 sps:$4 sm:$0xff]   ;;  %v9178_v14 = vpack.c.bf16 %v4588_v10, %v4588_v10 }
 0x69f   :  { %6088 = vmatprep.subr.bf16.mxu1 %v8404_v15  ;;  %6170 = vmatprep.subr.bf16.mxu0 %v8407_v16  ;;  %v8481_v15 = vld [vmem:[#allocation11 + $0x4c] ss:$28 sps:$4 sm:$0xff]  }
 0x6a0   :  { %v8482_v16 = vld [vmem:[#allocation11 + $0x210] ss:$28 sps:$4 sm:$0xff]  }
 0x6a1   :  { %v8543_v10 = vld [vmem:[#allocation11 + $0x4b0] ss:$28 sps:$4 sm:$0xff]  }
 0x6a2   :  { %6089 = vmatpush1.bf16.msra.mxu1 %v8402_v17  ;;  %6171 = vmatpush1.bf16.msra.mxu0 %v8405_v49  ;;  %v8479_v17 = vld [vmem:[#allocation11 + $0x48] ss:$28 sps:$4 sm:$0xff]   ;;  %v8483_v49 = vld [vmem:[#allocation11 + $0x50] ss:$28 sps:$4 sm:$0xff]  }
 0x6a3   :  { %6090 = vmatprep.subr.bf16.mxu1 %v8410_v18  ;;  %6172 = vmatprep.subr.bf16.mxu0 %v8413_v19  ;;  %v8486_v18 = vld [vmem:[#allocation11 + $0x84] ss:$28 sps:$4 sm:$0xff]  }
 0x6a4   :  { %v8487_v19 = vld [vmem:[#allocation11 + $0x248] ss:$28 sps:$4 sm:$0xff]  }
 0x6a6   :  { %6091 = vmatpush1.bf16.msra.mxu1 %v8408_v22  ;;  %6173 = vmatpush1.bf16.msra.mxu0 %v8411_v20  ;;  %v8484_v22 = vld [vmem:[#allocation11 + $0x80] ss:$28 sps:$4 sm:$0xff]   ;;  %v8488_v20 = vld [vmem:[#allocation11 + $0x88] ss:$28 sps:$4 sm:$0xff]  }
 0x6a7   :  { %6092 = vmatprep.subr.bf16.mxu1 %v8416_v56  ;;  %6174 = vmatprep.subr.bf16.mxu0 %v8419_v21  ;;  %v8491_v56 = vld [vmem:[#allocation11 + $0xbc] ss:$28 sps:$4 sm:$0xff]  }
 0x6a8   :  { %v8492_v21 = vld [vmem:[#allocation11 + $0x280] ss:$28 sps:$4 sm:$0xff]  }
 0x6aa   :  { %6093 = vmatpush1.bf16.msra.mxu1 %v8414_v11  ;;  %6175 = vmatpush1.bf16.msra.mxu0 %v8417_v23  ;;  %v8489_v11 = vld [vmem:[#allocation11 + $0xb8] ss:$28 sps:$4 sm:$0xff]   ;;  %v8493_v23 = vld [vmem:[#allocation11 + $0xc0] ss:$28 sps:$4 sm:$0xff]  }
 0x6ab   :  { %6094 = vmatprep.subr.bf16.mxu1 %v8422_v24  ;;  %6176 = vmatprep.subr.bf16.mxu0 %v8425_v25  ;;  %v8496_v24 = vld [vmem:[#allocation11 + $0xf4] ss:$28 sps:$4 sm:$0xff]  }
 0x6ac   :  { %v8494_v25 = vld [vmem:[#allocation11 + $0xf0] ss:$28 sps:$4 sm:$0xff]  }
 0x6ae   :  { %6095 = vmatpush1.bf16.msra.mxu1 %v8420_v26  ;;  %6177 = vmatpush1.bf16.msra.mxu0 %v8423_v27  ;;  %v8498_v26 = vld [vmem:[#allocation11 + $0xf8] ss:$28 sps:$4 sm:$0xff]   ;;  %v8501_v27 = vld [vmem:[#allocation11 + $0x12c] ss:$28 sps:$4 sm:$0xff]  }
 0x6af   :  { %6096 = vmatprep.subr.bf16.mxu1 %v8428_v2  ;;  %6178 = vmatprep.subr.bf16.mxu0 %v8431_v28  ;;  %v8502_v2 = vld [vmem:[#allocation11 + $0x2f0] ss:$28 sps:$4 sm:$0xff]   ;;  %v8499_v28 = vld [vmem:[#allocation11 + $0x128] ss:$28 sps:$4 sm:$0xff]  }
 0x6b2   :  { %6097 = vmatpush1.bf16.msra.mxu1 %v8426_v29  ;;  %6179 = vmatpush1.bf16.msra.mxu0 %v8429_v30  ;;  %v8503_v29 = vld [vmem:[#allocation11 + $0x130] ss:$28 sps:$4 sm:$0xff]   ;;  %v8506_v30 = vld [vmem:[#allocation11 + $0x164] ss:$28 sps:$4 sm:$0xff]  }
 0x6b3   :  { %6098 = vmatprep.subr.bf16.mxu1 %v8434_v31  ;;  %6180 = vmatprep.subr.bf16.mxu0 %v8437_v32  ;;  %v8507_v31 = vld [vmem:[#allocation11 + $0x328] ss:$28 sps:$4 sm:$0xff]   ;;  %v8504_v32 = vld [vmem:[#allocation11 + $0x160] ss:$28 sps:$4 sm:$0xff]  }
 0x6b6   :  { %6099 = vmatpush1.bf16.msra.mxu1 %v8432_v33  ;;  %6181 = vmatpush1.bf16.msra.mxu0 %v8435_v34  ;;  %v8508_v33 = vld [vmem:[#allocation11 + $0x168] ss:$28 sps:$4 sm:$0xff]   ;;  %v8511_v34 = vld [vmem:[#allocation11 + $0x19c] ss:$28 sps:$4 sm:$0xff]  }
 0x6b7   :  { %6100 = vmatprep.subr.bf16.mxu1 %v8440_v36  ;;  %6182 = vmatprep.subr.bf16.mxu0 %v8443_v37  ;;  %v8512_v36 = vld [vmem:[#allocation11 + $0x360] ss:$28 sps:$4 sm:$0xff]   ;;  %v8509_v37 = vld [vmem:[#allocation11 + $0x198] ss:$28 sps:$4 sm:$0xff]  }
 0x6ba   :  { %6101 = vmatpush1.bf16.msra.mxu1 %v8438_v38  ;;  %6183 = vmatpush1.bf16.msra.mxu0 %v8441_v39  ;;  %v8513_v38 = vld [vmem:[#allocation11 + $0x1a0] ss:$28 sps:$4 sm:$0xff]   ;;  %v8516_v39 = vld [vmem:[#allocation11 + $0x1d4] ss:$28 sps:$4 sm:$0xff]  }
 0x6bb   :  { %6102 = vmatprep.subr.bf16.mxu1 %v8446_v41  ;;  %6184 = vmatprep.subr.bf16.mxu0 %v8449_v42  ;;  %v8517_v41 = vld [vmem:[#allocation11 + $0x558] ss:$28 sps:$4 sm:$0xff]   ;;  %v8514_v42 = vld [vmem:[#allocation11 + $0x1d0] ss:$28 sps:$4 sm:$0xff]  }
 0x6be   :  { %6103 = vmatpush1.bf16.msra.mxu1 %v8444_v43  ;;  %6185 = vmatpush1.bf16.msra.mxu0 %v8447_v44  ;;  %v8518_v43 = vld [vmem:[#allocation11 + $0x398] ss:$28 sps:$4 sm:$0xff]   ;;  %v8521_v44 = vld [vmem:[#allocation11 + $0x20c] ss:$28 sps:$4 sm:$0xff]  }
 0x6bf   :  { %6104 = vmatprep.subr.bf16.mxu1 %v8452_v45  ;;  %6186 = vmatprep.subr.bf16.mxu0 %v8455_v46  ;;  %v8522_v45 = vld [vmem:[#allocation11 + $0x590] ss:$28 sps:$4 sm:$0xff]   ;;  %v8519_v46 = vld [vmem:[#allocation11 + $0x208] ss:$28 sps:$4 sm:$0xff]  }
 0x6c2   :  { %6105 = vmatpush1.bf16.msra.mxu1 %v8450_v52  ;;  %6187 = vmatpush1.bf16.msra.mxu0 %v8453_v53  ;;  %v8523_v52 = vld [vmem:[#allocation11 + $0x3d0] ss:$28 sps:$4 sm:$0xff]   ;;  %v8526_v53 = vld [vmem:[#allocation11 + $0x244] ss:$28 sps:$4 sm:$0xff]  }
 0x6c3   :  { %6106 = vmatprep.subr.bf16.mxu1 %v8458_v54  ;;  %6188 = vmatprep.subr.bf16.mxu0 %v8461_v55  ;;  %v8527_v54 = vld [vmem:[#allocation11 + $0x5c8] ss:$28 sps:$4 sm:$0xff]   ;;  %v8524_v55 = vld [vmem:[#allocation11 + $0x240] ss:$28 sps:$4 sm:$0xff]  }
 0x6c6   :  { %6107 = vmatpush1.bf16.msra.mxu1 %v8456_v57  ;;  %6189 = vmatpush1.bf16.msra.mxu0 %v8459_v58  ;;  %v8528_v57 = vld [vmem:[#allocation11 + $0x408] ss:$28 sps:$4 sm:$0xff]   ;;  %v8531_v58 = vld [vmem:[#allocation11 + $0x27c] ss:$28 sps:$4 sm:$0xff]  }
 0x6c7   :  { %6108 = vmatprep.subr.bf16.mxu1 %v8464_v61  ;;  %6190 = vmatprep.subr.bf16.mxu0 %v8467_v63  ;;  %v8529_v61 = vld [vmem:[#allocation11 + $0x278] ss:$28 sps:$4 sm:$0xff]   ;;  %v8533_v63 = vld [vmem:[#allocation11 + $0x440] ss:$28 sps:$4 sm:$0xff]  }
 0x6ca   :  { %6109 = vmatpush1.bf16.msra.mxu1 %v8462_v0  ;;  %6191 = vmatpush1.bf16.msra.mxu0 %v8465_v4  ;;  %v8536_v0 = vld [vmem:[#allocation11 + $0x2b4] ss:$28 sps:$4 sm:$0xff]  }
 0x6cb   :  { %6110 = vmatprep.subr.bf16.mxu1 %v8470_v6  ;;  %6192 = vmatprep.subr.bf16.mxu0 %v8473_v7  ;;  %v8537_v4 = vld [vmem:[#allocation11 + $0x638] ss:$28 sps:$4 sm:$0xff]   ;;  %v8541_v7 = vld [vmem:[#allocation11 + $0x2ec] ss:$28 sps:$4 sm:$0xff]  }
 0x6cc   :  { %v8538_v6 = vld [vmem:[#allocation11 + $0x478] ss:$28 sps:$4 sm:$0xff]  }
 0x6ce   :  { %6111 = vmatpush1.bf16.msra.mxu1 %v8468_v8  ;;  %6193 = vmatpush1.bf16.msra.mxu0 %v8471_v9  ;;  %v8542_v8 = vld [vmem:[#allocation11 + $0x670] ss:$28 sps:$4 sm:$0xff]   ;;  %v8539_v9 = vld [vmem:[#allocation11 + $0x2e8] ss:$28 sps:$4 sm:$0xff]  }
 0x6cf   :  { %6203 = vmatprep.subr.bf16.mxu1 %v8476_v35  ;;  %7275 = vmatprep.subr.bf16.mxu0 %v8477_v12  ;;  %v8546_v35 = vld [vmem:[#allocation11 + $0x324] ss:$28 sps:$4 sm:$0xff]  }
 0x6d0   :  { %v8547_v12 = vld [vmem:[#allocation11 + $0x6a8] ss:$28 sps:$4 sm:$0xff]  }
 0x6d1   :  { %6113 = vmatmul.mubr.bf16.vlgmr.msra.gmra.mrb[20].mxu1 %v9178_v14  ;;  %6195 = vmatmul.mubr.bf16.vlgmr.msra.gmra.mrb[16].mxu0 %v9178_v14 }
 0x6d2   :  { %6204 = vmatpush1.bf16.msra.mxu1 %v8474_v13  ;;  %6235 = vmatprep.mubr.bf16.mxu1 %v9163_v59  ;;  %v8544_v13 = vld [vmem:[#allocation11 + $0x320] ss:$28 sps:$4 sm:$0xff]  }
 0x6d3   :  { %7276 = vmatpush3.bf16.msra.mxu0 %v8478_v40  ;;  %6317 = vmatprep.mubr.bf16.mxu0 %v9163_v59  ;;  %v8497_v59 = vld [vmem:[#allocation11 + $0x2b8] ss:$28 sps:$4 sm:$0xff]   ;;  %v8548_v40 = vld [vmem:[#allocation11 + $0x4e8] ss:$28 sps:$4 sm:$0xff]  }
 0x6d4   :  { %6205 = vmatprep.subr.bf16.mxu1 %v8481_v15  ;;  %7277 = vmatprep.subr.bf16.mxu0 %v8482_v16  ;;  %v8551_v15 = vld [vmem:[#allocation11 + $0x35c] ss:$28 sps:$4 sm:$0xff]  }
 0x6d5   :  { %v8552_v16 = vld [vmem:[#allocation11 + $0x6e0] ss:$28 sps:$4 sm:$0xff]  }
 0x6d6   :  { %6206 = vmatpush1.bf16.msra.mxu1 %v8479_v17  ;;  %v8549_v17 = vld [vmem:[#allocation11 + $0x358] ss:$28 sps:$4 sm:$0xff]  }
 0x6d7   :  { %7278 = vmatpush3.bf16.msra.mxu0 %v8483_v49  ;;  %6207 = vmatprep.subr.bf16.mxu1 %v8486_v18  ;;  %v8553_v49 = vld [vmem:[#allocation11 + $0x520] ss:$28 sps:$4 sm:$0xff]   ;;  %v8556_v18 = vld [vmem:[#allocation11 + $0x394] ss:$28 sps:$4 sm:$0xff]  }
 0x6d8   :  { %7279 = vmatprep.subr.bf16.mxu0 %v8487_v19  ;;  %v8554_v19 = vld [vmem:[#allocation11 + $0x390] ss:$28 sps:$4 sm:$0xff]  }
 0x6da   :  { %6208 = vmatpush1.bf16.msra.mxu1 %v8484_v22  ;;  %v8559_v22 = vld [vmem:[#allocation11 + $0x3cc] ss:$28 sps:$4 sm:$0xff]  }
 0x6db   :  { %7280 = vmatpush3.bf16.msra.mxu0 %v8488_v20  ;;  %6209 = vmatprep.subr.bf16.mxu1 %v8491_v56  ;;  %v8557_v20 = vld [vmem:[#allocation11 + $0x3c8] ss:$28 sps:$4 sm:$0xff]  }
 0x6dc   :  { %7281 = vmatprep.subr.bf16.mxu0 %v8492_v21  ;;  %v8562_v56 = vld [vmem:[#allocation11 + $0x404] ss:$28 sps:$4 sm:$0xff]  }
 0x6dd   :  { %v8560_v21 = vld [vmem:[#allocation11 + $0x400] ss:$28 sps:$4 sm:$0xff]  }
 0x6de   :  { %6210 = vmatpush1.bf16.msra.mxu1 %v8489_v11  ;;  %v8565_v11 = vld [vmem:[#allocation11 + $0x43c] ss:$28 sps:$4 sm:$0xff]  }
 0x6df   :  { %7282 = vmatpush3.bf16.msra.mxu0 %v8493_v23  ;;  %6211 = vmatprep.subr.bf16.mxu1 %v8496_v24  ;;  %v8563_v23 = vld [vmem:[#allocation11 + $0x438] ss:$28 sps:$4 sm:$0xff]  }
 0x6e0   :  { %7283 = vmatprep.subr.bf16.mxu0 %v8497_v59  ;;  %v8568_v24 = vld [vmem:[#allocation11 + $0x474] ss:$28 sps:$4 sm:$0xff]  }
 0x6e1   :  { %v8566_v59 = vld [vmem:[#allocation11 + $0x470] ss:$28 sps:$4 sm:$0xff]  }
 0x6e2   :  { %6212 = vmatpush1.bf16.msra.mxu1 %v8494_v25  ;;  %v8569_v25 = vld [vmem:[#allocation11 + $0x4a8] ss:$28 sps:$4 sm:$0xff]  }
 0x6e3   :  { %7284 = vmatpush3.bf16.msra.mxu0 %v8498_v26  ;;  %6213 = vmatprep.subr.bf16.mxu1 %v8501_v27  ;;  %v8574_v26 = vld [vmem:[#allocation11 + $0x4e4] ss:$28 sps:$4 sm:$0xff]   ;;  %v8577_v27 = vld [vmem:[#allocation11 + $0x51c] ss:$28 sps:$4 sm:$0xff]  }
 0x6e4   :  { %7285 = vmatprep.subr.bf16.mxu0 %v8502_v2  ;;  %v8575_v2 = vld [vmem:[#allocation11 + $0x518] ss:$28 sps:$4 sm:$0xff]  }
 0x6e6   :  { %6214 = vmatpush1.bf16.msra.mxu1 %v8499_v28  ;;  %v8580_v28 = vld [vmem:[#allocation11 + $0x554] ss:$28 sps:$4 sm:$0xff]  }
 0x6e7   :  { %7286 = vmatpush3.bf16.msra.mxu0 %v8503_v29  ;;  %6215 = vmatprep.subr.bf16.mxu1 %v8506_v30  ;;  %v8578_v29 = vld [vmem:[#allocation11 + $0x550] ss:$28 sps:$4 sm:$0xff]  }
 0x6e8   :  { %7287 = vmatprep.subr.bf16.mxu0 %v8507_v31  ;;  %v8583_v30 = vld [vmem:[#allocation11 + $0x58c] ss:$28 sps:$4 sm:$0xff]  }
 0x6e9   :  { %v8581_v31 = vld [vmem:[#allocation11 + $0x588] ss:$28 sps:$4 sm:$0xff]  }
 0x6ea   :  { %6216 = vmatpush1.bf16.msra.mxu1 %v8504_v32  ;;  %v8586_v32 = vld [vmem:[#allocation11 + $0x5c4] ss:$28 sps:$4 sm:$0xff]  }
 0x6eb   :  { %7288 = vmatpush3.bf16.msra.mxu0 %v8508_v33  ;;  %6217 = vmatprep.subr.bf16.mxu1 %v8511_v34  ;;  %v8584_v33 = vld [vmem:[#allocation11 + $0x5c0] ss:$28 sps:$4 sm:$0xff]  }
 0x6ec   :  { %7289 = vmatprep.subr.bf16.mxu0 %v8512_v36  ;;  %v8589_v34 = vld [vmem:[#allocation11 + $0x5fc] ss:$28 sps:$4 sm:$0xff]  }
 0x6ed   :  { %v8587_v36 = vld [vmem:[#allocation11 + $0x5f8] ss:$28 sps:$4 sm:$0xff]  }
 0x6ee   :  { %6218 = vmatpush1.bf16.msra.mxu1 %v8509_v37  ;;  %v8592_v37 = vld [vmem:[#allocation11 + $0x634] ss:$28 sps:$4 sm:$0xff]  }
 0x6ef   :  { %7290 = vmatpush3.bf16.msra.mxu0 %v8513_v38  ;;  %6219 = vmatprep.subr.bf16.mxu1 %v8516_v39  ;;  %v8590_v38 = vld [vmem:[#allocation11 + $0x630] ss:$28 sps:$4 sm:$0xff]  }
 0x6f0   :  { %7297 = vmatprep.subr.bf16.mxu0 %v8517_v41  ;;  %v8595_v39 = vld [vmem:[#allocation11 + $0x66c] ss:$28 sps:$4 sm:$0xff]  }
 0x6f1   :  { %v8593_v41 = vld [vmem:[#allocation11 + $0x668] ss:$28 sps:$4 sm:$0xff]  }
 0x6f2   :  { %6318 = vmatmul.mubr.bf16.vlgmr.msra.gmra.mrb[20].mxu0 %v9165_v62  ;;  %6220 = vmatpush1.bf16.msra.mxu1 %v8514_v42  ;;  %v8598_v42 = vld [vmem:[#allocation11 + $0x6a4] ss:$28 sps:$4 sm:$0xff]  }
 0x6f3   :  { %7298 = vmatpush3.bf16.msra.mxu0 %v8518_v43  ;;  %6357 = vmatprep.mubr.bf16.mxu0 %v9169_v3  ;;  %v8596_v43 = vld [vmem:[#allocation11 + $0x6a0] ss:$28 sps:$4 sm:$0xff]  }
 0x6f4   :  { %6221 = vmatprep.subr.bf16.mxu1 %v8521_v44  ;;  %7299 = vmatprep.subr.bf16.mxu0 %v8522_v45  ;;  %v8601_v44 = vld [vmem:[#allocation11 + $0x6dc] ss:$28 sps:$4 sm:$0xff]  }
 0x6f5   :  { %v8599_v45 = vld [vmem:[#allocation11 + $0x6d8] ss:$28 sps:$4 sm:$0xff]  }
 0x6f6   :  { %6222 = vmatpush1.bf16.msra.mxu1 %v8519_v46  ;;  %v9193_v46 = vld [vmem:[%s9258_s13] sm:$0xff]  ;;  %s8859_s13 = smov [#allocation14]  }
 0x6f7   :  { %7300 = vmatpush3.bf16.msra.mxu0 %v8523_v52  ;;  %6223 = vmatprep.subr.bf16.mxu1 %v8526_v53  ;;  %v4855_v52 = vrot.slane %v9193_v46, %v9081_v48  ;;  %v4863_v53 = vrot.slane %v9193_v46, %v9103_v1  ;;  %s6432_s10 = sshll.u32 %s8859_s13, 4  ;;  %s6433_s10 = int_to_ptr.vmem [resolvable:$true] %s6432_s10 }
 0x6f8   :  { %7301 = vmatprep.subr.bf16.mxu0 %v8527_v54  ;;  %v4859_v54 = vrot.slane %v9193_v46, %v9089_v50  ;;  %s8768_s18 = scalar_lea.vmem %s6433_s10, 128  ;;  %p8773_p7 = scmp.lt.s32.totalorder %s6433_s10, %s6433_s10 }
 0x6f9   :  { %p8769_p6 = scmp.ne.s32.totalorder %s6433_s10, %s8768_s18  ;;  %p8774_p8 = scmp.lt.s32.totalorder %s8768_s18, %s8768_s18 }
 0x6fa   :  { %6224 = vmatpush1.bf16.msra.mxu1 %v8524_v55  ;;  %v4867_v55 = vrot.slane %v9193_v46, %v9092_v51 }
 0x6fb   :  { %7302 = vmatpush3.bf16.msra.mxu0 %v8528_v57  ;;  %6225 = vmatprep.subr.bf16.mxu1 %v8531_v58  ;;  %p8775_p9 = por %p8774_p8, %p8773_p7 }
 0x6fc   :  { %7303 = vmatprep.subr.bf16.mxu0 %v8532_v60 }
 0x6fd   :  { %p8776_p10 = pnand %p8775_p9, %p8769_p6 }
 0x6fe   :  { %6226 = vmatpush1.bf16.msra.mxu1 %v8529_v61 }
 0x6ff   :  { %7304 = vmatpush3.bf16.msra.mxu0 %v8533_v63  ;;  %6227 = vmatprep.subr.bf16.mxu1 %v8536_v0 }
 0x700   :  { %7305 = vmatprep.subr.bf16.mxu0 %v8537_v4 }
 0x702   :  { %6228 = vmatpush1.bf16.msra.mxu1 %v8534_v5 }
 0x703   :  { %7306 = vmatpush3.bf16.msra.mxu0 %v8538_v6  ;;  %6229 = vmatprep.subr.bf16.mxu1 %v8541_v7 }
 0x704   :  { %7307 = vmatprep.subr.bf16.mxu0 %v8542_v8 }
 0x706   :  { %6230 = vmatpush1.bf16.msra.mxu1 %v8539_v9 }
 0x707   :  { %7308 = vmatpush3.bf16.msra.mxu0 %v8543_v10  ;;  %6231 = vmatprep.subr.bf16.mxu1 %v8546_v35 }
 0x708   :  { %7309 = vmatprep.subr.bf16.mxu0 %v8547_v12 }
 0x70a   :  { %6232 = vmatpush1.bf16.msra.mxu1 %v8544_v13 }
 0x70b   :  { %7310 = vmatpush3.bf16.msra.mxu0 %v8548_v40  ;;  %6233 = vmatprep.subr.bf16.mxu1 %v8551_v15 }
 0x70c   :  { %7311 = vmatprep.subr.bf16.mxu0 %v8552_v16 }
 0x70e   :  { %6234 = vmatpush1.bf16.msra.mxu1 %v8549_v17 }
 0x70f   :  { %7312 = vmatpush3.bf16.msra.mxu0 %v8553_v49  ;;  %6244 = vmatprep.subr.bf16.mxu1 %v8556_v18 }
 0x711   :  { %6236 = vmatmul.mubr.bf16.vlgmr.msra.gmra.mrb[24].mxu1 %v9165_v62  ;;  %v8571_v62 = vld [vmem:[#allocation11 + $0x4ac] ss:$28 sps:$4 sm:$0xff]  }
 0x712   :  { %6358 = vmatmul.mubr.bf16.vlgmr.msra.gmra.mrb[24].mxu0 %v9178_v14  ;;  %6245 = vmatpush1.bf16.msra.mxu1 %v8554_v19 }
 0x713   :  { %6276 = vmatprep.mubr.bf16.mxu1 %v9169_v3  ;;  %6246 = vmatprep.subr.bf16.mxu1 %v8559_v22  ;;  %v8572_v3 = vld [vmem:[#allocation11 + $0x4e0] ss:$28 sps:$4 sm:$0xff]  }
 0x716   :  { %6247 = vmatpush1.bf16.msra.mxu1 %v8557_v20 }
 0x717   :  { %6248 = vmatprep.subr.bf16.mxu1 %v8562_v56 }
 0x71a   :  { %6249 = vmatpush1.bf16.msra.mxu1 %v8560_v21 }
 0x71b   :  { %6250 = vmatprep.subr.bf16.mxu1 %v8565_v11 }
 0x71e   :  { %6251 = vmatpush1.bf16.msra.mxu1 %v8563_v23 }
 0x71f   :  { %6252 = vmatprep.subr.bf16.mxu1 %v8568_v24 }
 0x722   :  { %6253 = vmatpush1.bf16.msra.mxu1 %v8566_v59 }
 0x723   :  { %6254 = vmatprep.subr.bf16.mxu1 %v8571_v62 }
 0x726   :  { %6255 = vmatpush1.bf16.msra.mxu1 %v8569_v25 }
 0x727   :  { %6256 = vmatprep.subr.bf16.mxu1 %v8574_v26 }
 0x72a   :  { %6257 = vmatpush1.bf16.msra.mxu1 %v8572_v3 }
 0x72b   :  { %6258 = vmatprep.subr.bf16.mxu1 %v8577_v27 }
 0x72e   :  { %6259 = vmatpush1.bf16.msra.mxu1 %v8575_v2 }
 0x72f   :  { %6260 = vmatprep.subr.bf16.mxu1 %v8580_v28 }
 0x732   :  { %6261 = vmatpush1.bf16.msra.mxu1 %v8578_v29 }
 0x733   :  { %6262 = vmatprep.subr.bf16.mxu1 %v8583_v30 }
 0x736   :  { %6263 = vmatpush1.bf16.msra.mxu1 %v8581_v31 }
 0x737   :  { %6264 = vmatprep.subr.bf16.mxu1 %v8586_v32 }
 0x73a   :  { %6265 = vmatpush1.bf16.msra.mxu1 %v8584_v33 }
 0x73b   :  { %6266 = vmatprep.subr.bf16.mxu1 %v8589_v34 }
 0x73e   :  { %6267 = vmatpush1.bf16.msra.mxu1 %v8587_v36 }
 0x73f   :  { %6268 = vmatprep.subr.bf16.mxu1 %v8592_v37 }
 0x742   :  { %6269 = vmatpush1.bf16.msra.mxu1 %v8590_v38 }
 0x743   :  { %6270 = vmatprep.subr.bf16.mxu1 %v8595_v39 }
 0x746   :  { %6271 = vmatpush1.bf16.msra.mxu1 %v8593_v41 }
 0x747   :  { %6272 = vmatprep.subr.bf16.mxu1 %v8598_v42 }
 0x74a   :  { %6273 = vmatpush1.bf16.msra.mxu1 %v8596_v43 }
 0x74b   :  { %6274 = vmatprep.subr.bf16.mxu1 %v8601_v44 }
 0x74e   :  { %6275 = vmatpush1.bf16.msra.mxu1 %v8599_v45 }
 0x751   :  { %6277 = vmatmul.mubr.bf16.vlgmr.msra.gmra.mrb[24].mxu1 %v9178_v14 }
 0x7a4   :  { %v6114_v57 = vpop.f32.mrb[20].mxu1  ;;  %v6196_v58 = vpop.f32.mrb[16].mxu0 }
 0x7a5   :  { %v7333_v14 = vadd.f32 %v6114_v57, %v4855_v52  ;;  %v7335_v60 = vadd.f32 %v6196_v58, %v4863_v53  ;;  %v6116_v61 = vpop.f32.mrb[21].mxu1  ;;  %v6198_v63 = vpop.f32.mrb[17].mxu0 }
 0x7a6   :  { %v7334_v0 = vadd.f32 %v6116_v61, %v4859_v54  ;;  %v7336_v4 = vadd.f32 %v6198_v63, %v4867_v55  ;;  %v6118_v5 = vpop.f32.mrb[22].mxu1  ;;  %v6200_v6 = vpop.f32.mrb[18].mxu0 }
 0x7a7   :  { %v7268_v48 = vmul.f32 -1.442695, %v7333_v14  ;;  %v7270_v7 = vmul.f32 -1.442695, %v7335_v60  ;;  %v6119_v8 = vpop.f32.mrb[23].mxu1  ;;  %v6201_v1 = vpop.f32.mrb[19].mxu0 }
 0x7a8   :  { %v7269_v9 = vmul.f32 -1.442695, %v7334_v0  ;;  %v7271_v10 = vmul.f32 -1.442695, %v7336_v4 }
 0x7a9   :  { %8608 = vpow2.f32 %v7268_v48 }
 0x7aa   :  { %8610 = vpow2.f32 %v7270_v7 }
 0x7ab   :  { %8612 = vpow2.f32 %v7269_v9 }
 0x7ac   :  { %8614 = vpow2.f32 %v7271_v10 }
 0x7b3   :  { %v8609_v50 = vpop.eup %8608 }
 0x7b4   :  { %v8611_v51 = vpop.eup %8610  ;;  %v6386_v35 = vadd.f32 1.0, %v8609_v50 }
 0x7b5   :  { %v8613_v12 = vpop.eup %8612  ;;  %v6388_v13 = vadd.f32 1.0, %v8611_v51 }
 0x7b6   :  { %v8615_v40 = vpop.eup %8614  ;;  %8616 = vrcp.f32 %v6386_v35  ;;  %v6387_v15 = vadd.f32 1.0, %v8613_v12 }
 0x7b7   :  { %8618 = vrcp.f32 %v6388_v13  ;;  %v6389_v16 = vadd.f32 1.0, %v8615_v40 }
 0x7b8   :  { %8620 = vrcp.f32 %v6387_v15 }
 0x7b9   :  { %8622 = vrcp.f32 %v6389_v16 }
 0x7c0   :  { %v8617_v17 = vpop.eup %8616 }
 0x7c1   :  { %v8619_v49 = vpop.eup %8618  ;;  %6407 = vst [vmem:[#allocation13] sm:$0xff] %v8617_v17 }
 0x7c2   :  { %v8621_v18 = vpop.eup %8620  ;;  %6409 = vst [vmem:[#allocation13 + $0x10] sm:$0xff] %v8619_v49 }
 0x7c3   :  { %v8623_v19 = vpop.eup %8622  ;;  %6408 = vst [vmem:[#allocation13 + $0x8] sm:$0xff] %v8621_v18 }
 0x7c4   :  { %6410 = vst [vmem:[#allocation13 + $0x18] sm:$0xff] %v8623_v19 }
 0x7c5   :  { %8779 = shalt.err (!%p8776_p10)
}
 0x7c6   :  { %s8780_s12 = scalar_lea.hbm %s9260_s15, 128 }
 0x7c7   :  { %p8781_p11 = scmp.ne.s32.totalorder %s9260_s15, %s8780_s12  ;;  %p8784_p12 = scmp.lt.u32.totalorder %s8780_s12, %s9260_s15 }
 0x7c9   :  { %p8786_p13 = pnand %p8784_p12, %p8781_p11 }
 0x7cb   :  { %8789 = shalt.err (!%p8786_p13)
}
 0x7cc   :  { %6435 = dma.vmem_to_hbm [thread:$0]  %s6433_s10, 128, %s9260_s15, [#allocation15]   ;;  %v7291_v22 = vpop.f32.mrb[20].mxu0 }
 0x7cd   :  { %v7292_v20 = vpop.f32.mrb[21].mxu0  ;;  %s8860_s23 = smov [#allocation16]  }
 0x7ce   :  { %s6442_s2 = sshll.u32 %s8860_s23, 4  ;;  %v7293_v56 = vadd.f32 %v7292_v20, %v7291_v22  ;;  %v7294_v21 = vpop.f32.mrb[22].mxu0  ;;  %s6443_s2 = int_to_ptr.vmem [resolvable:$true] %s6442_s2 }
 0x7cf   :  { %v7295_v11 = vpop.f32.mrb[23].mxu0  ;;  %s8790_s20 = scalar_lea.vmem %s6443_s2, 128  ;;  %p8795_p1 = scmp.lt.s32.totalorder %s6443_s2, %s6443_s2 }
 0x7d0   :  { %p8791_p0 = scmp.ne.s32.totalorder %s6443_s2, %s8790_s20  ;;  %p8796_p2 = scmp.lt.s32.totalorder %s8790_s20, %s8790_s20 }
 0x7d2   :  { %p8797_p3 = por %p8796_p2, %p8795_p1 }
 0x7d4   :  { %p8798_p4 = pnand %p8797_p3, %p8791_p0 }
 0x7d6   :  { %8801 = shalt.err (!%p8798_p4)
}
 0x7d7   :  { %s8802_s0 = scalar_lea.hbm %s9261_s16, 128 }
 0x7d8   :  { %p8803_p5 = scmp.ne.s32.totalorder %s9261_s16, %s8802_s0  ;;  %p8806_p6 = scmp.lt.u32.totalorder %s8802_s0, %s9261_s16 }
 0x7da   :  { %p8808_p7 = pnand %p8806_p6, %p8803_p5 }
 0x7dc   :  { %8811 = shalt.err (!%p8808_p7)
}
 0x7dd   :  { %6445 = dma.vmem_to_hbm [thread:$0]  %s6443_s2, 128, %s9261_s16, [#allocation15]   ;;  %v4878_v23 = vsub.s32 6, %v9078_v47  ;;  %v4870_v32 = vsub.s32 4, %v9078_v47  ;;  %v4874_v33 = vsub.s32 5, %v9078_v47 }
 0x7de   :  { %s8861_s16 = smov [#allocation13]  }
 0x7df   :  { %v4879_v24 = vrot.slane %v9193_v46, %v4878_v23  ;;  %v4871_v34 = vrot.slane %v9193_v46, %v4870_v32  ;;  %v4875_v36 = vrot.slane %v9193_v46, %v4874_v33  ;;  %s6422_s17 = sshll.u32 %s8861_s16, 4  ;;  %s6423_s17 = int_to_ptr.vmem [resolvable:$true] %s6422_s17 }
 0x7e0   :  { %s8812_s9 = scalar_lea.vmem %s6423_s17, 896  ;;  %p8817_p9 = scmp.lt.s32.totalorder %s6423_s17, %s6423_s17 }
 0x7e1   :  { %v6320_v25 = vadd.f32 %v7293_v56, %v4879_v24  ;;  %p8813_p8 = scmp.ne.s32.totalorder %s6423_s17, %s8812_s9  ;;  %p8818_p10 = scmp.lt.s32.totalorder %s8812_s9, %s8812_s9 }
 0x7e3   :  { %p8819_p11 = por %p8818_p10, %p8817_p9 }
 0x7e5   :  { %v7313_v59 = vpop.f32.mrb[24].mxu0  ;;  %p8820_p12 = pnand %p8819_p11, %p8813_p8 }
 0x7e6   :  { %v7314_v62 = vpop.f32.mrb[25].mxu0 }
 0x7e7   :  { %v7315_v26 = vadd.f32 %v7314_v62, %v7313_v59  ;;  %v7316_v3 = vpop.f32.mrb[26].mxu0 }
 0x7e8   :  { %v7317_v27 = vpop.f32.mrb[27].mxu0 }
 0x7e9   :  { %v6360_v2 = vadd.f32 %v7315_v26, %v6320_v25 }
 0x7eb   :  { %v7274_v28 = vmul.f32 -1.442695, %v6360_v2 }
 0x7ed   :  { %8624 = vpow2.f32 %v7274_v28 }
 0x7f7   :  { %v8625_v29 = vpop.eup %8624 }
 0x7f8   :  { %v6392_v30 = vadd.f32 1.0, %v8625_v29 }
 0x7fa   :  { %8626 = vrcp.f32 %v6392_v30 }
 0x804   :  { %v8627_v31 = vpop.eup %8626 }
 0x805   :  { %6413 = vst [vmem:[#allocation13 + $0x30] sm:$0xff] %v8627_v31 }
 0x824   :  { %v6278_v37 = vpop.f32.mrb[24].mxu1 }
 0x825   :  { %v7337_v38 = vadd.f32 %v6278_v37, %v4871_v34  ;;  %v6280_v39 = vpop.f32.mrb[25].mxu1 }
 0x826   :  { %v7338_v41 = vadd.f32 %v6280_v39, %v4875_v36  ;;  %v6282_v42 = vpop.f32.mrb[26].mxu1 }
 0x827   :  { %v7272_v43 = vmul.f32 -1.442695, %v7337_v38  ;;  %v6283_v44 = vpop.f32.mrb[27].mxu1 }
 0x828   :  { %v7273_v45 = vmul.f32 -1.442695, %v7338_v41 }
 0x829   :  { %8628 = vpow2.f32 %v7272_v43 }
 0x82a   :  { %8630 = vpow2.f32 %v7273_v45 }
 0x833   :  { %v8629_v52 = vpop.eup %8628 }
 0x834   :  { %v8631_v53 = vpop.eup %8630  ;;  %v6390_v54 = vadd.f32 1.0, %v8629_v52 }
 0x835   :  { %v6391_v55 = vadd.f32 1.0, %v8631_v53 }
 0x836   :  { %8632 = vrcp.f32 %v6390_v54 }
 0x837   :  { %8634 = vrcp.f32 %v6391_v55 }
 0x840   :  { %v8633_v47 = vpop.eup %8632 }
 0x841   :  { %v8635_v46 = vpop.eup %8634  ;;  %6411 = vst [vmem:[#allocation13 + $0x20] sm:$0xff] %v8633_v47 }
 0x842   :  { %6412 = vst [vmem:[#allocation13 + $0x28] sm:$0xff] %v8635_v46 }
 0x843   :  { %8823 = shalt.err (!%p8820_p12)
}
 0x844   :  { %s8824_s25 = scalar_lea.hbm %s9259_s14, 896 }
 0x845   :  { %p8825_p13 = scmp.ne.s32.totalorder %s9259_s14, %s8824_s25  ;;  %p8828_p0 = scmp.lt.u32.totalorder %s8824_s25, %s9259_s14 }
 0x847   :  { %p8830_p1 = pnand %p8828_p0, %p8825_p13 }
 0x849   :  { %8833 = shalt.err (!%p8830_p1)
}
 0x84a   :  { %6425 = dma.vmem_to_hbm [thread:$0]  %s6423_s17, 896, %s9259_s14, [#allocation4]  }
 0x84b   :  { %8842 = dma.done.wait [#allocation4], 896  }
 0x84c   :  { %8843 = vsyncadd [#allocation4], 4294966400 }
 0x84d   :  { %8844 = dma.done.wait [#allocation15], 256  }
 0x84e   :  { %8845 = vsyncadd [#allocation15], 4294967040 }
 0x84f   :  { %6455 = vsyncpa [#allocation3], 1 }
 0x850   :  { %6456 = vsyncpa [#allocation6], 1 }
 0x851   :  { %6457 = vsyncpa [#allocation9], 1 }
 0x852   :  { %6458 = vsyncpa [#allocation12], 1 }
 0x853   :  { %6459 = vsyncpa [#allocation4], 1 }
 0x854   :  { %6460 = vsyncpa [#allocation15], 1 }

</bundles_post_ra>
